<compile_context>
chip_gen: v6e
topology: v6e:2x2x1
jax: 0.10.0
libtpu: 0.0.40
codegen_flags: <defaults>
</compile_context>

<pallas_src>
import math

import jax
import jax.numpy as jnp
from jax import lax
from jax.experimental import pallas as pl
from jax.experimental.pallas import tpu as pltpu


def _round_up(x, m):
    return ((x + m - 1) // m) * m


def _value_net_kernel(x_ref, w1_ref, b1_ref, w2_ref, b2_ref, w3_ref, b3_ref,
                      o_ref):
    """Fused 3-layer MLP, feature-major intermediates:

        h1  = relu(W1 @ x.T + b1)     (H, Bt)
        h2  = relu(W2 @ h1  + b2)     (H, Bt)
        out = W3 @ h2 + b3            (1, Bt)   <- lane-dense output slab
    """
    cdt = w1_ref.dtype                       # MXU input dtype (f32 or bf16)
    x = x_ref[...].astype(cdt)               # (Bt, S) natural layout, tiny cast

    # W1 (H, S) x x (Bt, S), contracting the feature axis -> (H, Bt).
    h1 = lax.dot_general(w1_ref[...], x,
                         dimension_numbers=(((1,), (1,)), ((), ())),
                         preferred_element_type=jnp.float32)
    h1 = jnp.maximum(h1 + b1_ref[...], 0.0).astype(cdt)        # F.relu

    h2 = jnp.dot(w2_ref[...], h1, preferred_element_type=jnp.float32)
    h2 = jnp.maximum(h2 + b2_ref[...], 0.0).astype(cdt)        # F.relu

    out = jnp.dot(w3_ref[...], h2, preferred_element_type=jnp.float32)
    o_ref[...] = (out + b3_ref[0, 0]).astype(o_ref.dtype)      # (1, Bt)


def value_network_forward(state, params, *, batch_tile=None,
                          vmem_limit_bytes=48 * 1024 * 1024):
    """ValueNetwork forward pass with a fused Pallas TPU kernel.

    state:  (B, state_dim) float32
    params: PyTorch-layout weights:
              w1 (H, S), b1 (H, 1), w2 (H, H), b2 (H, 1), w3 (1, H), b3 (1, 1)
            Weights may be f32 or (preferred) persistently-stored bf16
            (see convert_params_to_bf16); biases are used in f32.
    returns (B, 1) float32
    """
    w1, b1 = params["w1"], params["b1"]
    w2, b2 = params["w2"], params["b2"]
    w3, b3 = params["w3"], params["b3"]

    B, S = state.shape
    H = w1.shape[0]
    assert w1.shape == (H, S) and w2.shape == (H, H) and w3.shape == (1, H)
    assert b1.shape == (H, 1) and b2.shape == (H, 1) and b3.shape == (1, 1)

    # Lane-dense batch tile (>=128, multiple of 128).  For B > 128 aim for at
    # least 2 tiles so the "parallel" grid axis feeds both v7x TensorCores;
    # cap at 2048 so f32 (H, Bt) temporaries stay far under 64 MiB/TC VMEM.
    if batch_tile is None:
        if B <= 128:
            batch_tile = 128
        else:
            batch_tile = min(2048, _round_up(pl.cdiv(B, 2), 128))
    batch_tile = max(128, _round_up(batch_tile, 128))

    num_tiles = pl.cdiv(B, batch_tile)
    B_pad = num_tiles * batch_tile

    # Biases added after the f32 accumulation -> keep f32 (no-op if already).
    b1 = b1.astype(jnp.float32)
    b2 = b2.astype(jnp.float32)
    b3 = b3.astype(jnp.float32)

    # Natural (B, S) layout — no transpose.  Pad rows only for ragged batches.
    x_in = state if B_pad == B else jnp.pad(state, ((0, B_pad - B), (0, 0)))

    def _const(shape):
        # Grid-invariant operand: constant block index + single buffering.
        nd = len(shape)
        return pl.BlockSpec(shape, lambda *_: (0,) * nd,
                            pipeline_mode=pl.Buffered(1))

    in_specs = [
        pl.BlockSpec((batch_tile, S), lambda i: (i, 0)),   # state tile (Bt, S)
        _const((H, S)),                                    # W1
        _const((H, 1)),                                    # b1
        _const((H, H)),                                    # W2
        _const((H, 1)),                                    # b2
        _const((1, H)),                                    # W3
        pl.BlockSpec((1, 1), lambda i: (0, 0),             # b3 -> SMEM scalar
                     memory_space=pltpu.MemorySpace.SMEM),
    ]
    # Lane-dense output slab: last dim = batch_tile (multiple of 128).
    out_spec = pl.BlockSpec((1, batch_tile), lambda i: (0, i))

    out = pl.pallas_call(
        _value_net_kernel,
        out_shape=jax.ShapeDtypeStruct((1, B_pad), jnp.float32),
        grid_spec=pltpu.PrefetchScalarGridSpec(
            num_scalar_prefetch=0,
            grid=(num_tiles,),
            in_specs=in_specs,
            out_specs=out_spec,
        ),
        compiler_params=pltpu.CompilerParams(
            dimension_semantics=("parallel",),
            vmem_limit_bytes=vmem_limit_bytes,
        ),
    )(x_in, w1, b1, w2, b2, w3, b3)

    return out[0, :B].reshape(B, 1)


def convert_params_to_bf16(params):
    """One-off weight cast (do at init / after each optimizer step, NOT per
    forward call): bf16 weights halve the dominant W2 HBM stream and feed the
    MXU its fast dtype.  Biases stay f32 (added after f32 accumulation)."""
    out = dict(params)
    for k in ("w1", "w2", "w3"):
        out[k] = params[k].astype(jnp.bfloat16)
    return out


def init_value_network_params(key, state_dim, hidden_dim, init_w=0.003):
    """Deterministic init mirroring PyTorch defaults, PyTorch weight layout.

    linear1/linear2: U(-1/sqrt(fan_in), 1/sqrt(fan_in)) for weight & bias.
    linear3: U(-init_w, init_w) for weight & bias, as in the module.
    Weights stored as (out_features, in_features); biases as (out_features, 1).
    """
    k1, k2, k3, k4, k5, k6 = jax.random.split(key, 6)

    bound1 = 1.0 / math.sqrt(state_dim)
    w1 = jax.random.uniform(k1, (hidden_dim, state_dim), jnp.float32,
                            -bound1, bound1)
    b1 = jax.random.uniform(k2, (hidden_dim, 1), jnp.float32, -bound1, bound1)

    bound2 = 1.0 / math.sqrt(hidden_dim)
    w2 = jax.random.uniform(k3, (hidden_dim, hidden_dim), jnp.float32,
                            -bound2, bound2)
    b2 = jax.random.uniform(k4, (hidden_dim, 1), jnp.float32, -bound2, bound2)

    w3 = jax.random.uniform(k5, (1, hidden_dim), jnp.float32, -init_w, init_w)
    b3 = jax.random.uniform(k6, (1, 1), jnp.float32, -init_w, init_w)

    return {"w1": w1, "b1": b1, "w2": w2, "b2": b2, "w3": w3, "b3": b3}


if __name__ == "__main__":
    # Shapes consistent with ValueNetwork(state_dim, hidden_dim=512).
    batch = 8
    state_dim = 16
    hidden_dim = 512

    key = jax.random.PRNGKey(0)
    pkey, skey = jax.random.split(key)

    params = init_value_network_params(pkey, state_dim, hidden_dim)
    state = jax.random.normal(skey, (batch, state_dim), dtype=jnp.float32)

    # Pure-JAX reference (PyTorch semantics: y = x @ W.T + b).
    def ref(x, p):
        h1 = jnp.maximum(x @ p["w1"].T + p["b1"][:, 0], 0.0)
        h2 = jnp.maximum(h1 @ p["w2"].T + p["b2"][:, 0], 0.0)
        return h2 @ p["w3"].T + p["b3"]

    # f32 path — exact match.
    out = jax.block_until_ready(value_network_forward(state, params))
    expected = ref(state, params)
    assert out.shape == (batch, 1)
    assert jnp.allclose(out, expected, atol=1e-4, rtol=1e-4), (
        float(jnp.max(jnp.abs(out - expected))))

    # Persistent-bf16 weight fast path (weights cast once, not per call);
    # bf16 MXU inputs / f32 accumulation -> loose tolerance.
    params_bf16 = convert_params_to_bf16(params)
    out_bf16 = jax.block_until_ready(value_network_forward(state, params_bf16))
    assert out_bf16.shape == (batch, 1)
    assert bool(jnp.all(jnp.isfinite(out_bf16)))
    assert jnp.allclose(out_bf16, expected, atol=5e-2, rtol=5e-2)

    # Ragged, multi-tile batch (exercises the >=2-tile "parallel" grid and the
    # pad-only-when-needed path).
    state2 = jax.random.normal(jax.random.PRNGKey(1), (300, state_dim),
                               dtype=jnp.float32)
    out2 = jax.block_until_ready(value_network_forward(state2, params))
    assert out2.shape == (300, 1)
    assert jnp.allclose(out2, ref(state2, params), atol=1e-4, rtol=1e-4)

    print("KERNEL_OK")
</pallas_src>

<mosaic_0001>
module attributes {stable_mosaic.version = 11 : i64} {
  func.func @_value_net_kernel(%arg0: i32, %arg1: memref<128x16xf32, #tpu.memory_space<vmem>>, %arg2: memref<512x16xf32, #tpu.memory_space<vmem>>, %arg3: memref<512x1xf32, #tpu.memory_space<vmem>>, %arg4: memref<512x512xf32, #tpu.memory_space<vmem>>, %arg5: memref<512x1xf32, #tpu.memory_space<vmem>>, %arg6: memref<1x512xf32, #tpu.memory_space<vmem>>, %arg7: memref<1x1xf32, #tpu.memory_space<smem>>, %arg8: memref<1x128xf32, #tpu.memory_space<vmem>>) attributes {dimension_semantics = [#tpu.dimension_semantics<parallel>], iteration_bounds = array<i64: 1>, scalar_prefetch = 0 : i64, scratch_operands = 0 : i64, tpu.core_type = #tpu.core_type<tc>, window_params = [{transform_indices = @transform_0, window_bounds = array<i64: 128, 16>}, {pipeline_mode = #tpu.pipeline_mode<synchronous>, transform_indices = @transform_1, window_bounds = array<i64: 512, 16>}, {pipeline_mode = #tpu.pipeline_mode<synchronous>, transform_indices = @transform_2, window_bounds = array<i64: 512, 1>}, {pipeline_mode = #tpu.pipeline_mode<synchronous>, transform_indices = @transform_3, window_bounds = array<i64: 512, 512>}, {pipeline_mode = #tpu.pipeline_mode<synchronous>, transform_indices = @transform_4, window_bounds = array<i64: 512, 1>}, {pipeline_mode = #tpu.pipeline_mode<synchronous>, transform_indices = @transform_5, window_bounds = array<i64: 1, 512>}, {transform_indices = @transform_6, window_bounds = array<i64: 1, 1>}, {transform_indices = @transform_7, window_bounds = array<i64: 1, 128>}]} {
    %c0 = arith.constant 0 : index
    %c0_0 = arith.constant 0 : index
    %0 = vector.load %arg1[%c0, %c0_0] : memref<128x16xf32, #tpu.memory_space<vmem>>, vector<128x16xf32>
    %c0_1 = arith.constant 0 : index
    %c0_2 = arith.constant 0 : index
    %1 = vector.load %arg2[%c0_1, %c0_2] : memref<512x16xf32, #tpu.memory_space<vmem>>, vector<512x16xf32>
    %cst = arith.constant dense<0.000000e+00> : vector<512x128xf32>
    %2 = tpu.matmul %1, %0, %cst {dimension_numbers = #tpu.dot_dimension_numbers<[1], [1], [0], [0], [0, 0, 1, 0], [], []>} : vector<512x16xf32>, vector<128x16xf32>, vector<512x128xf32> -> vector<512x128xf32>
    %c0_3 = arith.constant 0 : index
    %c0_4 = arith.constant 0 : index
    %3 = vector.load %arg3[%c0_3, %c0_4] : memref<512x1xf32, #tpu.memory_space<vmem>>, vector<512x1xf32>
    %4 = vector.broadcast %3 : vector<512x1xf32> to vector<512x128xf32>
    %5 = arith.addf %2, %4 : vector<512x128xf32>
    %cst_5 = arith.constant 0.000000e+00 : f32
    %6 = vector.broadcast %cst_5 : f32 to vector<512x128xf32>
    %7 = arith.maximumf %5, %6 : vector<512x128xf32>
    %c0_6 = arith.constant 0 : index
    %c0_7 = arith.constant 0 : index
    %8 = vector.load %arg4[%c0_6, %c0_7] : memref<512x512xf32, #tpu.memory_space<vmem>>, vector<512x512xf32>
    %cst_8 = arith.constant dense<0.000000e+00> : vector<512x128xf32>
    %9 = tpu.matmul %8, %7, %cst_8 {dimension_numbers = #tpu.dot_dimension_numbers<[1], [0], [0], [1], [0, 0, 1, 1], [], []>} : vector<512x512xf32>, vector<512x128xf32>, vector<512x128xf32> -> vector<512x128xf32>
    %c0_9 = arith.constant 0 : index
    %c0_10 = arith.constant 0 : index
    %10 = vector.load %arg5[%c0_9, %c0_10] : memref<512x1xf32, #tpu.memory_space<vmem>>, vector<512x1xf32>
    %11 = vector.broadcast %10 : vector<512x1xf32> to vector<512x128xf32>
    %12 = arith.addf %9, %11 : vector<512x128xf32>
    %cst_11 = arith.constant 0.000000e+00 : f32
    %13 = vector.broadcast %cst_11 : f32 to vector<512x128xf32>
    %14 = arith.maximumf %12, %13 : vector<512x128xf32>
    %c0_12 = arith.constant 0 : index
    %c0_13 = arith.constant 0 : index
    %15 = vector.load %arg6[%c0_12, %c0_13] : memref<1x512xf32, #tpu.memory_space<vmem>>, vector<1x512xf32>
    %cst_14 = arith.constant dense<0.000000e+00> : vector<1x128xf32>
    %16 = tpu.matmul %15, %14, %cst_14 {dimension_numbers = #tpu.dot_dimension_numbers<[1], [0], [0], [1], [0, 0, 1, 1], [], []>} : vector<1x512xf32>, vector<512x128xf32>, vector<1x128xf32> -> vector<1x128xf32>
    %c0_15 = arith.constant 0 : index
    %c0_16 = arith.constant 0 : index
    %17 = memref.load %arg7[%c0_15, %c0_16] : memref<1x1xf32, #tpu.memory_space<smem>>
    %18 = vector.broadcast %17 : f32 to vector<1x128xf32>
    %19 = arith.addf %16, %18 : vector<1x128xf32>
    %c0_17 = arith.constant 0 : index
    %c0_18 = arith.constant 0 : index
    %20 = vector.load %arg8[%c0_17, %c0_18] : memref<1x128xf32, #tpu.memory_space<vmem>>, vector<1x128xf32>
    tpu.vector_store %arg8[%c0_17, %c0_18], %19 {strides = array<i32>} : memref<1x128xf32, #tpu.memory_space<vmem>>, vector<1x128xf32>,
    return
  }
  func.func @transform_0(%arg0: i32) -> (i32, i32) {
    %c0_i32 = arith.constant 0 : i32
    %c0_i32_0 = arith.constant 0 : i32
    return %arg0, %c0_i32 : i32, i32
  }
  func.func @transform_1(%arg0: i32) -> (i32, i32) {
    %c0_i32 = arith.constant 0 : i32
    %c0_i32_0 = arith.constant 0 : i32
    %c0_i32_1 = arith.constant 0 : i32
    return %c0_i32, %c0_i32_0 : i32, i32
  }
  func.func @transform_2(%arg0: i32) -> (i32, i32) {
    %c0_i32 = arith.constant 0 : i32
    %c0_i32_0 = arith.constant 0 : i32
    %c0_i32_1 = arith.constant 0 : i32
    return %c0_i32, %c0_i32_0 : i32, i32
  }
  func.func @transform_3(%arg0: i32) -> (i32, i32) {
    %c0_i32 = arith.constant 0 : i32
    %c0_i32_0 = arith.constant 0 : i32
    %c0_i32_1 = arith.constant 0 : i32
    return %c0_i32, %c0_i32_0 : i32, i32
  }
  func.func @transform_4(%arg0: i32) -> (i32, i32) {
    %c0_i32 = arith.constant 0 : i32
    %c0_i32_0 = arith.constant 0 : i32
    %c0_i32_1 = arith.constant 0 : i32
    return %c0_i32, %c0_i32_0 : i32, i32
  }
  func.func @transform_5(%arg0: i32) -> (i32, i32) {
    %c0_i32 = arith.constant 0 : i32
    %c0_i32_0 = arith.constant 0 : i32
    %c0_i32_1 = arith.constant 0 : i32
    return %c0_i32, %c0_i32_0 : i32, i32
  }
  func.func @transform_6(%arg0: i32) -> (i32, i32) {
    %c0_i32 = arith.constant 0 : i32
    %c0_i32_0 = arith.constant 0 : i32
    %c0_i32_1 = arith.constant 0 : i32
    return %c0_i32, %c0_i32_0 : i32, i32
  }
  func.func @transform_7(%arg0: i32) -> (i32, i32) {
    %c0_i32 = arith.constant 0 : i32
    %c0_i32_0 = arith.constant 0 : i32
    return %c0_i32, %arg0 : i32, i32
  }
}

</mosaic_0001>

<bundles_post_ra>
// kernel: tpu_custom_call.1
= control target key start
LH: loop header
LB: loop body
LE: loop exit
PB: predicated region body
PF: predicated region fallthrough
CT: control target
= control target key end

     0   :  { %13 = vsyncpa [#allocation4], 0  ;;  %s4894_s0 = inlined_call_operand.vmem [shape: f32[128,16], index: 0, kind: input, shape index: {}]   ;;  %s4895_s1 = inlined_call_operand.vmem [shape: f32[512,16], index: 1, kind: input, shape index: {}]   ;;  %s4896_s2 = inlined_call_operand.vmem [shape: f32[512,1], index: 2, kind: input, shape index: {}]   ;;  %s4897_s3 = inlined_call_operand.hbm [shape: f32[512,512], index: 3, kind: input, shape index: {}]   ;;  %s4898_s4 = inlined_call_operand.vmem [shape: f32[512,1], index: 4, kind: input, shape index: {}]   ;;  %s4899_s5 = inlined_call_operand.vmem [shape: f32[1,512], index: 5, kind: input, shape index: {}]   ;;  %s4900_s6 = inlined_call_operand.<no memory space> [shape: f32[1,1], index: 6, kind: input, shape index: {}]   ;;  %s4901_s7 = inlined_call_operand.hbm [shape: f32[1,128], index: 7, kind: output, shape index: {}]  }
   0x1   :  { %14 = vsyncpa [#allocation5], 0  ;;  %s3324_s24 = smov [#allocation3]  }
   0x2   :  { %s26_s25 = sshll.u32 %s3324_s24, 4  ;;  %s27_s25 = int_to_ptr.vmem [resolvable:$true] %s26_s25 }
   0x3   :  { %s3288_s26 = scalar_lea.vmem %s27_s25, 32768  ;;  %p3293_p1 = scmp.lt.s32.totalorder %s27_s25, %s27_s25 }
   0x4   :  { %p3289_p0 = scmp.ne.s32.totalorder %s27_s25, %s3288_s26  ;;  %p3294_p2 = scmp.lt.s32.totalorder %s3288_s26, %s3288_s26 }
   0x6   :  { %p3295_p3 = por %p3294_p2, %p3293_p1 }
   0x8   :  { %p3296_p4 = pnand %p3295_p3, %p3289_p0 }
   0xa   :  { %3299 = shalt.err (!%p3296_p4)
}
   0xb   :  { %s3325_s27 = smov 512   ;;  %s3326_s28 = smov 32  }
   0xc   :  { %32 = dma.hbm_to_vmem [thread:$0]  %s4897_s3, 32768, %s27_s25, [#allocation4], %s3325_s27, %s3325_s27, %s3326_s28  }
   0xd   :  { %3320 = dma.done.wait [#allocation4], 32768  }
   0xe   :  { %3321 = vsyncadd [#allocation4], 4294934528  ;;  %v3327_v0 = vmov 0   ;;  %vm506_vm0 = vcmask 130048   ;;  %v137_v1 = vld [vmem:[%s4896_s2 + $0x78] sm:$0xff]  ;;  %v135_v2 = vld [vmem:[%s4896_s2 + $0x68] sm:$0xff] }
   0xf   :  { %3279 = vset.pattern.permute.xlu1 %v3327_v0  ;;  %3278 = vset.pattern.permute.xlu0 %v3327_v0  ;;  %v57_v3 = vld [vmem:[%s4894_s0 + $0x78] sm:$0xff]  ;;  %v56_v4 = vld [vmem:[%s4894_s0 + $0x70] sm:$0xff]  ;;  %v134_v6 = vld [vmem:[%s4896_s2 + $0x60] sm:$0xff]  ;;  %s3329_s17 = smov [#allocation6]  }
  0x10   :  { %263 = vperm.xlu0 %3278, %v137_v1   ;;  %253 = vperm.xlu1 %3279, %v135_v2   ;;  %v136_v5 = vld [vmem:[%s4896_s2 + $0x70] sm:$0xff]  ;;  %v55_v7 = vld [vmem:[%s4894_s0 + $0x68] sm:$0xff]  ;;  %v133_v8 = vld [vmem:[%s4896_s2 + $0x58] sm:$0xff]  ;;  %s2841_s18 = sshll.u32 %s3329_s17, 4  ;;  %s2842_s18 = int_to_ptr.vmem [resolvable:$true] %s2841_s18 }
  0x11   :  { %3080 = vmatprep.subr.msk.mxu0 %vm506_vm0, %v57_v3  ;;  %v132_v9 = vld [vmem:[%s4896_s2 + $0x50] sm:$0xff]  ;;  %v54_v10 = vld [vmem:[%s4894_s0 + $0x60] sm:$0xff]  ;;  %v131_v11 = vld [vmem:[%s4896_s2 + $0x48] sm:$0xff]  ;;  %s3300_s19 = scalar_lea.vmem %s2842_s18, 16  ;;  %s3304_s20 = scalar_lea.vmem %s2842_s18, 32 }
  0x12   :  { %3081 = vmatpush3.xpose.msk.msra.mxu0 %vm506_vm0, %v57_v3  ;;  %v130_v12 = vld [vmem:[%s4896_s2 + $0x40] sm:$0xff]  ;;  %v53_v13 = vld [vmem:[%s4894_s0 + $0x58] sm:$0xff]  ;;  %v128_v15 = vld [vmem:[%s4896_s2 + $0x30] sm:$0xff]  ;;  %p3301_p5 = scmp.ne.s32.totalorder %s2842_s18, %s3300_s19  ;;  %p3305_p6 = scmp.lt.s32.totalorder %s2842_s18, %s2842_s18 }
  0x13   :  { %3082 = vmatprep.subr.msk.mxu0 %vm506_vm0, %v56_v4  ;;  %v129_v14 = vld [vmem:[%s4896_s2 + $0x38] sm:$0xff]  ;;  %v58_v16 = vld [vmem:[%s4895_s1] sm:$0xff]  ;;  %v52_v17 = vld [vmem:[%s4894_s0 + $0x50] sm:$0xff]  ;;  %p3306_p7 = scmp.lt.s32.totalorder %s3304_s20, %s3300_s19 }
  0x14   :  { %258 = vperm.xlu0 %3278, %v136_v5   ;;  %248 = vperm.xlu1 %3279, %v134_v6   ;;  %v127_v18 = vld [vmem:[%s4896_s2 + $0x28] sm:$0xff]  ;;  %v126_v19 = vld [vmem:[%s4896_s2 + $0x20] sm:$0xff]  ;;  %v125_v21 = vld [vmem:[%s4896_s2 + $0x18] sm:$0xff] }
  0x15   :  { %3112 = vmatprep.mubr.msk.f32.mxu0 %vm506_vm0, %v58_v16  ;;  %v51_v20 = vld [vmem:[%s4894_s0 + $0x48] sm:$0xff]  ;;  %v124_v22 = vld [vmem:[%s4896_s2 + $0x10] sm:$0xff]  ;;  %v50_v23 = vld [vmem:[%s4894_s0 + $0x40] sm:$0xff]  ;;  %p3307_p8 = por %p3306_p7, %p3305_p6 }
  0x16   :  { %3083 = vmatpush3.xpose.msk.msra.mxu0 %vm506_vm0, %v56_v4  ;;  %v123_v24 = vld [vmem:[%s4896_s2 + $0x8] sm:$0xff]  ;;  %v122_v25 = vld [vmem:[%s4896_s2] sm:$0xff]  ;;  %v49_v26 = vld [vmem:[%s4894_s0 + $0x38] sm:$0xff] }
  0x17   :  { %3084 = vmatprep.subr.msk.mxu0 %vm506_vm0, %v55_v7  ;;  %v153_v27 = vld [vmem:[%s4896_s2 + $0xf8] sm:$0xff]  ;;  %v152_v28 = vld [vmem:[%s4896_s2 + $0xf0] sm:$0xff]  ;;  %v151_v30 = vld [vmem:[%s4896_s2 + $0xe8] sm:$0xff]  ;;  %p3308_p9 = pnand %p3307_p8, %p3301_p5 }
  0x18   :  { %243 = vperm.xlu0 %3278, %v133_v8   ;;  %238 = vperm.xlu1 %3279, %v132_v9   ;;  %v48_v29 = vld [vmem:[%s4894_s0 + $0x30] sm:$0xff]  ;;  %v150_v31 = vld [vmem:[%s4896_s2 + $0xe0] sm:$0xff]  ;;  %v47_v32 = vld [vmem:[%s4894_s0 + $0x28] sm:$0xff] }
  0x19   :  { %v149_v33 = vld [vmem:[%s4896_s2 + $0xd8] sm:$0xff]  ;;  %v148_v34 = vld [vmem:[%s4896_s2 + $0xd0] sm:$0xff]  ;;  %v46_v35 = vld [vmem:[%s4894_s0 + $0x20] sm:$0xff] }
  0x1a   :  { %3085 = vmatpush3.xpose.msk.msra.mxu0 %vm506_vm0, %v55_v7  ;;  %v147_v36 = vld [vmem:[%s4896_s2 + $0xc8] sm:$0xff]  ;;  %v146_v37 = vld [vmem:[%s4896_s2 + $0xc0] sm:$0xff]  ;;  %v45_v38 = vld [vmem:[%s4894_s0 + $0x18] sm:$0xff] }
  0x1b   :  { %3086 = vmatprep.subr.msk.mxu0 %vm506_vm0, %v54_v10  ;;  %v145_v39 = vld [vmem:[%s4896_s2 + $0xb8] sm:$0xff]  ;;  %v144_v40 = vld [vmem:[%s4896_s2 + $0xb0] sm:$0xff]  ;;  %v143_v42 = vld [vmem:[%s4896_s2 + $0xa8] sm:$0xff] }
  0x1c   :  { %233 = vperm.xlu0 %3278, %v131_v11   ;;  %228 = vperm.xlu1 %3279, %v130_v12   ;;  %v44_v41 = vld [vmem:[%s4894_s0 + $0x10] sm:$0xff]  ;;  %v142_v43 = vld [vmem:[%s4896_s2 + $0xa0] sm:$0xff]  ;;  %v43_v44 = vld [vmem:[%s4894_s0 + $0x8] sm:$0xff] }
  0x1d   :  { %v141_v45 = vld [vmem:[%s4896_s2 + $0x98] sm:$0xff]  ;;  %v140_v46 = vld [vmem:[%s4896_s2 + $0x90] sm:$0xff]  ;;  %v42_v47 = vld [vmem:[%s4894_s0] sm:$0xff] }
  0x1e   :  { %3087 = vmatpush3.xpose.msk.msra.mxu0 %vm506_vm0, %v54_v10  ;;  %v139_v48 = vld [vmem:[%s4896_s2 + $0x88] sm:$0xff]  ;;  %v138_v49 = vld [vmem:[%s4896_s2 + $0x80] sm:$0xff]  ;;  %v169_v50 = vld [vmem:[%s4896_s2 + $0x178] sm:$0xff] }
  0x1f   :  { %3088 = vmatprep.subr.msk.mxu0 %vm506_vm0, %v53_v13  ;;  %v168_v51 = vld [vmem:[%s4896_s2 + $0x170] sm:$0xff]  ;;  %v59_v52 = vld [vmem:[%s4895_s1 + $0x8] sm:$0xff]  ;;  %v166_v55 = vld [vmem:[%s4896_s2 + $0x160] sm:$0xff] }
  0x20   :  { %223 = vperm.xlu0 %3278, %v129_v14   ;;  %218 = vperm.xlu1 %3279, %v128_v15   ;;  %v60_v53 = vld [vmem:[%s4895_s1 + $0x10] sm:$0xff]  ;;  %v167_v54 = vld [vmem:[%s4896_s2 + $0x168] sm:$0xff]  ;;  %v61_v56 = vld [vmem:[%s4895_s1 + $0x18] sm:$0xff] }
  0x21   :  { %v62_v57 = vld [vmem:[%s4895_s1 + $0x20] sm:$0xff]  ;;  %v165_v58 = vld [vmem:[%s4896_s2 + $0x158] sm:$0xff]  ;;  %v164_v59 = vld [vmem:[%s4896_s2 + $0x150] sm:$0xff] }
  0x22   :  { %3089 = vmatpush3.xpose.msk.msra.mxu0 %vm506_vm0, %v53_v13  ;;  %v63_v60 = vld [vmem:[%s4895_s1 + $0x28] sm:$0xff]  ;;  %v64_v61 = vld [vmem:[%s4895_s1 + $0x30] sm:$0xff]  ;;  %v162_v63 = vld [vmem:[%s4896_s2 + $0x140] sm:$0xff] }
  0x23   :  { %3090 = vmatprep.subr.msk.mxu0 %vm506_vm0, %v52_v17  ;;  %v163_v62 = vld [vmem:[%s4896_s2 + $0x148] sm:$0xff]  ;;  %v65_v0 = vld [vmem:[%s4895_s1 + $0x38] sm:$0xff]  ;;  %v66_v1 = vld [vmem:[%s4895_s1 + $0x40] sm:$0xff] }
  0x24   :  { %213 = vperm.xlu0 %3278, %v127_v18   ;;  %208 = vperm.xlu1 %3279, %v126_v19   ;;  %v161_v2 = vld [vmem:[%s4896_s2 + $0x138] sm:$0xff]  ;;  %v160_v3 = vld [vmem:[%s4896_s2 + $0x130] sm:$0xff]  ;;  %v67_v4 = vld [vmem:[%s4895_s1 + $0x48] sm:$0xff] }
  0x25   :  { %v68_v5 = vld [vmem:[%s4895_s1 + $0x50] sm:$0xff]  ;;  %v159_v6 = vld [vmem:[%s4896_s2 + $0x128] sm:$0xff]  ;;  %v158_v7 = vld [vmem:[%s4896_s2 + $0x120] sm:$0xff] }
  0x26   :  { %3091 = vmatpush3.xpose.msk.msra.mxu0 %vm506_vm0, %v52_v17  ;;  %v69_v8 = vld [vmem:[%s4895_s1 + $0x58] sm:$0xff]  ;;  %v70_v9 = vld [vmem:[%s4895_s1 + $0x60] sm:$0xff]  ;;  %v156_v11 = vld [vmem:[%s4896_s2 + $0x110] sm:$0xff] }
  0x27   :  { %3092 = vmatprep.subr.msk.mxu0 %vm506_vm0, %v51_v20  ;;  %v157_v10 = vld [vmem:[%s4896_s2 + $0x118] sm:$0xff]  ;;  %v71_v12 = vld [vmem:[%s4895_s1 + $0x68] sm:$0xff]  ;;  %v72_v13 = vld [vmem:[%s4895_s1 + $0x70] sm:$0xff] }
  0x28   :  { %203 = vperm.xlu0 %3278, %v125_v21   ;;  %198 = vperm.xlu1 %3279, %v124_v22   ;;  %v155_v14 = vld [vmem:[%s4896_s2 + $0x108] sm:$0xff]  ;;  %v154_v15 = vld [vmem:[%s4896_s2 + $0x100] sm:$0xff]  ;;  %v73_v16 = vld [vmem:[%s4895_s1 + $0x78] sm:$0xff] }
  0x29   :  { %v74_v17 = vld [vmem:[%s4895_s1 + $0x80] sm:$0xff]  ;;  %v185_v18 = vld [vmem:[%s4896_s2 + $0x1f8] sm:$0xff]  ;;  %v184_v19 = vld [vmem:[%s4896_s2 + $0x1f0] sm:$0xff] }
  0x2a   :  { %3093 = vmatpush3.xpose.msk.msra.mxu0 %vm506_vm0, %v51_v20  ;;  %v75_v20 = vld [vmem:[%s4895_s1 + $0x88] sm:$0xff]  ;;  %v76_v21 = vld [vmem:[%s4895_s1 + $0x90] sm:$0xff] }
  0x2b   :  { %3094 = vmatprep.subr.msk.mxu0 %vm506_vm0, %v50_v23  ;;  %v183_v22 = vld [vmem:[%s4896_s2 + $0x1e8] sm:$0xff] }
  0x2c   :  { %193 = vperm.xlu0 %3278, %v123_v24   ;;  %188 = vperm.xlu1 %3279, %v122_v25   ;;  %v77_v24 = vld [vmem:[%s4895_s1 + $0x98] sm:$0xff]  ;;  %v78_v25 = vld [vmem:[%s4895_s1 + $0xa0] sm:$0xff] }
  0x2e   :  { %3095 = vmatpush3.xpose.msk.msra.mxu0 %vm506_vm0, %v50_v23  ;;  %v182_v23 = vld [vmem:[%s4896_s2 + $0x1e0] sm:$0xff] }
  0x2f   :  { %3096 = vmatprep.subr.msk.mxu0 %vm506_vm0, %v49_v26 }
  0x30   :  { %343 = vperm.xlu0 %3278, %v153_v27   ;;  %338 = vperm.xlu1 %3279, %v152_v28   ;;  %v180_v27 = vld [vmem:[%s4896_s2 + $0x1d0] sm:$0xff]  ;;  %v79_v28 = vld [vmem:[%s4895_s1 + $0xa8] sm:$0xff] }
  0x32   :  { %3097 = vmatpush3.xpose.msk.msra.mxu0 %vm506_vm0, %v49_v26  ;;  %v181_v26 = vld [vmem:[%s4896_s2 + $0x1d8] sm:$0xff] }
  0x33   :  { %3098 = vmatprep.subr.msk.mxu0 %vm506_vm0, %v48_v29 }
  0x34   :  { %333 = vperm.xlu0 %3278, %v151_v30   ;;  %328 = vperm.xlu1 %3279, %v150_v31   ;;  %v179_v30 = vld [vmem:[%s4896_s2 + $0x1c8] sm:$0xff]  ;;  %v178_v31 = vld [vmem:[%s4896_s2 + $0x1c0] sm:$0xff] }
  0x36   :  { %3099 = vmatpush3.xpose.msk.msra.mxu0 %vm506_vm0, %v48_v29  ;;  %v80_v29 = vld [vmem:[%s4895_s1 + $0xb0] sm:$0xff] }
  0x37   :  { %3100 = vmatprep.subr.msk.mxu0 %vm506_vm0, %v47_v32 }
  0x38   :  { %323 = vperm.xlu0 %3278, %v149_v33   ;;  %318 = vperm.xlu1 %3279, %v148_v34   ;;  %v82_v33 = vld [vmem:[%s4895_s1 + $0xc0] sm:$0xff]  ;;  %v177_v34 = vld [vmem:[%s4896_s2 + $0x1b8] sm:$0xff] }
  0x3a   :  { %3101 = vmatpush3.xpose.msk.msra.mxu0 %vm506_vm0, %v47_v32  ;;  %v81_v32 = vld [vmem:[%s4895_s1 + $0xb8] sm:$0xff] }
  0x3b   :  { %3102 = vmatprep.subr.msk.mxu0 %vm506_vm0, %v46_v35 }
  0x3c   :  { %313 = vperm.xlu0 %3278, %v147_v36   ;;  %308 = vperm.xlu1 %3279, %v146_v37   ;;  %v83_v36 = vld [vmem:[%s4895_s1 + $0xc8] sm:$0xff]  ;;  %v84_v37 = vld [vmem:[%s4895_s1 + $0xd0] sm:$0xff] }
  0x3e   :  { %3103 = vmatpush3.xpose.msk.msra.mxu0 %vm506_vm0, %v46_v35  ;;  %v176_v35 = vld [vmem:[%s4896_s2 + $0x1b0] sm:$0xff] }
  0x3f   :  { %3104 = vmatprep.subr.msk.mxu0 %vm506_vm0, %v45_v38 }
  0x40   :  { %303 = vperm.xlu0 %3278, %v145_v39   ;;  %298 = vperm.xlu1 %3279, %v144_v40   ;;  %v174_v39 = vld [vmem:[%s4896_s2 + $0x1a0] sm:$0xff]  ;;  %v85_v40 = vld [vmem:[%s4895_s1 + $0xd8] sm:$0xff] }
  0x42   :  { %3105 = vmatpush3.xpose.msk.msra.mxu0 %vm506_vm0, %v45_v38  ;;  %v175_v38 = vld [vmem:[%s4896_s2 + $0x1a8] sm:$0xff] }
  0x43   :  { %3106 = vmatprep.subr.msk.mxu0 %vm506_vm0, %v44_v41 }
  0x44   :  { %293 = vperm.xlu0 %3278, %v143_v42   ;;  %288 = vperm.xlu1 %3279, %v142_v43   ;;  %v173_v42 = vld [vmem:[%s4896_s2 + $0x198] sm:$0xff]  ;;  %v172_v43 = vld [vmem:[%s4896_s2 + $0x190] sm:$0xff] }
  0x46   :  { %3107 = vmatpush3.xpose.msk.msra.mxu0 %vm506_vm0, %v44_v41  ;;  %v86_v41 = vld [vmem:[%s4895_s1 + $0xe0] sm:$0xff] }
  0x47   :  { %3108 = vmatprep.subr.msk.mxu0 %vm506_vm0, %v43_v44 }
  0x48   :  { %283 = vperm.xlu0 %3278, %v141_v45   ;;  %278 = vperm.xlu1 %3279, %v140_v46   ;;  %v88_v45 = vld [vmem:[%s4895_s1 + $0xf0] sm:$0xff]  ;;  %v171_v46 = vld [vmem:[%s4896_s2 + $0x188] sm:$0xff] }
  0x4a   :  { %3109 = vmatpush3.xpose.msk.msra.mxu0 %vm506_vm0, %v43_v44  ;;  %v87_v44 = vld [vmem:[%s4895_s1 + $0xe8] sm:$0xff] }
  0x4b   :  { %3110 = vmatprep.subr.msk.mxu0 %vm506_vm0, %v42_v47 }
  0x4c   :  { %273 = vperm.xlu0 %3278, %v139_v48   ;;  %268 = vperm.xlu1 %3279, %v138_v49   ;;  %v89_v48 = vld [vmem:[%s4895_s1 + $0xf8] sm:$0xff]  ;;  %v90_v49 = vld [vmem:[%s4895_s1 + $0x100] sm:$0xff] }
  0x4e   :  { %3111 = vmatpush3.xpose.msk.msra.mxu0 %vm506_vm0, %v42_v47  ;;  %v170_v47 = vld [vmem:[%s4896_s2 + $0x180] sm:$0xff] }
  0x50   :  { %423 = vperm.xlu0 %3278, %v169_v50   ;;  %418 = vperm.xlu1 %3279, %v168_v51   ;;  %v1483_v50 = vld [vmem:[%s4898_s4 + $0xf8] sm:$0xff] }
  0x51   :  { %3113 = vmatmul.mubr.msk.f32.vlgmr.msra.gmra.mxu0 %vm506_vm0, %v59_v52  ;;  %v1467_v51 = vld [vmem:[%s4898_s4 + $0x78] sm:$0xff]  ;;  %v91_v52 = vld [vmem:[%s4895_s1 + $0x108] sm:$0xff] }
  0x52   :  { %3115 = vmatprep.mubr.msk.f32.mxu0 %vm506_vm0, %v60_v53  ;;  %v92_v53 = vld [vmem:[%s4895_s1 + $0x110] sm:$0xff] }
  0x54   :  { %413 = vperm.xlu0 %3278, %v167_v54   ;;  %408 = vperm.xlu1 %3279, %v166_v55   ;;  %v1482_v54 = vld [vmem:[%s4898_s4 + $0xf0] sm:$0xff] }
  0x55   :  { %3116 = vmatmul.mubr.msk.f32.gmra.mxu0 %vm506_vm0, %v61_v56  ;;  %v1466_v55 = vld [vmem:[%s4898_s4 + $0x70] sm:$0xff]  ;;  %v93_v56 = vld [vmem:[%s4895_s1 + $0x118] sm:$0xff] }
  0x56   :  { %3118 = vmatprep.mubr.msk.f32.mxu0 %vm506_vm0, %v62_v57  ;;  %v94_v57 = vld [vmem:[%s4895_s1 + $0x120] sm:$0xff] }
  0x58   :  { %403 = vperm.xlu0 %3278, %v165_v58   ;;  %398 = vperm.xlu1 %3279, %v164_v59   ;;  %v1481_v58 = vld [vmem:[%s4898_s4 + $0xe8] sm:$0xff] }
  0x59   :  { %3119 = vmatmul.mubr.msk.f32.gmra.mxu0 %vm506_vm0, %v63_v60  ;;  %v1465_v59 = vld [vmem:[%s4898_s4 + $0x68] sm:$0xff] }
  0x5a   :  { %3121 = vmatprep.mubr.msk.f32.mxu0 %vm506_vm0, %v64_v61  ;;  %v95_v60 = vld [vmem:[%s4895_s1 + $0x128] sm:$0xff]  ;;  %v96_v61 = vld [vmem:[%s4895_s1 + $0x130] sm:$0xff] }
  0x5c   :  { %393 = vperm.xlu0 %3278, %v163_v62   ;;  %388 = vperm.xlu1 %3279, %v162_v63   ;;  %v1480_v62 = vld [vmem:[%s4898_s4 + $0xe0] sm:$0xff] }
  0x5d   :  { %3122 = vmatmul.mubr.msk.f32.gmra.mxu0 %vm506_vm0, %v65_v0  ;;  %v1464_v63 = vld [vmem:[%s4898_s4 + $0x60] sm:$0xff]  ;;  %v97_v0 = vld [vmem:[%s4895_s1 + $0x138] sm:$0xff] }
  0x5e   :  { %3124 = vmatprep.mubr.msk.f32.mxu0 %vm506_vm0, %v66_v1  ;;  %v98_v1 = vld [vmem:[%s4895_s1 + $0x140] sm:$0xff] }
  0x60   :  { %383 = vperm.xlu0 %3278, %v161_v2   ;;  %378 = vperm.xlu1 %3279, %v160_v3   ;;  %v1479_v2 = vld [vmem:[%s4898_s4 + $0xd8] sm:$0xff] }
  0x61   :  { %3125 = vmatmul.mubr.msk.f32.gmra.mxu0 %vm506_vm0, %v67_v4  ;;  %v1463_v3 = vld [vmem:[%s4898_s4 + $0x58] sm:$0xff]  ;;  %v99_v4 = vld [vmem:[%s4895_s1 + $0x148] sm:$0xff] }
  0x62   :  { %3127 = vmatprep.mubr.msk.f32.mxu0 %vm506_vm0, %v68_v5  ;;  %v100_v5 = vld [vmem:[%s4895_s1 + $0x150] sm:$0xff] }
  0x64   :  { %373 = vperm.xlu0 %3278, %v159_v6   ;;  %368 = vperm.xlu1 %3279, %v158_v7   ;;  %v1478_v6 = vld [vmem:[%s4898_s4 + $0xd0] sm:$0xff] }
  0x65   :  { %3128 = vmatmul.mubr.msk.f32.gmra.mxu0 %vm506_vm0, %v69_v8  ;;  %v1462_v7 = vld [vmem:[%s4898_s4 + $0x50] sm:$0xff]  ;;  %v101_v8 = vld [vmem:[%s4895_s1 + $0x158] sm:$0xff] }
  0x66   :  { %3130 = vmatprep.mubr.msk.f32.mxu0 %vm506_vm0, %v70_v9  ;;  %v102_v9 = vld [vmem:[%s4895_s1 + $0x160] sm:$0xff] }
  0x68   :  { %363 = vperm.xlu0 %3278, %v157_v10   ;;  %358 = vperm.xlu1 %3279, %v156_v11   ;;  %v1477_v10 = vld [vmem:[%s4898_s4 + $0xc8] sm:$0xff] }
  0x69   :  { %3131 = vmatmul.mubr.msk.f32.gmra.mxu0 %vm506_vm0, %v71_v12  ;;  %v1461_v11 = vld [vmem:[%s4898_s4 + $0x48] sm:$0xff] }
  0x6a   :  { %3133 = vmatprep.mubr.msk.f32.mxu0 %vm506_vm0, %v72_v13  ;;  %v103_v12 = vld [vmem:[%s4895_s1 + $0x168] sm:$0xff]  ;;  %v104_v13 = vld [vmem:[%s4895_s1 + $0x170] sm:$0xff] }
  0x6c   :  { %353 = vperm.xlu0 %3278, %v155_v14   ;;  %348 = vperm.xlu1 %3279, %v154_v15   ;;  %v1476_v14 = vld [vmem:[%s4898_s4 + $0xc0] sm:$0xff] }
  0x6d   :  { %3134 = vmatmul.mubr.msk.f32.gmra.mxu0 %vm506_vm0, %v73_v16  ;;  %v1460_v15 = vld [vmem:[%s4898_s4 + $0x40] sm:$0xff]  ;;  %v105_v16 = vld [vmem:[%s4895_s1 + $0x178] sm:$0xff] }
  0x6e   :  { %3136 = vmatprep.mubr.msk.f32.mxu0 %vm506_vm0, %v74_v17  ;;  %v106_v17 = vld [vmem:[%s4895_s1 + $0x180] sm:$0xff] }
  0x70   :  { %503 = vperm.xlu0 %3278, %v185_v18   ;;  %498 = vperm.xlu1 %3279, %v184_v19   ;;  %v1475_v18 = vld [vmem:[%s4898_s4 + $0xb8] sm:$0xff] }
  0x71   :  { %3137 = vmatmul.mubr.msk.f32.gmra.mxu0 %vm506_vm0, %v75_v20  ;;  %v1459_v19 = vld [vmem:[%s4898_s4 + $0x38] sm:$0xff]  ;;  %v107_v20 = vld [vmem:[%s4895_s1 + $0x188] sm:$0xff] }
  0x72   :  { %3139 = vmatprep.mubr.msk.f32.mxu0 %vm506_vm0, %v76_v21  ;;  %v108_v21 = vld [vmem:[%s4895_s1 + $0x190] sm:$0xff] }
  0x74   :  { %493 = vperm.xlu0 %3278, %v183_v22   ;;  %488 = vperm.xlu1 %3279, %v182_v23   ;;  %v1474_v22 = vld [vmem:[%s4898_s4 + $0xb0] sm:$0xff] }
  0x75   :  { %3140 = vmatmul.mubr.msk.f32.gmra.mxu0 %vm506_vm0, %v77_v24  ;;  %v1458_v23 = vld [vmem:[%s4898_s4 + $0x30] sm:$0xff]  ;;  %v3328_v24 = vmov 0.0  }
  0x76   :  { %3142 = vmatprep.mubr.msk.f32.mxu0 %vm506_vm0, %v78_v25  ;;  %1836 = vmatprep.subr.mxu1 %v3328_v24  ;;  %v109_v25 = vld [vmem:[%s4895_s1 + $0x198] sm:$0xff] }
  0x77   :  { %2221 = vmatprep.subr.mxu0 %v3328_v24 }
  0x78   :  { %483 = vperm.xlu0 %3278, %v181_v26   ;;  %478 = vperm.xlu1 %3279, %v180_v27   ;;  %v110_v26 = vld [vmem:[%s4895_s1 + $0x1a0] sm:$0xff]  ;;  %v1473_v27 = vld [vmem:[%s4898_s4 + $0xa8] sm:$0xff] }
  0x79   :  { %3143 = vmatmul.mubr.msk.f32.gmra.mxu0 %vm506_vm0, %v79_v28  ;;  %v1457_v28 = vld [vmem:[%s4898_s4 + $0x28] sm:$0xff] }
  0x7a   :  { %3145 = vmatprep.mubr.msk.f32.mxu0 %vm506_vm0, %v80_v29  ;;  %v111_v29 = vld [vmem:[%s4895_s1 + $0x1a8] sm:$0xff] }
  0x7c   :  { %473 = vperm.xlu0 %3278, %v179_v30   ;;  %468 = vperm.xlu1 %3279, %v178_v31   ;;  %v112_v30 = vld [vmem:[%s4895_s1 + $0x1b0] sm:$0xff] }
  0x7d   :  { %3146 = vmatmul.mubr.msk.f32.gmra.mxu0 %vm506_vm0, %v81_v32 }
  0x7e   :  { %3148 = vmatprep.mubr.msk.f32.mxu0 %vm506_vm0, %v82_v33  ;;  %v1472_v33 = vld [vmem:[%s4898_s4 + $0xa0] sm:$0xff] }
  0x80   :  { %463 = vperm.xlu0 %3278, %v177_v34   ;;  %458 = vperm.xlu1 %3279, %v176_v35   ;;  %v1456_v34 = vld [vmem:[%s4898_s4 + $0x20] sm:$0xff]  ;;  %v113_v35 = vld [vmem:[%s4895_s1 + $0x1b8] sm:$0xff] }
  0x81   :  { %3149 = vmatmul.mubr.msk.f32.gmra.mxu0 %vm506_vm0, %v83_v36  ;;  %v114_v36 = vld [vmem:[%s4895_s1 + $0x1c0] sm:$0xff] }
  0x82   :  { %3151 = vmatprep.mubr.msk.f32.mxu0 %vm506_vm0, %v84_v37  ;;  %v1471_v37 = vld [vmem:[%s4898_s4 + $0x98] sm:$0xff] }
  0x84   :  { %453 = vperm.xlu0 %3278, %v175_v38   ;;  %448 = vperm.xlu1 %3279, %v174_v39   ;;  %v1455_v38 = vld [vmem:[%s4898_s4 + $0x18] sm:$0xff] }
  0x85   :  { %3152 = vmatmul.mubr.msk.f32.gmra.mxu0 %vm506_vm0, %v85_v40 }
  0x86   :  { %3154 = vmatprep.mubr.msk.f32.mxu0 %vm506_vm0, %v86_v41  ;;  %v115_v41 = vld [vmem:[%s4895_s1 + $0x1c8] sm:$0xff] }
  0x88   :  { %443 = vperm.xlu0 %3278, %v173_v42   ;;  %438 = vperm.xlu1 %3279, %v172_v43   ;;  %v116_v42 = vld [vmem:[%s4895_s1 + $0x1d0] sm:$0xff] }
  0x89   :  { %3155 = vmatmul.mubr.msk.f32.gmra.mxu0 %vm506_vm0, %v87_v44  ;;  %v1470_v43 = vld [vmem:[%s4898_s4 + $0x90] sm:$0xff] }
  0x8a   :  { %3157 = vmatprep.mubr.msk.f32.mxu0 %vm506_vm0, %v88_v45  ;;  %v1454_v44 = vld [vmem:[%s4898_s4 + $0x10] sm:$0xff]  ;;  %v117_v45 = vld [vmem:[%s4895_s1 + $0x1d8] sm:$0xff] }
  0x8b   :  { %v3931_v31 = vpop.permute.xlu0 %263  ;;  %v3933_v32 = vpop.permute.xlu1 %253 }
  0x8c   :  { %433 = vperm.xlu0 %3278, %v171_v46   ;;  %428 = vperm.xlu1 %3279, %v170_v47   ;;  %v118_v46 = vld [vmem:[%s4895_s1 + $0x1e0] sm:$0xff] }
  0x8d   :  { %3158 = vmatmul.mubr.msk.f32.gmra.mxu0 %vm506_vm0, %v89_v48 }
  0x8e   :  { %3160 = vmatprep.mubr.msk.f32.mxu0 %vm506_vm0, %v90_v49  ;;  %v1469_v49 = vld [vmem:[%s4898_s4 + $0x88] sm:$0xff] }
  0x8f   :  { %v3956_v39 = vpop.permute.xlu0 %258  ;;  %v3958_v40 = vpop.permute.xlu1 %248 }
  0x90   :  { %1673 = vperm.xlu0 %3278, %v1483_v50   ;;  %1593 = vperm.xlu1 %3279, %v1467_v51   ;;  %v1453_v50 = vld [vmem:[%s4898_s4 + $0x8] sm:$0xff] }
  0x91   :  { %3161 = vmatmul.mubr.msk.f32.gmra.mxu0 %vm506_vm0, %v91_v52  ;;  %v119_v51 = vld [vmem:[%s4895_s1 + $0x1e8] sm:$0xff]  ;;  %v120_v52 = vld [vmem:[%s4895_s1 + $0x1f0] sm:$0xff] }
  0x92   :  { %3163 = vmatprep.mubr.msk.f32.mxu0 %vm506_vm0, %v92_v53  ;;  %v1468_v53 = vld [vmem:[%s4898_s4 + $0x80] sm:$0xff] }
  0x93   :  { %v3981_v47 = vpop.permute.xlu0 %243  ;;  %v3983_v48 = vpop.permute.xlu1 %238 }
  0x94   :  { %1668 = vperm.xlu0 %3278, %v1482_v54   ;;  %1588 = vperm.xlu1 %3279, %v1466_v55   ;;  %v1452_v54 = vld [vmem:[%s4898_s4] sm:$0xff] }
  0x95   :  { %3164 = vmatmul.mubr.msk.f32.gmra.mxu0 %vm506_vm0, %v93_v56 }
  0x96   :  { %3166 = vmatprep.mubr.msk.f32.mxu0 %vm506_vm0, %v94_v57  ;;  %v121_v57 = vld [vmem:[%s4895_s1 + $0x1f8] sm:$0xff] }
  0x97   :  { %v4006_v55 = vpop.permute.xlu0 %233  ;;  %v4008_v56 = vpop.permute.xlu1 %228 }
  0x98   :  { %1663 = vperm.xlu0 %3278, %v1481_v58   ;;  %1583 = vperm.xlu1 %3279, %v1465_v59   ;;  %v1515_v58 = vld [vmem:[%s4898_s4 + $0x1f8] sm:$0xff] }
  0x99   :  { %3167 = vmatmul.mubr.msk.f32.gmra.mxu0 %vm506_vm0, %v95_v60  ;;  %v1499_v59 = vld [vmem:[%s4898_s4 + $0x178] sm:$0xff] }
  0x9a   :  { %3169 = vmatprep.mubr.msk.f32.mxu0 %vm506_vm0, %v96_v61 }
  0x9b   :  { %v4021_v60 = vpop.permute.xlu0 %223  ;;  %v4023_v61 = vpop.permute.xlu1 %218 }
  0x9c   :  { %1658 = vperm.xlu0 %3278, %v1480_v62   ;;  %1578 = vperm.xlu1 %3279, %v1464_v63   ;;  %v1514_v62 = vld [vmem:[%s4898_s4 + $0x1f0] sm:$0xff] }
  0x9d   :  { %3170 = vmatmul.mubr.msk.f32.gmra.mxu0 %vm506_vm0, %v97_v0  ;;  %v1498_v63 = vld [vmem:[%s4898_s4 + $0x170] sm:$0xff]  ;;  %v1513_v0 = vld [vmem:[%s4898_s4 + $0x1e8] sm:$0xff] }
  0x9e   :  { %3172 = vmatprep.mubr.msk.f32.mxu0 %vm506_vm0, %v98_v1  ;;  %v1497_v1 = vld [vmem:[%s4898_s4 + $0x168] sm:$0xff] }
  0xa0   :  { %1653 = vperm.xlu0 %3278, %v1479_v2   ;;  %1573 = vperm.xlu1 %3279, %v1463_v3   ;;  %v4037_v2 = vpop.permute.xlu0 %213  ;;  %v4039_v3 = vpop.permute.xlu1 %208 }
  0xa1   :  { %3173 = vmatmul.mubr.msk.f32.gmra.mxu0 %vm506_vm0, %v99_v4  ;;  %v1512_v4 = vld [vmem:[%s4898_s4 + $0x1e0] sm:$0xff] }
  0xa2   :  { %3175 = vmatprep.mubr.msk.f32.mxu0 %vm506_vm0, %v100_v5  ;;  %v1496_v5 = vld [vmem:[%s4898_s4 + $0x160] sm:$0xff] }
  0xa4   :  { %1648 = vperm.xlu0 %3278, %v1478_v6   ;;  %1568 = vperm.xlu1 %3279, %v1462_v7   ;;  %v4047_v6 = vpop.permute.xlu0 %203  ;;  %v4049_v7 = vpop.permute.xlu1 %198 }
  0xa5   :  { %3176 = vmatmul.mubr.msk.f32.gmra.mxu0 %vm506_vm0, %v101_v8  ;;  %v1511_v8 = vld [vmem:[%s4898_s4 + $0x1d8] sm:$0xff] }
  0xa6   :  { %3178 = vmatprep.mubr.msk.f32.mxu0 %vm506_vm0, %v102_v9  ;;  %v1495_v9 = vld [vmem:[%s4898_s4 + $0x158] sm:$0xff] }
  0xa8   :  { %1643 = vperm.xlu0 %3278, %v1477_v10   ;;  %1563 = vperm.xlu1 %3279, %v1461_v11   ;;  %v1510_v10 = vld [vmem:[%s4898_s4 + $0x1d0] sm:$0xff] }
  0xa9   :  { %3179 = vmatmul.mubr.msk.f32.gmra.mxu0 %vm506_vm0, %v103_v12  ;;  %v1494_v11 = vld [vmem:[%s4898_s4 + $0x150] sm:$0xff]  ;;  %v4063_v12 = vpop.permute.xlu0 %193 }
  0xaa   :  { %3181 = vmatprep.mubr.msk.f32.mxu0 %vm506_vm0, %v104_v13  ;;  %v4065_v13 = vpop.permute.xlu1 %188 }
  0xac   :  { %1638 = vperm.xlu0 %3278, %v1476_v14   ;;  %1558 = vperm.xlu1 %3279, %v1460_v15   ;;  %v1509_v14 = vld [vmem:[%s4898_s4 + $0x1c8] sm:$0xff] }
  0xad   :  { %3182 = vmatmul.mubr.msk.f32.gmra.mxu0 %vm506_vm0, %v105_v16  ;;  %v1493_v15 = vld [vmem:[%s4898_s4 + $0x148] sm:$0xff]  ;;  %v4073_v16 = vpop.permute.xlu0 %343 }
  0xae   :  { %3184 = vmatprep.mubr.msk.f32.mxu0 %vm506_vm0, %v106_v17  ;;  %v4075_v17 = vpop.permute.xlu1 %338 }
  0xb0   :  { %1633 = vperm.xlu0 %3278, %v1475_v18   ;;  %1553 = vperm.xlu1 %3279, %v1459_v19   ;;  %v1508_v18 = vld [vmem:[%s4898_s4 + $0x1c0] sm:$0xff] }
  0xb1   :  { %3185 = vmatmul.mubr.msk.f32.gmra.mxu0 %vm506_vm0, %v107_v20  ;;  %v1492_v19 = vld [vmem:[%s4898_s4 + $0x140] sm:$0xff]  ;;  %v1507_v20 = vld [vmem:[%s4898_s4 + $0x1b8] sm:$0xff] }
  0xb2   :  { %3187 = vmatprep.mubr.msk.f32.mxu0 %vm506_vm0, %v108_v21  ;;  %v1491_v21 = vld [vmem:[%s4898_s4 + $0x138] sm:$0xff] }
  0xb4   :  { %1628 = vperm.xlu0 %3278, %v1474_v22   ;;  %1548 = vperm.xlu1 %3279, %v1458_v23   ;;  %v4089_v22 = vpop.permute.xlu0 %333  ;;  %v4091_v23 = vpop.permute.xlu1 %328 }
  0xb5   :  { %3188 = vmatmul.mubr.msk.f32.gmra.mxu0 %vm506_vm0, %v109_v25  ;;  %v1197_v25 = vld [vmem:[#allocation3 + $0x8] sm:$0xff] }
  0xb6   :  { %3190 = vmatprep.mubr.msk.f32.mxu0 %vm506_vm0, %v110_v26  ;;  %v1506_v26 = vld [vmem:[%s4898_s4 + $0x1b0] sm:$0xff]  ;;  %1900 = vmatprep.mubr.f32.mxu1 %v1197_v25 }
  0xb8   :  { %1623 = vperm.xlu0 %3278, %v1473_v27   ;;  %1543 = vperm.xlu1 %3279, %v1457_v28   ;;  %v1490_v27 = vld [vmem:[%s4898_s4 + $0x130] sm:$0xff]  ;;  %v4099_v28 = vpop.permute.xlu0 %323 }
  0xb9   :  { %3191 = vmatmul.mubr.msk.f32.gmra.mxu0 %vm506_vm0, %v111_v29  ;;  %v4101_v29 = vpop.permute.xlu1 %318 }
  0xba   :  { %3193 = vmatprep.mubr.msk.f32.mxu0 %vm506_vm0, %v112_v30  ;;  %v1505_v30 = vld [vmem:[%s4898_s4 + $0x1a8] sm:$0xff] }
  0xbc   :  { %1618 = vperm.xlu0 %3278, %v1472_v33   ;;  %1538 = vperm.xlu1 %3279, %v1456_v34   ;;  %v1489_v33 = vld [vmem:[%s4898_s4 + $0x128] sm:$0xff]  ;;  %v1504_v34 = vld [vmem:[%s4898_s4 + $0x1a0] sm:$0xff] }
  0xbd   :  { %3194 = vmatmul.mubr.msk.f32.gmra.mxu0 %vm506_vm0, %v113_v35  ;;  %v1488_v35 = vld [vmem:[%s4898_s4 + $0x120] sm:$0xff] }
  0xbe   :  { %3196 = vmatprep.mubr.msk.f32.mxu0 %vm506_vm0, %v114_v36  ;;  %v4115_v36 = vpop.permute.xlu0 %313 }
  0xc0   :  { %1613 = vperm.xlu0 %3278, %v1471_v37   ;;  %1533 = vperm.xlu1 %3279, %v1455_v38   ;;  %v4117_v37 = vpop.permute.xlu1 %308  ;;  %v1503_v38 = vld [vmem:[%s4898_s4 + $0x198] sm:$0xff] }
  0xc1   :  { %3197 = vmatmul.mubr.msk.f32.gmra.mxu0 %vm506_vm0, %v115_v41  ;;  %v1487_v41 = vld [vmem:[%s4898_s4 + $0x118] sm:$0xff] }
  0xc2   :  { %3199 = vmatprep.mubr.msk.f32.mxu0 %vm506_vm0, %v116_v42  ;;  %v4125_v42 = vpop.permute.xlu0 %303 }
  0xc4   :  { %1608 = vperm.xlu0 %3278, %v1470_v43   ;;  %1528 = vperm.xlu1 %3279, %v1454_v44   ;;  %v4127_v43 = vpop.permute.xlu1 %298  ;;  %v1502_v44 = vld [vmem:[%s4898_s4 + $0x190] sm:$0xff] }
  0xc5   :  { %3200 = vmatmul.mubr.msk.f32.gmra.mxu0 %vm506_vm0, %v117_v45  ;;  %v1486_v45 = vld [vmem:[%s4898_s4 + $0x110] sm:$0xff] }
  0xc6   :  { %3202 = vmatprep.mubr.msk.f32.mxu0 %vm506_vm0, %v118_v46  ;;  %v1501_v46 = vld [vmem:[%s4898_s4 + $0x188] sm:$0xff] }
  0xc8   :  { %1603 = vperm.xlu0 %3278, %v1469_v49   ;;  %1523 = vperm.xlu1 %3279, %v1453_v50   ;;  %v1485_v49 = vld [vmem:[%s4898_s4 + $0x108] sm:$0xff]  ;;  %v4141_v50 = vpop.permute.xlu0 %293 }
  0xc9   :  { %3203 = vmatmul.mubr.msk.f32.gmra.mxu0 %vm506_vm0, %v119_v51  ;;  %v4143_v51 = vpop.permute.xlu1 %288 }
  0xca   :  { %3205 = vmatprep.mubr.msk.f32.mxu0 %vm506_vm0, %v120_v52  ;;  %v1500_v52 = vld [vmem:[%s4898_s4 + $0x180] sm:$0xff] }
  0xcc   :  { %1598 = vperm.xlu0 %3278, %v1468_v53   ;;  %1518 = vperm.xlu1 %3279, %v1452_v54   ;;  %v1484_v53 = vld [vmem:[%s4898_s4 + $0x100] sm:$0xff]  ;;  %v4151_v54 = vpop.permute.xlu0 %283 }
  0xcd   :  { %3206 = vmatmul.mubr.msk.f32.gmra.mxu0 %vm506_vm0, %v121_v57  ;;  %v4153_v57 = vpop.permute.xlu1 %278 }
  0xd0   :  { %1833 = vperm.xlu0 %3278, %v1515_v58   ;;  %1753 = vperm.xlu1 %3279, %v1499_v59  }
  0xd4   :  { %1828 = vperm.xlu0 %3278, %v1514_v62   ;;  %1748 = vperm.xlu1 %3279, %v1498_v63  }
  0xd8   :  { %1823 = vperm.xlu0 %3278, %v1513_v0   ;;  %1743 = vperm.xlu1 %3279, %v1497_v1  }
  0xdc   :  { %1818 = vperm.xlu0 %3278, %v1512_v4   ;;  %1738 = vperm.xlu1 %3279, %v1496_v5  }
  0xe0   :  { %1813 = vperm.xlu0 %3278, %v1511_v8   ;;  %1733 = vperm.xlu1 %3279, %v1495_v9  }
  0xe4   :  { %1808 = vperm.xlu0 %3278, %v1510_v10   ;;  %1728 = vperm.xlu1 %3279, %v1494_v11  }
  0xe8   :  { %1803 = vperm.xlu0 %3278, %v1509_v14   ;;  %1723 = vperm.xlu1 %3279, %v1493_v15  }
  0xec   :  { %1798 = vperm.xlu0 %3278, %v1508_v18   ;;  %1718 = vperm.xlu1 %3279, %v1492_v19  }
  0xf0   :  { %1793 = vperm.xlu0 %3278, %v1507_v20   ;;  %1713 = vperm.xlu1 %3279, %v1491_v21  }
  0xf4   :  { %1788 = vperm.xlu0 %3278, %v1506_v26   ;;  %1708 = vperm.xlu1 %3279, %v1490_v27  }
  0xf8   :  { %1783 = vperm.xlu0 %3278, %v1505_v30   ;;  %1703 = vperm.xlu1 %3279, %v1489_v33  }
  0xfc   :  { %1778 = vperm.xlu0 %3278, %v1504_v34   ;;  %1698 = vperm.xlu1 %3279, %v1488_v35  }
 0x100   :  { %1773 = vperm.xlu0 %3278, %v1503_v38   ;;  %1693 = vperm.xlu1 %3279, %v1487_v41  }
 0x104   :  { %1768 = vperm.xlu0 %3278, %v1502_v44   ;;  %1688 = vperm.xlu1 %3279, %v1486_v45  }
 0x108   :  { %1763 = vperm.xlu0 %3278, %v1501_v46   ;;  %1683 = vperm.xlu1 %3279, %v1485_v49  }
 0x10c   :  { %1758 = vperm.xlu0 %3278, %v1500_v52   ;;  %1678 = vperm.xlu1 %3279, %v1484_v53  }
 0x111   :  { %v4155_v58 = vpop.f32.mrf.mxu0 }
 0x113   :  { %v4157_v59 = vpop.f32.mrf.mxu0 }
 0x115   :  { %v4159_v62 = vpop.f32.mrf.mxu0 }
 0x117   :  { %v4161_v63 = vpop.f32.mrf.mxu0 }
 0x119   :  { %v3120_v0 = vpop.f32.mrf.mxu0 }
 0x11b   :  { %v833_v1 = vpop.f32.mrf.mxu0 }
 0x11d   :  { %v3123_v4 = vpop.f32.mrf.mxu0 }
 0x11f   :  { %v843_v5 = vpop.f32.mrf.mxu0 }
 0x121   :  { %v3126_v8 = vpop.f32.mrf.mxu0 }
 0x123   :  { %v853_v9 = vpop.f32.mrf.mxu0 }
 0x125   :  { %v3129_v10 = vpop.f32.mrf.mxu0 }
 0x126   :  { %v869_v35 = vadd.f32 %v3129_v10, %v3981_v47  ;;  %v854_v47 = vadd.f32 %v853_v9, %v4008_v56  ;;  %v1199_v56 = vld [vmem:[#allocation3 + $0x18] sm:$0xff]  ;;  %v839_v9 = vadd.f32 %v3120_v0, %v4037_v2  ;;  %v824_v2 = vadd.f32 %v4161_v63, %v4049_v7 }
 0x127   :  { %v863_v11 = vpop.f32.mrf.mxu0  ;;  %2285 = vmatprep.mubr.f32.mxu0 %v1199_v56 }
 0x128   :  { %v1143_v44 = vmax.f32 %v869_v35, 0.0 }
 0x129   :  { %v3132_v14 = vpop.f32.mrf.mxu0 }
 0x12a   :  { %v879_v21 = vadd.f32 %v3132_v14, %v3933_v32  ;;  %v864_v32 = vadd.f32 %v863_v11, %v3983_v48  ;;  %v849_v48 = vadd.f32 %v3123_v4, %v4021_v60  ;;  %v834_v4 = vadd.f32 %v833_v1, %v4039_v3 }
 0x12b   :  { %v873_v15 = vpop.f32.mrf.mxu0  ;;  %v819_v3 = vadd.f32 %v4155_v58, %v4063_v12 }
 0x12c   :  { %v874_v30 = vadd.f32 %v873_v15, %v3958_v40  ;;  %v1145_v38 = vmax.f32 %v879_v21, 0.0  ;;  %v859_v40 = vadd.f32 %v3126_v8, %v4006_v55  ;;  %v1142_v46 = vmax.f32 %v864_v32, 0.0 }
 0x12d   :  { %v3135_v18 = vpop.f32.mrf.mxu0  ;;  %v844_v55 = vadd.f32 %v843_v5, %v4023_v61  ;;  %v1140_v8 = vmax.f32 %v854_v47, 0.0  ;;  %v1139_v11 = vmax.f32 %v849_v48, 0.0  ;;  %v829_v5 = vadd.f32 %v4159_v62, %v4047_v6 }
 0x12e   :  { %v889_v19 = vadd.f32 %v3135_v18, %v3931_v31  ;;  %v1141_v52 = vmax.f32 %v859_v40, 0.0  ;;  %v1137_v15 = vmax.f32 %v839_v9, 0.0  ;;  %v1136_v0 = vmax.f32 %v834_v4, 0.0 }
 0x12f   :  { %v883_v20 = vpop.f32.mrf.mxu0  ;;  %v1138_v14 = vmax.f32 %v844_v55, 0.0  ;;  %v1135_v1 = vmax.f32 %v829_v5, 0.0  ;;  %v814_v6 = vadd.f32 %v4157_v59, %v4065_v13  ;;  %v1134_v62 = vmax.f32 %v824_v2, 0.0 }
 0x130   :  { %v1147_v25 = vmax.f32 %v889_v19, 0.0  ;;  %v884_v26 = vadd.f32 %v883_v20, %v3956_v39  ;;  %v1144_v39 = vmax.f32 %v874_v30, 0.0  ;;  %v1133_v7 = vmax.f32 %v819_v3, 0.0 }
 0x131   :  { %v4166_v27 = vpop.f32.mrf.mxu0 }
 0x132   :  { %v1146_v33 = vmax.f32 %v884_v26, 0.0  ;;  %1837 = vmatpush1.msra.mxu1 %v1147_v25  ;;  %v1132_v25 = vmax.f32 %v814_v6, 0.0 }
 0x133   :  { %v4169_v34 = vpop.f32.mrf.mxu0  ;;  %1838 = vmatprep.subr.mxu1 %v3328_v24 }
 0x134   :  { %1839 = vmatpush1.msra.mxu1 %v1146_v33 }
 0x135   :  { %v4173_v31 = vpop.f32.mrf.mxu0  ;;  %1840 = vmatprep.subr.mxu1 %v3328_v24 }
 0x136   :  { %1841 = vmatpush1.msra.mxu1 %v1145_v38 }
 0x137   :  { %v4177_v41 = vpop.f32.mrf.mxu0  ;;  %1842 = vmatprep.subr.mxu1 %v3328_v24 }
 0x138   :  { %1843 = vmatpush1.msra.mxu1 %v1144_v39 }
 0x139   :  { %v4181_v45 = vpop.f32.mrf.mxu0  ;;  %1844 = vmatprep.subr.mxu1 %v3328_v24 }
 0x13a   :  { %1845 = vmatpush1.msra.mxu1 %v1143_v44  ;;  %v269_v44 = vpop.permute.xlu1 %268  ;;  %v919_v4 = vadd.f32 %v4181_v45, %v4141_v50  ;;  %v909_v50 = vadd.f32 %v4173_v31, %v4151_v54 }
 0x13b   :  { %v4185_v49 = vpop.f32.mrf.mxu0  ;;  %1846 = vmatprep.subr.mxu1 %v3328_v24  ;;  %v894_v31 = vadd.f32 %v4169_v34, %v269_v44  ;;  %v1205_v44 = vld [vmem:[#allocation3 + $0x48] sm:$0xff] }
 0x13c   :  { %1847 = vmatpush1.msra.mxu1 %v1142_v46  ;;  %v1153_v45 = vmax.f32 %v919_v4, 0.0 }
 0x13d   :  { %v4189_v53 = vpop.f32.mrf.mxu0  ;;  %1848 = vmatprep.subr.mxu1 %v3328_v24 }
 0x13e   :  { %1849 = vmatpush1.msra.mxu1 %v1141_v52  ;;  %v419_v9 = vpop.permute.xlu1 %418 }
 0x13f   :  { %v4193_v10 = vpop.f32.mrf.mxu0  ;;  %1850 = vmatprep.subr.mxu1 %v3328_v24 }
 0x140   :  { %1851 = vmatpush1.msra.mxu1 %v1140_v8  ;;  %v929_v8 = vadd.f32 %v4189_v53, %v4125_v42 }
 0x141   :  { %v3150_v60 = vpop.f32.mrf.mxu0  ;;  %1852 = vmatprep.subr.mxu1 %v3328_v24 }
 0x142   :  { %1853 = vmatpush1.msra.mxu1 %v1139_v11  ;;  %v939_v47 = vadd.f32 %v3150_v60, %v4115_v36  ;;  %v1155_v42 = vmax.f32 %v929_v8, 0.0  ;;  %v409_v5 = vpop.permute.xlu1 %408 }
 0x143   :  { %v933_v61 = vpop.f32.mrf.mxu0  ;;  %1854 = vmatprep.subr.mxu1 %v3328_v24 }
 0x144   :  { %1855 = vmatpush1.msra.mxu1 %v1138_v14  ;;  %v934_v48 = vadd.f32 %v933_v61, %v4117_v37  ;;  %v1157_v56 = vmax.f32 %v939_v47, 0.0  ;;  %v924_v37 = vadd.f32 %v4193_v10, %v4127_v43  ;;  %v914_v61 = vadd.f32 %v4185_v49, %v4143_v51 }
 0x145   :  { %v3153_v18 = vpop.f32.mrf.mxu0  ;;  %1856 = vmatprep.subr.mxu1 %v3328_v24 }
 0x146   :  { %1857 = vmatpush1.msra.mxu1 %v1137_v15  ;;  %v1156_v11 = vmax.f32 %v934_v48, 0.0  ;;  %v1154_v43 = vmax.f32 %v924_v37, 0.0  ;;  %v1152_v2 = vmax.f32 %v914_v61, 0.0  ;;  %v399_v54 = vpop.permute.xlu1 %398 }
 0x147   :  { %v943_v19 = vpop.f32.mrf.mxu0  ;;  %1858 = vmatprep.subr.mxu1 %v3328_v24 }
 0x148   :  { %1859 = vmatpush1.msra.mxu1 %v1136_v0  ;;  %v944_v39 = vadd.f32 %v943_v19, %v4101_v29  ;;  %v1151_v19 = vmax.f32 %v909_v50, 0.0 }
 0x149   :  { %v3156_v20 = vpop.f32.mrf.mxu0  ;;  %1860 = vmatprep.subr.mxu1 %v3328_v24 }
 0x14a   :  { %1861 = vmatpush1.msra.mxu1 %v1135_v1  ;;  %v959_v26 = vadd.f32 %v3156_v20, %v4089_v22  ;;  %v1158_v52 = vmax.f32 %v944_v39, 0.0 }
 0x14b   :  { %v953_v21 = vpop.f32.mrf.mxu0  ;;  %1862 = vmatprep.subr.mxu1 %v3328_v24 }
 0x14c   :  { %1863 = vmatpush1.msra.mxu1 %v1134_v62  ;;  %v954_v33 = vadd.f32 %v953_v21, %v4091_v23  ;;  %v1161_v32 = vmax.f32 %v959_v26, 0.0  ;;  %v1196_v21 = vld [vmem:[#allocation3] sm:$0xff]  ;;  %v1201_v26 = vld [vmem:[#allocation3 + $0x28] sm:$0xff] }
 0x14d   :  { %v3159_v63 = vpop.f32.mrf.mxu0  ;;  %1864 = vmatprep.subr.mxu1 %v3328_v24 }
 0x14e   :  { %v969_v12 = vadd.f32 %v3159_v63, %v4073_v16  ;;  %1865 = vmatpush1.msra.mxu1 %v1133_v7  ;;  %v949_v16 = vadd.f32 %v3153_v18, %v4099_v28  ;;  %v1160_v40 = vmax.f32 %v954_v33, 0.0  ;;  %v904_v18 = vadd.f32 %v4177_v41, %v4153_v57  ;;  %v389_v63 = vpop.permute.xlu1 %388 }
 0x14f   :  { %v963_v58 = vpop.f32.mrf.mxu0  ;;  %1866 = vmatprep.subr.mxu1 %v3328_v24 }
 0x150   :  { %v1163_v13 = vmax.f32 %v969_v12, 0.0  ;;  %v964_v59 = vadd.f32 %v963_v58, %v4075_v17  ;;  %1867 = vmatpush1.msra.mxu1 %v1132_v25  ;;  %v274_v17 = vpop.permute.xlu0 %273  ;;  %v1159_v46 = vmax.f32 %v949_v16, 0.0  ;;  %v1150_v1 = vmax.f32 %v904_v18, 0.0 }
 0x151   :  { %v4217_v30 = vpop.f32.mrf.mxu0  ;;  %1868 = vmatprep.subr.mxu1 %v3328_v24  ;;  %v899_v0 = vadd.f32 %v4166_v27, %v274_v17  ;;  %v1148_v27 = vmax.f32 %v894_v31, 0.0 }
 0x152   :  { %v1162_v35 = vmax.f32 %v964_v59, 0.0  ;;  %1869 = vmatpush2.msra.mxu1 %v1163_v13  ;;  %v379_v39 = vpop.permute.xlu1 %378 }
 0x153   :  { %v4221_v38 = vpop.f32.mrf.mxu0  ;;  %1870 = vmatprep.subr.mxu1 %v3328_v24  ;;  %v1149_v57 = vmax.f32 %v899_v0, 0.0 }
 0x154   :  { %1871 = vmatpush2.msra.mxu1 %v1162_v35  ;;  %v424_v55 = vpop.permute.xlu0 %423  ;;  %v1200_v35 = vld [vmem:[#allocation3 + $0x20] sm:$0xff] }
 0x155   :  { %v4225_v22 = vpop.f32.mrf.mxu0  ;;  %1872 = vmatprep.subr.mxu1 %v3328_v24 }
 0x156   :  { %1873 = vmatpush2.msra.mxu1 %v1161_v32  ;;  %v369_v4 = vpop.permute.xlu1 %368 }
 0x157   :  { %v4229_v23 = vpop.f32.mrf.mxu0  ;;  %1874 = vmatprep.subr.mxu1 %v3328_v24 }
 0x158   :  { %1875 = vmatpush2.msra.mxu1 %v1160_v40  ;;  %v414_v14 = vpop.permute.xlu0 %413 }
 0x159   :  { %v4233_v28 = vpop.f32.mrf.mxu0  ;;  %1876 = vmatprep.subr.mxu1 %v3328_v24 }
 0x15a   :  { %1877 = vmatpush2.msra.mxu1 %v1159_v46 }
 0x15b   :  { %v4237_v29 = vpop.f32.mrf.mxu0  ;;  %1878 = vmatprep.subr.mxu1 %v3328_v24 }
 0x15c   :  { %1879 = vmatpush2.msra.mxu1 %v1158_v52  ;;  %v404_v49 = vpop.permute.xlu0 %403  ;;  %v1204_v52 = vld [vmem:[#allocation3 + $0x40] sm:$0xff] }
 0x15d   :  { %v4242_v36 = vpop.f32.mrf.mxu0  ;;  %1880 = vmatprep.subr.mxu1 %v3328_v24 }
 0x15e   :  { %1881 = vmatpush2.msra.mxu1 %v1157_v56 }
 0x15f   :  { %v4247_v60 = vpop.f32.mrf.mxu0  ;;  %1882 = vmatprep.subr.mxu1 %v3328_v24 }
 0x160   :  { %1883 = vmatpush2.msra.mxu1 %v1156_v11  ;;  %v394_v6 = vpop.permute.xlu0 %393  ;;  %v1209_v11 = vld [vmem:[#allocation3 + $0x68] sm:$0xff] }
 0x161   :  { %v4252_v53 = vpop.f32.mrf.mxu0  ;;  %1884 = vmatprep.subr.mxu1 %v3328_v24 }
 0x162   :  { %1885 = vmatpush2.msra.mxu1 %v1155_v42 }
 0x163   :  { %v4257_v10 = vpop.f32.mrf.mxu0  ;;  %1886 = vmatprep.subr.mxu1 %v3328_v24 }
 0x164   :  { %1887 = vmatpush2.msra.mxu1 %v1154_v43  ;;  %v384_v16 = vpop.permute.xlu0 %383  ;;  %v1208_v43 = vld [vmem:[#allocation3 + $0x60] sm:$0xff] }
 0x165   :  { %v3177_v15 = vpop.f32.mrf.mxu0  ;;  %1888 = vmatprep.subr.mxu1 %v3328_v24 }
 0x166   :  { %1889 = vmatpush2.msra.mxu1 %v1153_v45  ;;  %v1029_v40 = vadd.f32 %v3177_v15, %v404_v49  ;;  %v1009_v45 = vadd.f32 %v4242_v36, %v384_v16  ;;  %v1212_v49 = vld [vmem:[#allocation3 + $0x80] sm:$0xff] }
 0x167   :  { %v1023_v51 = vpop.f32.mrf.mxu0  ;;  %1890 = vmatprep.subr.mxu1 %v3328_v24 }
 0x168   :  { %1891 = vmatpush2.msra.mxu1 %v1152_v2  ;;  %v1024_v48 = vadd.f32 %v1023_v51, %v399_v54  ;;  %v374_v8 = vpop.permute.xlu0 %373  ;;  %v1175_v56 = vmax.f32 %v1029_v40, 0.0  ;;  %v359_v2 = vpop.permute.xlu1 %358  ;;  %v1004_v51 = vadd.f32 %v4247_v60, %v379_v39  ;;  %v1171_v0 = vmax.f32 %v1009_v45, 0.0  ;;  %v1237_v45 = vld [vmem:[#allocation3 + $0x148] sm:$0xff] }
 0x169   :  { %v3180_v3 = vpop.f32.mrf.mxu0  ;;  %1892 = vmatprep.subr.mxu1 %v3328_v24 }
 0x16a   :  { %1893 = vmatpush2.msra.mxu1 %v1151_v19  ;;  %v1039_v12 = vadd.f32 %v3180_v3, %v414_v14  ;;  %v1174_v42 = vmax.f32 %v1024_v48, 0.0  ;;  %v1014_v14 = vadd.f32 %v4257_v10, %v389_v63  ;;  %v1213_v10 = vld [vmem:[#allocation3 + $0x88] sm:$0xff]  ;;  %v999_v19 = vadd.f32 %v4233_v28, %v374_v8 }
 0x16b   :  { %v1033_v20 = vpop.f32.mrf.mxu0  ;;  %1894 = vmatprep.subr.mxu1 %v3328_v24  ;;  %v1217_v3 = vld [vmem:[#allocation3 + $0xa8] sm:$0xff]  ;;  %v1170_v31 = vmax.f32 %v1004_v51, 0.0  ;;  %v984_v63 = vadd.f32 %v4229_v23, %v359_v2  ;;  %v1236_v51 = vld [vmem:[#allocation3 + $0x140] sm:$0xff] }
 0x16c   :  { %1895 = vmatpush2.msra.mxu1 %v1150_v1  ;;  %v1034_v59 = vadd.f32 %v1033_v20, %v409_v5  ;;  %v1177_v32 = vmax.f32 %v1039_v12, 0.0  ;;  %v364_v50 = vpop.permute.xlu0 %363  ;;  %v1172_v15 = vmax.f32 %v1014_v14, 0.0  ;;  %v994_v1 = vadd.f32 %v4237_v29, %v369_v4  ;;  %v1216_v20 = vld [vmem:[#allocation3 + $0xa0] sm:$0xff]  ;;  %v349_v28 = vpop.permute.xlu1 %348  ;;  %v1221_v29 = vld [vmem:[#allocation3 + $0xc8] sm:$0xff] }
 0x16d   :  { %v3183_v41 = vpop.f32.mrf.mxu0  ;;  %1896 = vmatprep.subr.mxu1 %v3328_v24  ;;  %v1166_v23 = vmax.f32 %v984_v63, 0.0  ;;  %v1232_v14 = vld [vmem:[#allocation3 + $0x120] sm:$0xff] }
 0x16e   :  { %v1049_v62 = vadd.f32 %v3183_v41, %v424_v55  ;;  %1897 = vmatpush2.msra.mxu1 %v1149_v57  ;;  %v1176_v47 = vmax.f32 %v1034_v59, 0.0  ;;  %v1169_v41 = vmax.f32 %v999_v19, 0.0  ;;  %v974_v59 = vadd.f32 %v4221_v38, %v349_v28  ;;  %v1229_v38 = vld [vmem:[#allocation3 + $0x108] sm:$0xff] }
 0x16f   :  { %v1043_v7 = vpop.f32.mrf.mxu0  ;;  %1898 = vmatprep.subr.mxu1 %v3328_v24  ;;  %v1241_v19 = vld [vmem:[#allocation3 + $0x168] sm:$0xff] }
 0x170   :  { %v1179_v34 = vmax.f32 %v1049_v62, 0.0  ;;  %v1044_v25 = vadd.f32 %v1043_v7, %v419_v9  ;;  %1899 = vmatpush2.msra.mxu1 %v1148_v27  ;;  %v1019_v9 = vadd.f32 %v4252_v53, %v394_v6  ;;  %v354_v54 = vpop.permute.xlu0 %353  ;;  %v989_v27 = vadd.f32 %v4225_v22, %v364_v50  ;;  %v499_v22 = vpop.permute.xlu1 %498 }
 0x171   :  { %v4272_v58 = vpop.f32.mrf.mxu0  ;;  %1901 = vmatmul.mubr.f32.vlgmr.msra.gmra.mxu1 %v1196_v21  ;;  %3208 = vmatprep.subr.mxu1 %v3328_v24  ;;  %v1168_v62 = vmax.f32 %v994_v1, 0.0 }
 0x172   :  { %v1178_v13 = vmax.f32 %v1044_v25, 0.0  ;;  %2222 = vmatpush1.msra.mxu0 %v1179_v34  ;;  %3240 = vmatpush1.msra.mxu1 %v1179_v34  ;;  %v1173_v53 = vmax.f32 %v1019_v9, 0.0  ;;  %v1220_v34 = vld [vmem:[#allocation3 + $0xc0] sm:$0xff]  ;;  %v1167_v12 = vmax.f32 %v989_v27, 0.0 }
 0x173   :  { %v4275_v33 = vpop.f32.mrf.mxu0  ;;  %2223 = vmatprep.subr.mxu0 %v3328_v24  ;;  %3209 = vmatprep.subr.mxu1 %v3328_v24 }
 0x174   :  { %1905 = vmatprep.mubr.f32.mxu1 %v1201_v26  ;;  %2224 = vmatpush1.msra.mxu0 %v1178_v13  ;;  %v504_v7 = vpop.permute.xlu0 %503  ;;  %v979_v26 = vadd.f32 %v4217_v30, %v354_v54  ;;  %v489_v40 = vpop.permute.xlu1 %488 }
 0x175   :  { %3241 = vmatpush1.msra.mxu1 %v1178_v13  ;;  %v4279_v17 = vpop.f32.mrf.mxu0  ;;  %2225 = vmatprep.subr.mxu0 %v3328_v24  ;;  %v1225_v13 = vld [vmem:[#allocation3 + $0xe8] sm:$0xff] }
 0x176   :  { %1906 = vmatmul.mubr.f32.gmra.mxu1 %v1200_v35  ;;  %3210 = vmatprep.subr.mxu1 %v3328_v24  ;;  %v1224_v35 = vld [vmem:[#allocation3 + $0xe0] sm:$0xff]  ;;  %v1165_v30 = vmax.f32 %v979_v26, 0.0 }
 0x177   :  { %2226 = vmatpush1.msra.mxu0 %v1177_v32  ;;  %3242 = vmatpush1.msra.mxu1 %v1177_v32  ;;  %v4283_v46 = vpop.f32.mrf.mxu0  ;;  %v1252_v26 = vld [vmem:[#allocation3 + $0x1c0] sm:$0xff] }
 0x178   :  { %2227 = vmatprep.subr.mxu0 %v3328_v24  ;;  %3211 = vmatprep.subr.mxu1 %v3328_v24  ;;  %v494_v32 = vpop.permute.xlu0 %493  ;;  %v479_v4 = vpop.permute.xlu1 %478 }
 0x179   :  { %1910 = vmatprep.mubr.f32.mxu1 %v1205_v44  ;;  %2228 = vmatpush1.msra.mxu0 %v1176_v47  ;;  %v4287_v55 = vpop.f32.mrf.mxu0 }
 0x17a   :  { %3243 = vmatpush1.msra.mxu1 %v1176_v47  ;;  %2229 = vmatprep.subr.mxu0 %v3328_v24  ;;  %v1164_v47 = vmax.f32 %v974_v59, 0.0  ;;  %v1257_v59 = vld [vmem:[#allocation3 + $0x1e8] sm:$0xff] }
 0x17b   :  { %1911 = vmatmul.mubr.f32.gmra.mxu1 %v1204_v52  ;;  %3212 = vmatprep.subr.mxu1 %v3328_v24  ;;  %v4292_v37 = vpop.f32.mrf.mxu0  ;;  %v1228_v52 = vld [vmem:[#allocation3 + $0x100] sm:$0xff] }
 0x17c   :  { %2230 = vmatpush1.msra.mxu0 %v1175_v56  ;;  %3244 = vmatpush1.msra.mxu1 %v1175_v56  ;;  %v484_v8 = vpop.permute.xlu0 %483 }
 0x17d   :  { %2231 = vmatprep.subr.mxu0 %v3328_v24  ;;  %3213 = vmatprep.subr.mxu1 %v3328_v24  ;;  %v4297_v61 = vpop.f32.mrf.mxu0 }
 0x17e   :  { %1915 = vmatprep.mubr.f32.mxu1 %v1209_v11  ;;  %2232 = vmatpush1.msra.mxu0 %v1174_v42  ;;  %v1233_v11 = vld [vmem:[#allocation3 + $0x128] sm:$0xff] }
 0x17f   :  { %3245 = vmatpush1.msra.mxu1 %v1174_v42  ;;  %2233 = vmatprep.subr.mxu0 %v3328_v24  ;;  %v4300_v5 = vpop.f32.mrf.mxu0 }
 0x180   :  { %1916 = vmatmul.mubr.f32.gmra.mxu1 %v1208_v43  ;;  %3214 = vmatprep.subr.mxu1 %v3328_v24 }
 0x181   :  { %2234 = vmatpush1.msra.mxu0 %v1173_v53  ;;  %3246 = vmatpush1.msra.mxu1 %v1173_v53  ;;  %v4304_v18 = vpop.f32.mrf.mxu0  ;;  %v474_v53 = vpop.permute.xlu0 %473 }
 0x182   :  { %2235 = vmatprep.subr.mxu0 %v3328_v24  ;;  %3215 = vmatprep.subr.mxu1 %v3328_v24 }
 0x183   :  { %1920 = vmatprep.mubr.f32.mxu1 %v1213_v10  ;;  %2236 = vmatpush1.msra.mxu0 %v1172_v15  ;;  %v4309_v36 = vpop.f32.mrf.mxu0 }
 0x184   :  { %3247 = vmatpush1.msra.mxu1 %v1172_v15  ;;  %2237 = vmatprep.subr.mxu0 %v3328_v24  ;;  %v469_v15 = vpop.permute.xlu1 %468 }
 0x185   :  { %1921 = vmatmul.mubr.f32.gmra.mxu1 %v1212_v49  ;;  %3216 = vmatprep.subr.mxu1 %v3328_v24  ;;  %v4314_v60 = vpop.f32.mrf.mxu0  ;;  %v1094_v54 = vadd.f32 %v4309_v36, %v469_v15  ;;  %v1218_v15 = vld [vmem:[#allocation3 + $0xb0] sm:$0xff] }
 0x186   :  { %2238 = vmatpush1.msra.mxu0 %v1171_v0  ;;  %3248 = vmatpush1.msra.mxu1 %v1171_v0  ;;  %v1109_v50 = vadd.f32 %v4314_v60, %v484_v8  ;;  %v1099_v0 = vadd.f32 %v4304_v18, %v474_v53  ;;  %v1269_v8 = vld [vmem:[#allocation3 + $0x248] sm:$0xff]  ;;  %v1214_v53 = vld [vmem:[#allocation3 + $0x90] sm:$0xff] }
 0x187   :  { %2239 = vmatprep.subr.mxu0 %v3328_v24  ;;  %3217 = vmatprep.subr.mxu1 %v3328_v24  ;;  %v4319_v57 = vpop.f32.mrf.mxu0  ;;  %v1188_v28 = vmax.f32 %v1094_v54, 0.0  ;;  %v1226_v54 = vld [vmem:[#allocation3 + $0xf0] sm:$0xff] }
 0x188   :  { %1925 = vmatprep.mubr.f32.mxu1 %v1217_v3  ;;  %2240 = vmatpush1.msra.mxu0 %v1170_v31  ;;  %v1104_v2 = vadd.f32 %v4319_v57, %v479_v4  ;;  %v1191_v49 = vmax.f32 %v1109_v50, 0.0  ;;  %v464_v3 = vpop.permute.xlu0 %463  ;;  %v459_v1 = vpop.permute.xlu1 %458  ;;  %v1245_v57 = vld [vmem:[#allocation3 + $0x188] sm:$0xff]  ;;  %v1210_v4 = vld [vmem:[#allocation3 + $0x70] sm:$0xff]  ;;  %v1276_v50 = vld [vmem:[#allocation3 + $0x280] sm:$0xff] }
 0x189   :  { %3249 = vmatpush1.msra.mxu1 %v1170_v31  ;;  %2241 = vmatprep.subr.mxu0 %v3328_v24  ;;  %v3204_v6 = vpop.f32.mrf.mxu0  ;;  %v1240_v31 = vld [vmem:[#allocation3 + $0x160] sm:$0xff]  ;;  %v1089_v18 = vadd.f32 %v4297_v61, %v464_v3  ;;  %v1227_v3 = vld [vmem:[#allocation3 + $0xf8] sm:$0xff] }
 0x18a   :  { %1926 = vmatmul.mubr.f32.gmra.mxu1 %v1216_v20  ;;  %3218 = vmatprep.subr.mxu1 %v3328_v24  ;;  %v1119_v9 = vadd.f32 %v3204_v6, %v494_v32  ;;  %v1190_v60 = vmax.f32 %v1104_v2, 0.0  ;;  %v1189_v20 = vmax.f32 %v1099_v0, 0.0  ;;  %v1244_v6 = vld [vmem:[#allocation3 + $0x180] sm:$0xff]  ;;  %v1222_v0 = vld [vmem:[#allocation3 + $0xd0] sm:$0xff] }
 0x18b   :  { %2242 = vmatpush1.msra.mxu0 %v1169_v41  ;;  %3250 = vmatpush1.msra.mxu1 %v1169_v41  ;;  %v1113_v21 = vpop.f32.mrf.mxu0  ;;  %v1084_v41 = vadd.f32 %v4300_v5, %v459_v1  ;;  %v1256_v32 = vld [vmem:[#allocation3 + $0x1e0] sm:$0xff]  ;;  %v1231_v1 = vld [vmem:[#allocation3 + $0x118] sm:$0xff] }
 0x18c   :  { %2243 = vmatprep.subr.mxu0 %v3328_v24  ;;  %3219 = vmatprep.subr.mxu1 %v3328_v24  ;;  %v1114_v42 = vadd.f32 %v1113_v21, %v489_v40  ;;  %v1193_v43 = vmax.f32 %v1119_v9, 0.0  ;;  %v454_v36 = vpop.permute.xlu0 %453  ;;  %v449_v27 = vpop.permute.xlu1 %448  ;;  %v1198_v40 = vld [vmem:[#allocation3 + $0x10] sm:$0xff]  ;;  %v1211_v9 = vld [vmem:[#allocation3 + $0x78] sm:$0xff]  ;;  %v1280_v2 = vld [vmem:[#allocation3 + $0x2a0] sm:$0xff] }
 0x18d   :  { %1930 = vmatprep.mubr.f32.mxu1 %v1221_v29  ;;  %2244 = vmatpush1.msra.mxu0 %v1168_v62  ;;  %v3207_v25 = vpop.f32.mrf.mxu0  ;;  %v1187_v29 = vmax.f32 %v1089_v18, 0.0  ;;  %v1079_v61 = vadd.f32 %v4287_v55, %v454_v36  ;;  %v1186_v21 = vmax.f32 %v1084_v41, 0.0  ;;  %v1074_v5 = vadd.f32 %v4292_v37, %v449_v27  ;;  %v1230_v18 = vld [vmem:[#allocation3 + $0x110] sm:$0xff]  ;;  %v1297_v36 = vld [vmem:[#allocation3 + $0x328] sm:$0xff]  ;;  %v1239_v27 = vld [vmem:[#allocation3 + $0x158] sm:$0xff] }
 0x18e   :  { %3251 = vmatpush1.msra.mxu1 %v1168_v62  ;;  %2245 = vmatprep.subr.mxu0 %v3328_v24  ;;  %v1129_v39 = vadd.f32 %v3207_v25, %v504_v7  ;;  %v1192_v10 = vmax.f32 %v1114_v42, 0.0  ;;  %v1249_v62 = vld [vmem:[#allocation3 + $0x1a8] sm:$0xff]  ;;  %v1248_v7 = vld [vmem:[#allocation3 + $0x1a0] sm:$0xff]  ;;  %v1234_v41 = vld [vmem:[#allocation3 + $0x130] sm:$0xff] }
 0x18f   :  { %1931 = vmatmul.mubr.f32.gmra.mxu1 %v1220_v34  ;;  %3220 = vmatprep.subr.mxu1 %v3328_v24  ;;  %v1123_v16 = vpop.f32.mrf.mxu0  ;;  %v1185_v34 = vmax.f32 %v1079_v61, 0.0  ;;  %v1184_v37 = vmax.f32 %v1074_v5, 0.0  ;;  %v1272_v42 = vld [vmem:[#allocation3 + $0x260] sm:$0xff]  ;;  %v1238_v61 = vld [vmem:[#allocation3 + $0x150] sm:$0xff]  ;;  %v1305_v5 = vld [vmem:[#allocation3 + $0x368] sm:$0xff] }
 0x190   :  { %2246 = vmatpush1.msra.mxu0 %v1167_v12  ;;  %3252 = vmatpush1.msra.mxu1 %v1167_v12  ;;  %v1124_v44 = vadd.f32 %v1123_v16, %v499_v22  ;;  %v1195_v48 = vmax.f32 %v1129_v39, 0.0  ;;  %v444_v63 = vpop.permute.xlu0 %443  ;;  %v439_v55 = vpop.permute.xlu1 %438  ;;  %v1253_v22 = vld [vmem:[#allocation3 + $0x1c8] sm:$0xff] }
 0x191   :  { %2247 = vmatprep.subr.mxu0 %v3328_v24  ;;  %3221 = vmatprep.subr.mxu1 %v3328_v24  ;;  %v1069_v25 = vadd.f32 %v4279_v17, %v444_v63  ;;  %v1064_v12 = vadd.f32 %v4283_v46, %v439_v55  ;;  %v1304_v63 = vld [vmem:[#allocation3 + $0x360] sm:$0xff]  ;;  %v1309_v55 = vld [vmem:[#allocation3 + $0x388] sm:$0xff] }
 0x192   :  { %1935 = vmatprep.mubr.f32.mxu1 %v1225_v13  ;;  %2248 = vmatpush1.msra.mxu0 %v1166_v23  ;;  %v1194_v56 = vmax.f32 %v1124_v44, 0.0  ;;  %v1203_v44 = vld [vmem:[#allocation3 + $0x38] sm:$0xff] }
 0x193   :  { %3253 = vmatpush1.msra.mxu1 %v1166_v23  ;;  %2249 = vmatprep.subr.mxu0 %v3328_v24  ;;  %v1183_v23 = vmax.f32 %v1069_v25, 0.0  ;;  %v1182_v46 = vmax.f32 %v1064_v12, 0.0  ;;  %v1246_v25 = vld [vmem:[#allocation3 + $0x190] sm:$0xff]  ;;  %v1313_v12 = vld [vmem:[#allocation3 + $0x3a8] sm:$0xff] }
 0x194   :  { %1936 = vmatmul.mubr.f32.gmra.mxu1 %v1224_v35  ;;  %3222 = vmatprep.subr.mxu1 %v3328_v24  ;;  %v434_v13 = vpop.permute.xlu0 %433  ;;  %v429_v35 = vpop.permute.xlu1 %428 }
 0x195   :  { %2250 = vmatpush1.msra.mxu0 %v1165_v30  ;;  %3254 = vmatpush1.msra.mxu1 %v1165_v30  ;;  %v1059_v17 = vadd.f32 %v4272_v58, %v434_v13  ;;  %v1054_v16 = vadd.f32 %v4275_v33, %v429_v35  ;;  %v1261_v58 = vld [vmem:[#allocation3 + $0x208] sm:$0xff]  ;;  %v1260_v33 = vld [vmem:[#allocation3 + $0x200] sm:$0xff] }
 0x196   :  { %2251 = vmatprep.subr.mxu0 %v3328_v24  ;;  %3223 = vmatprep.subr.mxu1 %v3328_v24  ;;  %v1312_v13 = vld [vmem:[#allocation3 + $0x3a0] sm:$0xff] }
 0x197   :  { %1940 = vmatprep.mubr.f32.mxu1 %v1229_v38  ;;  %2252 = vmatpush1.msra.mxu0 %v1164_v47  ;;  %v1181_v39 = vmax.f32 %v1059_v17, 0.0  ;;  %v1180_v30 = vmax.f32 %v1054_v16, 0.0  ;;  %v1265_v38 = vld [vmem:[#allocation3 + $0x228] sm:$0xff]  ;;  %v1316_v35 = vld [vmem:[#allocation3 + $0x3c0] sm:$0xff] }
 0x198   :  { %3255 = vmatpush1.msra.mxu1 %v1164_v47  ;;  %2253 = vmatprep.subr.mxu0 %v3328_v24  ;;  %v1202_v47 = vld [vmem:[#allocation3 + $0x30] sm:$0xff]  ;;  %v1317_v17 = vld [vmem:[#allocation3 + $0x3c8] sm:$0xff] }
 0x199   :  { %1941 = vmatmul.mubr.f32.gmra.mxu1 %v1228_v52  ;;  %3224 = vmatprep.subr.mxu1 %v3328_v24  ;;  %v1207_v52 = vld [vmem:[#allocation3 + $0x58] sm:$0xff]  ;;  %v1321_v16 = vld [vmem:[#allocation3 + $0x3e8] sm:$0xff] }
 0x19a   :  { %2254 = vmatpush2.msra.mxu0 %v1195_v48  ;;  %3256 = vmatpush2.msra.mxu1 %v1195_v48  ;;  %v1264_v48 = vld [vmem:[#allocation3 + $0x220] sm:$0xff] }
 0x19b   :  { %2255 = vmatprep.subr.mxu0 %v3328_v24  ;;  %3225 = vmatprep.subr.mxu1 %v3328_v24 }
 0x19c   :  { %1945 = vmatprep.mubr.f32.mxu1 %v1233_v11  ;;  %2256 = vmatpush2.msra.mxu0 %v1194_v56  ;;  %v1273_v11 = vld [vmem:[#allocation3 + $0x268] sm:$0xff] }
 0x19d   :  { %3257 = vmatpush2.msra.mxu1 %v1194_v56  ;;  %2257 = vmatprep.subr.mxu0 %v3328_v24  ;;  %v1206_v56 = vld [vmem:[#allocation3 + $0x50] sm:$0xff] }
 0x19e   :  { %1946 = vmatmul.mubr.f32.gmra.mxu1 %v1232_v14  ;;  %3226 = vmatprep.subr.mxu1 %v3328_v24  ;;  %v1215_v14 = vld [vmem:[#allocation3 + $0x98] sm:$0xff] }
 0x19f   :  { %2258 = vmatpush2.msra.mxu0 %v1193_v43  ;;  %3258 = vmatpush2.msra.mxu1 %v1193_v43  ;;  %v1277_v43 = vld [vmem:[#allocation3 + $0x288] sm:$0xff] }
 0x1a0   :  { %2259 = vmatprep.subr.mxu0 %v3328_v24  ;;  %3227 = vmatprep.subr.mxu1 %v3328_v24 }
 0x1a1   :  { %1950 = vmatprep.mubr.f32.mxu1 %v1237_v45  ;;  %2260 = vmatpush2.msra.mxu0 %v1192_v10  ;;  %v1219_v45 = vld [vmem:[#allocation3 + $0xb8] sm:$0xff] }
 0x1a2   :  { %3259 = vmatpush2.msra.mxu1 %v1192_v10  ;;  %2261 = vmatprep.subr.mxu0 %v3328_v24  ;;  %v1281_v10 = vld [vmem:[#allocation3 + $0x2a8] sm:$0xff] }
 0x1a3   :  { %1951 = vmatmul.mubr.f32.gmra.mxu1 %v1236_v51  ;;  %3228 = vmatprep.subr.mxu1 %v3328_v24  ;;  %v1223_v51 = vld [vmem:[#allocation3 + $0xd8] sm:$0xff] }
 0x1a4   :  { %2262 = vmatpush2.msra.mxu0 %v1191_v49  ;;  %3260 = vmatpush2.msra.mxu1 %v1191_v49  ;;  %v1285_v49 = vld [vmem:[#allocation3 + $0x2c8] sm:$0xff] }
 0x1a5   :  { %2263 = vmatprep.subr.mxu0 %v3328_v24  ;;  %3229 = vmatprep.subr.mxu1 %v3328_v24 }
 0x1a6   :  { %1955 = vmatprep.mubr.f32.mxu1 %v1241_v19  ;;  %2264 = vmatpush2.msra.mxu0 %v1190_v60  ;;  %v1284_v19 = vld [vmem:[#allocation3 + $0x2c0] sm:$0xff] }
 0x1a7   :  { %3261 = vmatpush2.msra.mxu1 %v1190_v60  ;;  %2265 = vmatprep.subr.mxu0 %v3328_v24  ;;  %v1289_v60 = vld [vmem:[#allocation3 + $0x2e8] sm:$0xff] }
 0x1a8   :  { %1956 = vmatmul.mubr.f32.gmra.mxu1 %v1240_v31  ;;  %3230 = vmatprep.subr.mxu1 %v3328_v24  ;;  %v1288_v31 = vld [vmem:[#allocation3 + $0x2e0] sm:$0xff] }
 0x1a9   :  { %2266 = vmatpush2.msra.mxu0 %v1189_v20  ;;  %3262 = vmatpush2.msra.mxu1 %v1189_v20  ;;  %v1293_v20 = vld [vmem:[#allocation3 + $0x308] sm:$0xff] }
 0x1aa   :  { %2267 = vmatprep.subr.mxu0 %v3328_v24  ;;  %3231 = vmatprep.subr.mxu1 %v3328_v24 }
 0x1ab   :  { %1960 = vmatprep.mubr.f32.mxu1 %v1245_v57  ;;  %2268 = vmatpush2.msra.mxu0 %v1188_v28  ;;  %v1292_v57 = vld [vmem:[#allocation3 + $0x300] sm:$0xff] }
 0x1ac   :  { %3263 = vmatpush2.msra.mxu1 %v1188_v28  ;;  %2269 = vmatprep.subr.mxu0 %v3328_v24  ;;  %v1235_v28 = vld [vmem:[#allocation3 + $0x138] sm:$0xff] }
 0x1ad   :  { %1961 = vmatmul.mubr.f32.gmra.mxu1 %v1244_v6  ;;  %3232 = vmatprep.subr.mxu1 %v3328_v24  ;;  %v1296_v6 = vld [vmem:[#allocation3 + $0x320] sm:$0xff] }
 0x1ae   :  { %2270 = vmatpush2.msra.mxu0 %v1187_v29  ;;  %3264 = vmatpush2.msra.mxu1 %v1187_v29  ;;  %v1301_v29 = vld [vmem:[#allocation3 + $0x348] sm:$0xff] }
 0x1af   :  { %2271 = vmatprep.subr.mxu0 %v3328_v24  ;;  %3233 = vmatprep.subr.mxu1 %v3328_v24 }
 0x1b0   :  { %1965 = vmatprep.mubr.f32.mxu1 %v1249_v62  ;;  %2272 = vmatpush2.msra.mxu0 %v1186_v21  ;;  %v1300_v62 = vld [vmem:[#allocation3 + $0x340] sm:$0xff] }
 0x1b1   :  { %3265 = vmatpush2.msra.mxu1 %v1186_v21  ;;  %2273 = vmatprep.subr.mxu0 %v3328_v24  ;;  %v1243_v21 = vld [vmem:[#allocation3 + $0x178] sm:$0xff] }
 0x1b2   :  { %1966 = vmatmul.mubr.f32.gmra.mxu1 %v1248_v7  ;;  %3234 = vmatprep.subr.mxu1 %v3328_v24  ;;  %v1242_v7 = vld [vmem:[#allocation3 + $0x170] sm:$0xff] }
 0x1b3   :  { %2274 = vmatpush2.msra.mxu0 %v1185_v34  ;;  %3266 = vmatpush2.msra.mxu1 %v1185_v34  ;;  %v1247_v34 = vld [vmem:[#allocation3 + $0x198] sm:$0xff] }
 0x1b4   :  { %2275 = vmatprep.subr.mxu0 %v3328_v24  ;;  %3235 = vmatprep.subr.mxu1 %v3328_v24 }
 0x1b5   :  { %1970 = vmatprep.mubr.f32.mxu1 %v1253_v22  ;;  %2276 = vmatpush2.msra.mxu0 %v1184_v37  ;;  %v1308_v22 = vld [vmem:[#allocation3 + $0x380] sm:$0xff] }
 0x1b6   :  { %3267 = vmatpush2.msra.mxu1 %v1184_v37  ;;  %2277 = vmatprep.subr.mxu0 %v3328_v24  ;;  %v1251_v37 = vld [vmem:[#allocation3 + $0x1b8] sm:$0xff] }
 0x1b7   :  { %1971 = vmatmul.mubr.f32.gmra.mxu1 %v1252_v26  ;;  %3236 = vmatprep.subr.mxu1 %v3328_v24  ;;  %v1250_v26 = vld [vmem:[#allocation3 + $0x1b0] sm:$0xff] }
 0x1b8   :  { %2278 = vmatpush2.msra.mxu0 %v1183_v23  ;;  %3268 = vmatpush2.msra.mxu1 %v1183_v23  ;;  %v1255_v23 = vld [vmem:[#allocation3 + $0x1d8] sm:$0xff] }
 0x1b9   :  { %2279 = vmatprep.subr.mxu0 %v3328_v24  ;;  %3237 = vmatprep.subr.mxu1 %v3328_v24 }
 0x1ba   :  { %1975 = vmatprep.mubr.f32.mxu1 %v1257_v59  ;;  %2280 = vmatpush2.msra.mxu0 %v1182_v46  ;;  %v1254_v59 = vld [vmem:[#allocation3 + $0x1d0] sm:$0xff] }
 0x1bb   :  { %3269 = vmatpush2.msra.mxu1 %v1182_v46  ;;  %2281 = vmatprep.subr.mxu0 %v3328_v24  ;;  %v1259_v46 = vld [vmem:[#allocation3 + $0x1f8] sm:$0xff] }
 0x1bc   :  { %1976 = vmatmul.mubr.f32.gmra.mxu1 %v1256_v32  ;;  %3238 = vmatprep.subr.mxu1 %v3328_v24  ;;  %v1258_v32 = vld [vmem:[#allocation3 + $0x1f0] sm:$0xff] }
 0x1bd   :  { %2282 = vmatpush2.msra.mxu0 %v1181_v39  ;;  %3270 = vmatpush2.msra.mxu1 %v1181_v39  ;;  %v1320_v39 = vld [vmem:[#allocation3 + $0x3e0] sm:$0xff] }
 0x1be   :  { %2283 = vmatprep.subr.mxu0 %v3328_v24  ;;  %3239 = vmatprep.subr.mxu1 %v3328_v24  ;;  %v1268_v24 = vld [vmem:[#allocation3 + $0x240] sm:$0xff] }
 0x1bf   :  { %1980 = vmatprep.mubr.f32.mxu1 %v1261_v58  ;;  %2284 = vmatpush2.msra.mxu0 %v1180_v30  ;;  %v1263_v58 = vld [vmem:[#allocation3 + $0x218] sm:$0xff] }
 0x1c0   :  { %3271 = vmatpush2.msra.mxu1 %v1180_v30  ;;  %2286 = vmatmul.mubr.f32.vlgmr.msra.gmra.mxu0 %v1198_v40  ;;  %v1325_v30 = vld [vmem:[#allocation3 + $0x408] sm:$0xff]  ;;  %v1262_v40 = vld [vmem:[#allocation3 + $0x210] sm:$0xff] }
 0x1c1   :  { %1981 = vmatmul.mubr.f32.gmra.mxu1 %v1260_v33  ;;  %2290 = vmatprep.mubr.f32.mxu0 %v1203_v44  ;;  %v1324_v33 = vld [vmem:[#allocation3 + $0x400] sm:$0xff]  ;;  %v1267_v44 = vld [vmem:[#allocation3 + $0x238] sm:$0xff] }
 0x1c2   :  { %1985 = vmatprep.mubr.f32.mxu1 %v1265_v38  ;;  %v1329_v38 = vld [vmem:[#allocation3 + $0x428] sm:$0xff] }
 0x1c4   :  { %2291 = vmatmul.mubr.f32.gmra.mxu0 %v1202_v47  ;;  %v1266_v47 = vld [vmem:[#allocation3 + $0x230] sm:$0xff] }
 0x1c5   :  { %1986 = vmatmul.mubr.f32.gmra.mxu1 %v1264_v48  ;;  %2295 = vmatprep.mubr.f32.mxu0 %v1207_v52  ;;  %v1328_v48 = vld [vmem:[#allocation3 + $0x420] sm:$0xff]  ;;  %v1271_v52 = vld [vmem:[#allocation3 + $0x258] sm:$0xff] }
 0x1c6   :  { %1990 = vmatprep.mubr.f32.mxu1 %v1269_v8  ;;  %v1333_v8 = vld [vmem:[#allocation3 + $0x448] sm:$0xff] }
 0x1c8   :  { %2296 = vmatmul.mubr.f32.gmra.mxu0 %v1206_v56  ;;  %v1270_v56 = vld [vmem:[#allocation3 + $0x250] sm:$0xff] }
 0x1c9   :  { %1991 = vmatmul.mubr.f32.gmra.mxu1 %v1268_v24  ;;  %2300 = vmatprep.mubr.f32.mxu0 %v1211_v9  ;;  %v1332_v24 = vld [vmem:[#allocation3 + $0x440] sm:$0xff]  ;;  %v1275_v9 = vld [vmem:[#allocation3 + $0x278] sm:$0xff] }
 0x1ca   :  { %1995 = vmatprep.mubr.f32.mxu1 %v1273_v11  ;;  %v1337_v11 = vld [vmem:[#allocation3 + $0x468] sm:$0xff] }
 0x1cc   :  { %2301 = vmatmul.mubr.f32.gmra.mxu0 %v1210_v4  ;;  %v1274_v4 = vld [vmem:[#allocation3 + $0x270] sm:$0xff] }
 0x1cd   :  { %1996 = vmatmul.mubr.f32.gmra.mxu1 %v1272_v42  ;;  %2305 = vmatprep.mubr.f32.mxu0 %v1215_v14  ;;  %v1336_v42 = vld [vmem:[#allocation3 + $0x460] sm:$0xff]  ;;  %v1279_v14 = vld [vmem:[#allocation3 + $0x298] sm:$0xff] }
 0x1ce   :  { %2000 = vmatprep.mubr.f32.mxu1 %v1277_v43  ;;  %v1341_v43 = vld [vmem:[#allocation3 + $0x488] sm:$0xff] }
 0x1d0   :  { %2306 = vmatmul.mubr.f32.gmra.mxu0 %v1214_v53  ;;  %v1278_v53 = vld [vmem:[#allocation3 + $0x290] sm:$0xff] }
 0x1d1   :  { %2001 = vmatmul.mubr.f32.gmra.mxu1 %v1276_v50  ;;  %2310 = vmatprep.mubr.f32.mxu0 %v1219_v45  ;;  %v1340_v50 = vld [vmem:[#allocation3 + $0x480] sm:$0xff]  ;;  %v1283_v45 = vld [vmem:[#allocation3 + $0x2b8] sm:$0xff] }
 0x1d2   :  { %2005 = vmatprep.mubr.f32.mxu1 %v1281_v10  ;;  %v1345_v10 = vld [vmem:[#allocation3 + $0x4a8] sm:$0xff] }
 0x1d4   :  { %2311 = vmatmul.mubr.f32.gmra.mxu0 %v1218_v15  ;;  %v1282_v15 = vld [vmem:[#allocation3 + $0x2b0] sm:$0xff] }
 0x1d5   :  { %2006 = vmatmul.mubr.f32.gmra.mxu1 %v1280_v2  ;;  %2315 = vmatprep.mubr.f32.mxu0 %v1223_v51  ;;  %v1344_v2 = vld [vmem:[#allocation3 + $0x4a0] sm:$0xff]  ;;  %v1287_v51 = vld [vmem:[#allocation3 + $0x2d8] sm:$0xff] }
 0x1d6   :  { %2010 = vmatprep.mubr.f32.mxu1 %v1285_v49  ;;  %v1349_v49 = vld [vmem:[#allocation3 + $0x4c8] sm:$0xff] }
 0x1d8   :  { %2316 = vmatmul.mubr.f32.gmra.mxu0 %v1222_v0  ;;  %v1286_v0 = vld [vmem:[#allocation3 + $0x2d0] sm:$0xff] }
 0x1d9   :  { %2011 = vmatmul.mubr.f32.gmra.mxu1 %v1284_v19  ;;  %2320 = vmatprep.mubr.f32.mxu0 %v1227_v3  ;;  %v1348_v19 = vld [vmem:[#allocation3 + $0x4c0] sm:$0xff]  ;;  %v1291_v3 = vld [vmem:[#allocation3 + $0x2f8] sm:$0xff] }
 0x1da   :  { %2015 = vmatprep.mubr.f32.mxu1 %v1289_v60  ;;  %v1353_v60 = vld [vmem:[#allocation3 + $0x4e8] sm:$0xff] }
 0x1dc   :  { %2321 = vmatmul.mubr.f32.gmra.mxu0 %v1226_v54  ;;  %v1290_v54 = vld [vmem:[#allocation3 + $0x2f0] sm:$0xff] }
 0x1dd   :  { %2016 = vmatmul.mubr.f32.gmra.mxu1 %v1288_v31  ;;  %2325 = vmatprep.mubr.f32.mxu0 %v1231_v1  ;;  %v1352_v31 = vld [vmem:[#allocation3 + $0x4e0] sm:$0xff]  ;;  %v1295_v1 = vld [vmem:[#allocation3 + $0x318] sm:$0xff] }
 0x1de   :  { %2020 = vmatprep.mubr.f32.mxu1 %v1293_v20  ;;  %v1357_v20 = vld [vmem:[#allocation3 + $0x508] sm:$0xff] }
 0x1e0   :  { %2326 = vmatmul.mubr.f32.gmra.mxu0 %v1230_v18  ;;  %v1294_v18 = vld [vmem:[#allocation3 + $0x310] sm:$0xff] }
 0x1e1   :  { %2021 = vmatmul.mubr.f32.gmra.mxu1 %v1292_v57  ;;  %2330 = vmatprep.mubr.f32.mxu0 %v1235_v28  ;;  %v1356_v57 = vld [vmem:[#allocation3 + $0x500] sm:$0xff]  ;;  %v1299_v28 = vld [vmem:[#allocation3 + $0x338] sm:$0xff] }
 0x1e2   :  { %2025 = vmatprep.mubr.f32.mxu1 %v1297_v36  ;;  %v1361_v36 = vld [vmem:[#allocation3 + $0x528] sm:$0xff] }
 0x1e4   :  { %2331 = vmatmul.mubr.f32.gmra.mxu0 %v1234_v41  ;;  %v1298_v41 = vld [vmem:[#allocation3 + $0x330] sm:$0xff] }
 0x1e5   :  { %2026 = vmatmul.mubr.f32.gmra.mxu1 %v1296_v6  ;;  %2335 = vmatprep.mubr.f32.mxu0 %v1239_v27  ;;  %v1360_v6 = vld [vmem:[#allocation3 + $0x520] sm:$0xff]  ;;  %v1303_v27 = vld [vmem:[#allocation3 + $0x358] sm:$0xff] }
 0x1e6   :  { %2030 = vmatprep.mubr.f32.mxu1 %v1301_v29  ;;  %v1365_v29 = vld [vmem:[#allocation3 + $0x548] sm:$0xff] }
 0x1e8   :  { %2336 = vmatmul.mubr.f32.gmra.mxu0 %v1238_v61  ;;  %v4381_v61 = vpop.permute.xlu1 %1593 }
 0x1e9   :  { %2031 = vmatmul.mubr.f32.gmra.mxu1 %v1300_v62  ;;  %2340 = vmatprep.mubr.f32.mxu0 %v1243_v21  ;;  %v1302_v62 = vld [vmem:[#allocation3 + $0x350] sm:$0xff]  ;;  %v1364_v21 = vld [vmem:[#allocation3 + $0x540] sm:$0xff] }
 0x1ea   :  { %2035 = vmatprep.mubr.f32.mxu1 %v1305_v5  ;;  %v1307_v5 = vld [vmem:[#allocation3 + $0x378] sm:$0xff] }
 0x1ec   :  { %2341 = vmatmul.mubr.f32.gmra.mxu0 %v1242_v7  ;;  %v1369_v7 = vld [vmem:[#allocation3 + $0x568] sm:$0xff] }
 0x1ed   :  { %2036 = vmatmul.mubr.f32.gmra.mxu1 %v1304_v63  ;;  %2345 = vmatprep.mubr.f32.mxu0 %v1247_v34  ;;  %v1306_v63 = vld [vmem:[#allocation3 + $0x370] sm:$0xff]  ;;  %v4383_v34 = vpop.permute.xlu1 %1588 }
 0x1ee   :  { %2040 = vmatprep.mubr.f32.mxu1 %v1309_v55  ;;  %v1368_v55 = vld [vmem:[#allocation3 + $0x560] sm:$0xff] }
 0x1f0   :  { %2346 = vmatmul.mubr.f32.gmra.mxu0 %v1246_v25  ;;  %v1311_v25 = vld [vmem:[#allocation3 + $0x398] sm:$0xff] }
 0x1f1   :  { %2041 = vmatmul.mubr.f32.gmra.mxu1 %v1308_v22  ;;  %2350 = vmatprep.mubr.f32.mxu0 %v1251_v37  ;;  %v1373_v22 = vld [vmem:[#allocation3 + $0x588] sm:$0xff]  ;;  %v1310_v37 = vld [vmem:[#allocation3 + $0x390] sm:$0xff] }
 0x1f2   :  { %2045 = vmatprep.mubr.f32.mxu1 %v1313_v12  ;;  %v1372_v12 = vld [vmem:[#allocation3 + $0x580] sm:$0xff] }
 0x1f4   :  { %2351 = vmatmul.mubr.f32.gmra.mxu0 %v1250_v26  ;;  %v1315_v26 = vld [vmem:[#allocation3 + $0x3b8] sm:$0xff] }
 0x1f5   :  { %2046 = vmatmul.mubr.f32.gmra.mxu1 %v1312_v13  ;;  %2355 = vmatprep.mubr.f32.mxu0 %v1255_v23  ;;  %v1377_v13 = vld [vmem:[#allocation3 + $0x5a8] sm:$0xff]  ;;  %v4385_v23 = vpop.permute.xlu1 %1583 }
 0x1f6   :  { %2050 = vmatprep.mubr.f32.mxu1 %v1317_v17  ;;  %v1314_v17 = vld [vmem:[#allocation3 + $0x3b0] sm:$0xff] }
 0x1f8   :  { %2356 = vmatmul.mubr.f32.gmra.mxu0 %v1254_v59 }
 0x1f9   :  { %2051 = vmatmul.mubr.f32.gmra.mxu1 %v1316_v35  ;;  %2360 = vmatprep.mubr.f32.mxu0 %v1259_v46  ;;  %v1376_v35 = vld [vmem:[#allocation3 + $0x5a0] sm:$0xff]  ;;  %v1319_v46 = vld [vmem:[#allocation3 + $0x3d8] sm:$0xff] }
 0x1fa   :  { %2055 = vmatprep.mubr.f32.mxu1 %v1321_v16  ;;  %v1381_v16 = vld [vmem:[#allocation3 + $0x5c8] sm:$0xff] }
 0x1fc   :  { %2361 = vmatmul.mubr.f32.gmra.mxu0 %v1258_v32 }
 0x1fd   :  { %2056 = vmatmul.mubr.f32.gmra.mxu1 %v1320_v39  ;;  %2365 = vmatprep.mubr.f32.mxu0 %v1263_v58  ;;  %v1318_v39 = vld [vmem:[#allocation3 + $0x3d0] sm:$0xff]  ;;  %v4389_v58 = vpop.permute.xlu1 %1578 }
 0x1fe   :  { %2060 = vmatprep.mubr.f32.mxu1 %v1325_v30  ;;  %v1380_v30 = vld [vmem:[#allocation3 + $0x5c0] sm:$0xff] }
 0x200   :  { %2366 = vmatmul.mubr.f32.gmra.mxu0 %v1262_v40  ;;  %v1323_v40 = vld [vmem:[#allocation3 + $0x3f8] sm:$0xff] }
 0x201   :  { %2061 = vmatmul.mubr.f32.gmra.mxu1 %v1324_v33  ;;  %2370 = vmatprep.mubr.f32.mxu0 %v1267_v44  ;;  %v1385_v44 = vld [vmem:[#allocation3 + $0x5e8] sm:$0xff] }
 0x202   :  { %2065 = vmatprep.mubr.f32.mxu1 %v1329_v38 }
 0x204   :  { %2371 = vmatmul.mubr.f32.gmra.mxu0 %v1266_v47  ;;  %v1322_v47 = vld [vmem:[#allocation3 + $0x3f0] sm:$0xff] }
 0x205   :  { %2066 = vmatmul.mubr.f32.gmra.mxu1 %v1328_v48  ;;  %2375 = vmatprep.mubr.f32.mxu0 %v1271_v52  ;;  %v1384_v48 = vld [vmem:[#allocation3 + $0x5e0] sm:$0xff]  ;;  %v1327_v52 = vld [vmem:[#allocation3 + $0x418] sm:$0xff] }
 0x206   :  { %2070 = vmatprep.mubr.f32.mxu1 %v1333_v8  ;;  %v1389_v8 = vld [vmem:[#allocation3 + $0x608] sm:$0xff] }
 0x208   :  { %2376 = vmatmul.mubr.f32.gmra.mxu0 %v1270_v56 }
 0x209   :  { %2071 = vmatmul.mubr.f32.gmra.mxu1 %v1332_v24  ;;  %2380 = vmatprep.mubr.f32.mxu0 %v1275_v9  ;;  %v4395_v24 = vpop.permute.xlu1 %1573  ;;  %v1326_v9 = vld [vmem:[#allocation3 + $0x410] sm:$0xff] }
 0x20a   :  { %2075 = vmatprep.mubr.f32.mxu1 %v1337_v11 }
 0x20c   :  { %2381 = vmatmul.mubr.f32.gmra.mxu0 %v1274_v4  ;;  %v1388_v4 = vld [vmem:[#allocation3 + $0x600] sm:$0xff] }
 0x20d   :  { %2076 = vmatmul.mubr.f32.gmra.mxu1 %v1336_v42  ;;  %2385 = vmatprep.mubr.f32.mxu0 %v1279_v14  ;;  %v1331_v42 = vld [vmem:[#allocation3 + $0x438] sm:$0xff]  ;;  %v1393_v14 = vld [vmem:[#allocation3 + $0x628] sm:$0xff] }
 0x20e   :  { %2080 = vmatprep.mubr.f32.mxu1 %v1341_v43 }
 0x210   :  { %2386 = vmatmul.mubr.f32.gmra.mxu0 %v1278_v53  ;;  %v1330_v53 = vld [vmem:[#allocation3 + $0x430] sm:$0xff] }
 0x211   :  { %2081 = vmatmul.mubr.f32.gmra.mxu1 %v1340_v50  ;;  %2390 = vmatprep.mubr.f32.mxu0 %v1283_v45  ;;  %v4399_v50 = vpop.permute.xlu1 %1568  ;;  %v1392_v45 = vld [vmem:[#allocation3 + $0x620] sm:$0xff] }
 0x212   :  { %2085 = vmatprep.mubr.f32.mxu1 %v1345_v10  ;;  %v1335_v10 = vld [vmem:[#allocation3 + $0x458] sm:$0xff] }
 0x214   :  { %2391 = vmatmul.mubr.f32.gmra.mxu0 %v1282_v15 }
 0x215   :  { %2086 = vmatmul.mubr.f32.gmra.mxu1 %v1344_v2  ;;  %2395 = vmatprep.mubr.f32.mxu0 %v1287_v51  ;;  %v1397_v2 = vld [vmem:[#allocation3 + $0x648] sm:$0xff]  ;;  %v1334_v51 = vld [vmem:[#allocation3 + $0x450] sm:$0xff] }
 0x216   :  { %2090 = vmatprep.mubr.f32.mxu1 %v1349_v49 }
 0x218   :  { %2396 = vmatmul.mubr.f32.gmra.mxu0 %v1286_v0  ;;  %v1396_v0 = vld [vmem:[#allocation3 + $0x640] sm:$0xff] }
 0x219   :  { %2091 = vmatmul.mubr.f32.gmra.mxu1 %v1348_v19  ;;  %2400 = vmatprep.mubr.f32.mxu0 %v1291_v3  ;;  %v1339_v19 = vld [vmem:[#allocation3 + $0x478] sm:$0xff]  ;;  %v1401_v3 = vld [vmem:[#allocation3 + $0x668] sm:$0xff] }
 0x21a   :  { %2095 = vmatprep.mubr.f32.mxu1 %v1353_v60 }
 0x21c   :  { %2401 = vmatmul.mubr.f32.gmra.mxu0 %v1290_v54  ;;  %v4403_v54 = vpop.permute.xlu1 %1563 }
 0x21d   :  { %2096 = vmatmul.mubr.f32.gmra.mxu1 %v1352_v31  ;;  %2405 = vmatprep.mubr.f32.mxu0 %v1295_v1  ;;  %v1338_v31 = vld [vmem:[#allocation3 + $0x470] sm:$0xff]  ;;  %v1400_v1 = vld [vmem:[#allocation3 + $0x660] sm:$0xff] }
 0x21e   :  { %2100 = vmatprep.mubr.f32.mxu1 %v1357_v20  ;;  %v1343_v20 = vld [vmem:[#allocation3 + $0x498] sm:$0xff] }
 0x220   :  { %2406 = vmatmul.mubr.f32.gmra.mxu0 %v1294_v18 }
 0x221   :  { %2101 = vmatmul.mubr.f32.gmra.mxu1 %v1356_v57  ;;  %2410 = vmatprep.mubr.f32.mxu0 %v1299_v28  ;;  %v1405_v57 = vld [vmem:[#allocation3 + $0x688] sm:$0xff] }
 0x222   :  { %2105 = vmatprep.mubr.f32.mxu1 %v1361_v36  ;;  %v1342_v36 = vld [vmem:[#allocation3 + $0x490] sm:$0xff] }
 0x224   :  { %2411 = vmatmul.mubr.f32.gmra.mxu0 %v1298_v41  ;;  %v4407_v41 = vpop.permute.xlu1 %1558 }
 0x225   :  { %2106 = vmatmul.mubr.f32.gmra.mxu1 %v1360_v6  ;;  %2415 = vmatprep.mubr.f32.mxu0 %v1303_v27  ;;  %v1404_v6 = vld [vmem:[#allocation3 + $0x680] sm:$0xff]  ;;  %v1347_v27 = vld [vmem:[#allocation3 + $0x4b8] sm:$0xff] }
 0x226   :  { %2110 = vmatprep.mubr.f32.mxu1 %v1365_v29  ;;  %v1409_v29 = vld [vmem:[#allocation3 + $0x6a8] sm:$0xff] }
 0x228   :  { %2416 = vmatmul.mubr.f32.gmra.mxu0 %v1302_v62 }
 0x229   :  { %2111 = vmatmul.mubr.f32.gmra.mxu1 %v1364_v21  ;;  %2420 = vmatprep.mubr.f32.mxu0 %v1307_v5  ;;  %v1346_v21 = vld [vmem:[#allocation3 + $0x4b0] sm:$0xff] }
 0x22a   :  { %2115 = vmatprep.mubr.f32.mxu1 %v1369_v7  ;;  %v1408_v7 = vld [vmem:[#allocation3 + $0x6a0] sm:$0xff] }
 0x22c   :  { %2421 = vmatmul.mubr.f32.gmra.mxu0 %v1306_v63  ;;  %v1351_v63 = vld [vmem:[#allocation3 + $0x4d8] sm:$0xff] }
 0x22d   :  { %2116 = vmatmul.mubr.f32.gmra.mxu1 %v1368_v55  ;;  %2425 = vmatprep.mubr.f32.mxu0 %v1311_v25  ;;  %v1413_v55 = vld [vmem:[#allocation3 + $0x6c8] sm:$0xff]  ;;  %v4411_v25 = vpop.permute.xlu1 %1553 }
 0x22e   :  { %2120 = vmatprep.mubr.f32.mxu1 %v1373_v22 }
 0x230   :  { %2426 = vmatmul.mubr.f32.gmra.mxu0 %v1310_v37  ;;  %v1350_v37 = vld [vmem:[#allocation3 + $0x4d0] sm:$0xff] }
 0x231   :  { %2121 = vmatmul.mubr.f32.gmra.mxu1 %v1372_v12  ;;  %2430 = vmatprep.mubr.f32.mxu0 %v1315_v26  ;;  %v4387_v59 = vpop.f32.mrf.mxu1  ;;  %v1412_v12 = vld [vmem:[#allocation3 + $0x6c0] sm:$0xff]  ;;  %v1355_v26 = vld [vmem:[#allocation3 + $0x4f8] sm:$0xff] }
 0x232   :  { %2125 = vmatprep.mubr.f32.mxu1 %v1377_v13 }
 0x233   :  { %v1904_v32 = vpop.f32.mrf.mxu1 }
 0x234   :  { %2431 = vmatmul.mubr.f32.gmra.mxu0 %v1314_v17  ;;  %v1417_v17 = vld [vmem:[#allocation3 + $0x6e8] sm:$0xff]  ;;  %v1416_v32 = vld [vmem:[#allocation3 + $0x6e0] sm:$0xff] }
 0x235   :  { %2126 = vmatmul.mubr.f32.gmra.mxu1 %v1376_v35  ;;  %2435 = vmatprep.mubr.f32.mxu0 %v1319_v46  ;;  %v1354_v35 = vld [vmem:[#allocation3 + $0x4f0] sm:$0xff] }
 0x236   :  { %2130 = vmatprep.mubr.f32.mxu1 %v1381_v16  ;;  %v4391_v33 = vpop.f32.mrf.mxu1  ;;  %v4417_v16 = vpop.permute.xlu1 %1548 }
 0x238   :  { %2436 = vmatmul.mubr.f32.gmra.mxu0 %v1318_v39  ;;  %v1909_v38 = vpop.f32.mrf.mxu1  ;;  %v1359_v39 = vld [vmem:[#allocation3 + $0x518] sm:$0xff] }
 0x239   :  { %2131 = vmatmul.mubr.f32.gmra.mxu1 %v1380_v30  ;;  %2440 = vmatprep.mubr.f32.mxu0 %v1323_v40  ;;  %v1421_v30 = vld [vmem:[#allocation3 + $0x708] sm:$0xff]  ;;  %v1420_v38 = vld [vmem:[#allocation3 + $0x700] sm:$0xff] }
 0x23a   :  { %2135 = vmatprep.mubr.f32.mxu1 %v1385_v44  ;;  %v1358_v44 = vld [vmem:[#allocation3 + $0x510] sm:$0xff] }
 0x23b   :  { %v4393_v56 = vpop.f32.mrf.mxu1 }
 0x23c   :  { %2441 = vmatmul.mubr.f32.gmra.mxu0 %v1322_v47  ;;  %v1363_v47 = vld [vmem:[#allocation3 + $0x538] sm:$0xff] }
 0x23d   :  { %2136 = vmatmul.mubr.f32.gmra.mxu1 %v1384_v48  ;;  %2445 = vmatprep.mubr.f32.mxu0 %v1327_v52  ;;  %v1914_v11 = vpop.f32.mrf.mxu1  ;;  %v1425_v52 = vld [vmem:[#allocation3 + $0x728] sm:$0xff] }
 0x23e   :  { %2140 = vmatprep.mubr.f32.mxu1 %v1389_v8  ;;  %v4421_v8 = vpop.permute.xlu1 %1543  ;;  %v1362_v11 = vld [vmem:[#allocation3 + $0x530] sm:$0xff] }
 0x240   :  { %2446 = vmatmul.mubr.f32.gmra.mxu0 %v1326_v9  ;;  %v4397_v43 = vpop.f32.mrf.mxu1 }
 0x241   :  { %2141 = vmatmul.mubr.f32.gmra.mxu1 %v1388_v4  ;;  %2450 = vmatprep.mubr.f32.mxu0 %v1331_v42  ;;  %v1424_v4 = vld [vmem:[#allocation3 + $0x720] sm:$0xff]  ;;  %v1367_v42 = vld [vmem:[#allocation3 + $0x558] sm:$0xff] }
 0x242   :  { %2145 = vmatprep.mubr.f32.mxu1 %v1393_v14  ;;  %v1919_v15 = vpop.f32.mrf.mxu1  ;;  %v1429_v14 = vld [vmem:[#allocation3 + $0x748] sm:$0xff] }
 0x244   :  { %2451 = vmatmul.mubr.f32.gmra.mxu0 %v1330_v53 }
 0x245   :  { %2146 = vmatmul.mubr.f32.gmra.mxu1 %v1392_v45  ;;  %2455 = vmatprep.mubr.f32.mxu0 %v1335_v10  ;;  %v4401_v49 = vpop.f32.mrf.mxu1  ;;  %v4425_v45 = vpop.permute.xlu0 %1673  ;;  %v1366_v10 = vld [vmem:[#allocation3 + $0x550] sm:$0xff] }
 0x246   :  { %2150 = vmatprep.mubr.f32.mxu1 %v1397_v2  ;;  %v4427_v2 = vpop.permute.xlu1 %1538 }
 0x247   :  { %v1924_v60 = vpop.f32.mrf.mxu1 }
 0x248   :  { %2456 = vmatmul.mubr.f32.gmra.mxu0 %v1334_v51  ;;  %v1428_v51 = vld [vmem:[#allocation3 + $0x740] sm:$0xff]  ;;  %v1370_v60 = vld [vmem:[#allocation3 + $0x570] sm:$0xff] }
 0x249   :  { %2151 = vmatmul.mubr.f32.gmra.mxu1 %v1396_v0  ;;  %2460 = vmatprep.mubr.f32.mxu0 %v1339_v19  ;;  %v1371_v0 = vld [vmem:[#allocation3 + $0x578] sm:$0xff]  ;;  %v1433_v19 = vld [vmem:[#allocation3 + $0x768] sm:$0xff] }
 0x24a   :  { %2155 = vmatprep.mubr.f32.mxu1 %v1401_v3  ;;  %v4405_v18 = vpop.f32.mrf.mxu1 }
 0x24c   :  { %2461 = vmatmul.mubr.f32.gmra.mxu0 %v1338_v31  ;;  %v1929_v28 = vpop.f32.mrf.mxu1  ;;  %v4431_v31 = vpop.permute.xlu0 %1668 }
 0x24d   :  { %2156 = vmatmul.mubr.f32.gmra.mxu1 %v1400_v1  ;;  %2465 = vmatprep.mubr.f32.mxu0 %v1343_v20  ;;  %v1432_v1 = vld [vmem:[#allocation3 + $0x760] sm:$0xff]  ;;  %v1437_v28 = vld [vmem:[#allocation3 + $0x788] sm:$0xff] }
 0x24e   :  { %2160 = vmatprep.mubr.f32.mxu1 %v1405_v57  ;;  %v1375_v57 = vld [vmem:[#allocation3 + $0x598] sm:$0xff] }
 0x24f   :  { %v4409_v62 = vpop.f32.mrf.mxu1 }
 0x250   :  { %2466 = vmatmul.mubr.f32.gmra.mxu0 %v1342_v36  ;;  %v4433_v36 = vpop.permute.xlu1 %1533 }
 0x251   :  { %2161 = vmatmul.mubr.f32.gmra.mxu1 %v1404_v6  ;;  %2470 = vmatprep.mubr.f32.mxu0 %v1347_v27  ;;  %v1934_v5 = vpop.f32.mrf.mxu1  ;;  %v1374_v27 = vld [vmem:[#allocation3 + $0x590] sm:$0xff] }
 0x252   :  { %2165 = vmatprep.mubr.f32.mxu1 %v1409_v29  ;;  %v1436_v29 = vld [vmem:[#allocation3 + $0x780] sm:$0xff] }
 0x254   :  { %2471 = vmatmul.mubr.f32.gmra.mxu0 %v1346_v21  ;;  %v4413_v22 = vpop.f32.mrf.mxu1  ;;  %v1379_v21 = vld [vmem:[#allocation3 + $0x5b8] sm:$0xff] }
 0x255   :  { %2166 = vmatmul.mubr.f32.gmra.mxu1 %v1408_v7  ;;  %2475 = vmatprep.mubr.f32.mxu0 %v1351_v63  ;;  %v1441_v7 = vld [vmem:[#allocation3 + $0x7a8] sm:$0xff]  ;;  %v4437_v63 = vpop.permute.xlu0 %1663 }
 0x256   :  { %2170 = vmatprep.mubr.f32.mxu1 %v1413_v55  ;;  %v1939_v13 = vpop.f32.mrf.mxu1  ;;  %v1378_v55 = vld [vmem:[#allocation3 + $0x5b0] sm:$0xff] }
 0x257   :  { %v1383_v13 = vld [vmem:[#allocation3 + $0x5d8] sm:$0xff] }
 0x258   :  { %2476 = vmatmul.mubr.f32.gmra.mxu0 %v1350_v37  ;;  %v4439_v37 = vpop.permute.xlu1 %1528 }
 0x259   :  { %2171 = vmatmul.mubr.f32.gmra.mxu1 %v1412_v12  ;;  %2480 = vmatprep.mubr.f32.mxu0 %v1355_v26  ;;  %v4415_v46 = vpop.f32.mrf.mxu1  ;;  %v1440_v26 = vld [vmem:[#allocation3 + $0x7a0] sm:$0xff] }
 0x25a   :  { %2175 = vmatprep.mubr.f32.mxu1 %v1417_v17  ;;  %v1445_v17 = vld [vmem:[#allocation3 + $0x7c8] sm:$0xff] }
 0x25b   :  { %v1944_v40 = vpop.f32.mrf.mxu1 }
 0x25c   :  { %2481 = vmatmul.mubr.f32.gmra.mxu0 %v1354_v35  ;;  %v1387_v40 = vld [vmem:[#allocation3 + $0x5f8] sm:$0xff] }
 0x25d   :  { %2176 = vmatmul.mubr.f32.gmra.mxu1 %v1416_v32  ;;  %2485 = vmatprep.mubr.f32.mxu0 %v1359_v39  ;;  %v1382_v32 = vld [vmem:[#allocation3 + $0x5d0] sm:$0xff]  ;;  %v4443_v39 = vpop.permute.xlu0 %1658 }
 0x25e   :  { %2180 = vmatprep.mubr.f32.mxu1 %v1421_v30  ;;  %v4419_v48 = vpop.f32.mrf.mxu1  ;;  %v1444_v30 = vld [vmem:[#allocation3 + $0x7c0] sm:$0xff] }
 0x260   :  { %2486 = vmatmul.mubr.f32.gmra.mxu0 %v1358_v44  ;;  %v1949_v9 = vpop.f32.mrf.mxu1 }
 0x261   :  { %2181 = vmatmul.mubr.f32.gmra.mxu1 %v1420_v38  ;;  %2490 = vmatprep.mubr.f32.mxu0 %v1363_v47  ;;  %v1449_v38 = vld [vmem:[#allocation3 + $0x7e8] sm:$0xff]  ;;  %v1524_v47 = vpop.permute.xlu1 %1523  ;;  %v1386_v9 = vld [vmem:[#allocation3 + $0x5f0] sm:$0xff] }
 0x262   :  { %2185 = vmatprep.mubr.f32.mxu1 %v1425_v52 }
 0x263   :  { %v4423_v53 = vpop.f32.mrf.mxu1 }
 0x264   :  { %2491 = vmatmul.mubr.f32.gmra.mxu0 %v1362_v11  ;;  %v1448_v11 = vld [vmem:[#allocation3 + $0x7e0] sm:$0xff] }
 0x265   :  { %2186 = vmatmul.mubr.f32.gmra.mxu1 %v1424_v4  ;;  %2495 = vmatprep.mubr.f32.mxu0 %v1367_v42  ;;  %v1954_v15 = vpop.f32.mrf.mxu1  ;;  %v1391_v4 = vld [vmem:[#allocation3 + $0x618] sm:$0xff] }
 0x266   :  { %2190 = vmatprep.mubr.f32.mxu1 %v1429_v14  ;;  %v1411_v42 = vld [vmem:[#allocation3 + $0x6b8] sm:$0xff]  ;;  %v4447_v14 = vpop.permute.xlu0 %1653  ;;  %v1390_v15 = vld [vmem:[#allocation3 + $0x610] sm:$0xff] }
 0x268   :  { %2496 = vmatmul.mubr.f32.gmra.mxu0 %v1366_v10  ;;  %v4429_v3 = vpop.f32.mrf.mxu1 }
 0x269   :  { %2191 = vmatmul.mubr.f32.gmra.mxu1 %v1428_v51  ;;  %2500 = vmatprep.mubr.f32.mxu0 %v1371_v0  ;;  %v1519_v51 = vpop.permute.xlu1 %1518 }
 0x26a   :  { %2195 = vmatprep.mubr.f32.mxu1 %v1433_v19  ;;  %v1959_v20 = vpop.f32.mrf.mxu1  ;;  %v1410_v19 = vld [vmem:[#allocation3 + $0x6b0] sm:$0xff] }
 0x26b   :  { %v1415_v20 = vld [vmem:[#allocation3 + $0x6d8] sm:$0xff] }
 0x26c   :  { %2501 = vmatmul.mubr.f32.gmra.mxu0 %v1370_v60  ;;  %v1395_v60 = vld [vmem:[#allocation3 + $0x638] sm:$0xff] }
 0x26d   :  { %2196 = vmatmul.mubr.f32.gmra.mxu1 %v1432_v1  ;;  %2505 = vmatprep.mubr.f32.mxu0 %v1375_v57  ;;  %v4435_v6 = vpop.f32.mrf.mxu1  ;;  %v1903_v1 = vadd.f32 %v4387_v59, %v1519_v51  ;;  %v1419_v59 = vld [vmem:[#allocation3 + $0x6f8] sm:$0xff]  ;;  %v1402_v51 = vld [vmem:[#allocation3 + $0x670] sm:$0xff] }
 0x26e   :  { %2200 = vmatprep.mubr.f32.mxu1 %v1437_v28 }
 0x26f   :  { %v1964_v5 = vpop.f32.mrf.mxu1 }
 0x270   :  { %2506 = vmatmul.mubr.f32.gmra.mxu0 %v1374_v27 }
 0x271   :  { %2201 = vmatmul.mubr.f32.gmra.mxu1 %v1436_v29  ;;  %2510 = vmatprep.mubr.f32.mxu0 %v1379_v21  ;;  %v1394_v29 = vld [vmem:[#allocation3 + $0x630] sm:$0xff]  ;;  %v4456_v21 = vpop.permute.xlu0 %1648 }
 0x272   :  { %2205 = vmatprep.mubr.f32.mxu1 %v1441_v7  ;;  %v4441_v12 = vpop.f32.mrf.mxu1  ;;  %v1414_v7 = vld [vmem:[#allocation3 + $0x6d0] sm:$0xff] }
 0x274   :  { %2511 = vmatmul.mubr.f32.gmra.mxu0 %v1378_v55  ;;  %v1969_v35 = vpop.f32.mrf.mxu1  ;;  %v1399_v55 = vld [vmem:[#allocation3 + $0x658] sm:$0xff] }
 0x275   :  { %2206 = vmatmul.mubr.f32.gmra.mxu1 %v1440_v26  ;;  %2515 = vmatprep.mubr.f32.mxu0 %v1383_v13  ;;  %v1908_v26 = vadd.f32 %v4391_v33, %v1524_v47  ;;  %v1423_v33 = vld [vmem:[#allocation3 + $0x718] sm:$0xff]  ;;  %v4465_v47 = vpop.permute.xlu0 %1643 }
 0x276   :  { %2210 = vmatprep.mubr.f32.mxu1 %v1445_v17 }
 0x277   :  { %v4445_v44 = vpop.f32.mrf.mxu1 }
 0x278   :  { %2516 = vmatmul.mubr.f32.gmra.mxu0 %v1382_v32 }
 0x279   :  { %2211 = vmatmul.mubr.f32.gmra.mxu1 %v1444_v30  ;;  %v1974_v52 = vpop.f32.mrf.mxu1  ;;  %2520 = vmatprep.mubr.f32.mxu0 %v1387_v40  ;;  %v1398_v30 = vld [vmem:[#allocation3 + $0x650] sm:$0xff] }
 0x27a   :  { %2215 = vmatprep.mubr.f32.mxu1 %v1449_v38  ;;  %v1418_v38 = vld [vmem:[#allocation3 + $0x6f0] sm:$0xff]  ;;  %v1403_v52 = vld [vmem:[#allocation3 + $0x678] sm:$0xff] }
 0x27c   :  { %v4449_v10 = vpop.f32.mrf.mxu1  ;;  %2521 = vmatmul.mubr.f32.gmra.mxu0 %v1386_v9  ;;  %v1913_v9 = vadd.f32 %v4393_v56, %v4439_v37  ;;  %v1918_v56 = vadd.f32 %v4397_v43, %v4433_v36  ;;  %v1431_v36 = vld [vmem:[#allocation3 + $0x758] sm:$0xff] }
 0x27d   :  { %2216 = vmatmul.mubr.f32.gmra.mxu1 %v1448_v11  ;;  %2525 = vmatprep.mubr.f32.mxu0 %v1391_v4 }
 0x27e   :  { %v1979_v0 = vpop.f32.mrf.mxu1  ;;  %2550 = vmatprep.mubr.f32.mxu1 %v1411_v42 }
 0x280   :  { %v2287_v57 = vpop.f32.mrf.mxu0  ;;  %2526 = vmatmul.mubr.f32.gmra.mxu0 %v1390_v15 }
 0x281   :  { %v4452_v28 = vpop.f32.mrf.mxu1  ;;  %v4454_v27 = vadd.f32 %v2287_v57, %v1903_v1  ;;  %2551 = vmatmul.mubr.f32.vlgmr.msra.gmra.mxu1 %v1410_v19  ;;  %2530 = vmatprep.mubr.f32.mxu0 %v1395_v60  ;;  %v1422_v19 = vld [vmem:[#allocation3 + $0x710] sm:$0xff]  ;;  %v1407_v60 = vld [vmem:[#allocation3 + $0x698] sm:$0xff] }
 0x282   :  { %v2289_v5 = vpop.f32.mrf.mxu0  ;;  %2555 = vmatprep.mubr.f32.mxu1 %v1415_v20  ;;  %v1427_v1 = vld [vmem:[#allocation3 + $0x738] sm:$0xff] }
 0x283   :  { %4902 = vst [vmem:[#allocation9_spill] sm:$0xff] %v4454_v27  ;;  %v1984_v13 = vpop.f32.mrf.mxu1  ;;  %v1406_v5 = vld [vmem:[#allocation3 + $0x690] sm:$0xff] }
 0x284   :  { %v2292_v17 = vpop.f32.mrf.mxu0  ;;  %2531 = vmatmul.mubr.f32.gmra.mxu0 %v1394_v29  ;;  %v1923_v13 = vadd.f32 %v4401_v49, %v4427_v2 }
 0x285   :  { %v4459_v35 = vpop.f32.mrf.mxu1  ;;  %v4461_v32 = vadd.f32 %v2292_v17, %v1908_v26  ;;  %2556 = vmatmul.mubr.f32.gmra.mxu1 %v1414_v7  ;;  %2535 = vmatprep.mubr.f32.mxu0 %v1399_v55  ;;  %v4477_v7 = vpop.permute.xlu0 %1638  ;;  %v1426_v26 = vld [vmem:[#allocation3 + $0x730] sm:$0xff] }
 0x286   :  { %v2294_v40 = vpop.f32.mrf.mxu0  ;;  %2560 = vmatprep.mubr.f32.mxu1 %v1419_v59 }
 0x287   :  { %4903 = vst [vmem:[#allocation10_spill] sm:$0xff] %v4461_v32  ;;  %v1989_v11 = vpop.f32.mrf.mxu1 }
 0x288   :  { %v2297_v4 = vpop.f32.mrf.mxu0  ;;  %2536 = vmatmul.mubr.f32.gmra.mxu0 %v1398_v30  ;;  %v1435_v11 = vld [vmem:[#allocation3 + $0x778] sm:$0xff] }
 0x289   :  { %v4467_v42 = vpop.f32.mrf.mxu1  ;;  %v4469_v15 = vadd.f32 %v2297_v4, %v1913_v9  ;;  %2561 = vmatmul.mubr.f32.gmra.mxu1 %v1418_v38  ;;  %2540 = vmatprep.mubr.f32.mxu0 %v1403_v52  ;;  %v1430_v38 = vld [vmem:[#allocation3 + $0x750] sm:$0xff]  ;;  %v1928_v52 = vadd.f32 %v4405_v18, %v4421_v8 }
 0x28a   :  { %v2299_v0 = vpop.f32.mrf.mxu0  ;;  %2565 = vmatprep.mubr.f32.mxu1 %v1423_v33  ;;  %v4487_v33 = vpop.permute.xlu0 %1633 }
 0x28b   :  { %4904 = vst [vmem:[#allocation11_spill] sm:$0xff] %v4469_v15  ;;  %v1994_v37 = vpop.f32.mrf.mxu1  ;;  %v1434_v0 = vld [vmem:[#allocation3 + $0x770] sm:$0xff] }
 0x28c   :  { %v2302_v20 = vpop.f32.mrf.mxu0  ;;  %2541 = vmatmul.mubr.f32.gmra.mxu0 %v1402_v51 }
 0x28d   :  { %v4473_v57 = vpop.f32.mrf.mxu1  ;;  %v4475_v29 = vadd.f32 %v2302_v20, %v1918_v56  ;;  %2566 = vmatmul.mubr.f32.gmra.mxu1 %v1422_v19  ;;  %2545 = vmatprep.mubr.f32.mxu0 %v1407_v60  ;;  %v1933_v19 = vadd.f32 %v4409_v62, %v4417_v16  ;;  %v1439_v56 = vld [vmem:[#allocation3 + $0x798] sm:$0xff] }
 0x28e   :  { %v2304_v55 = vpop.f32.mrf.mxu0  ;;  %2570 = vmatprep.mubr.f32.mxu1 %v1427_v1  ;;  %v4499_v1 = vpop.permute.xlu0 %1628 }
 0x28f   :  { %4905 = vst [vmem:[#allocation12_spill] sm:$0xff] %v4475_v29  ;;  %v1999_v43 = vpop.f32.mrf.mxu1  ;;  %v1938_v55 = vadd.f32 %v4413_v22, %v4411_v25 }
 0x290   :  { %v2307_v59 = vpop.f32.mrf.mxu0  ;;  %2546 = vmatmul.mubr.f32.gmra.mxu0 %v1406_v5  ;;  %v1438_v5 = vld [vmem:[#allocation3 + $0x790] sm:$0xff] }
 0x291   :  { %v4481_v17 = vpop.f32.mrf.mxu1  ;;  %v4483_v30 = vadd.f32 %v2307_v59, %v1923_v13  ;;  %2571 = vmatmul.mubr.f32.gmra.mxu1 %v1426_v26  ;;  %v1443_v13 = vld [vmem:[#allocation3 + $0x7b8] sm:$0xff]  ;;  %v1442_v59 = vld [vmem:[#allocation3 + $0x7b0] sm:$0xff] }
 0x292   :  { %v2309_v40 = vpop.f32.mrf.mxu0  ;;  %2575 = vmatprep.mubr.f32.mxu1 %v1431_v36 }
 0x293   :  { %4906 = vst [vmem:[#allocation13_spill] sm:$0xff] %v4483_v30  ;;  %v2004_v9 = vpop.f32.mrf.mxu1  ;;  %v1943_v40 = vadd.f32 %v4415_v46, %v4407_v41 }
 0x294   :  { %v2312_v49 = vpop.f32.mrf.mxu0  ;;  %v4509_v9 = vpop.permute.xlu0 %1623 }
 0x295   :  { %v4489_v2 = vpop.f32.mrf.mxu1  ;;  %v4491_v4 = vadd.f32 %v2312_v49, %v1928_v52  ;;  %2576 = vmatmul.mubr.f32.gmra.mxu1 %v1430_v38  ;;  %v1447_v52 = vld [vmem:[#allocation3 + $0x7d8] sm:$0xff] }
 0x296   :  { %v2314_v51 = vpop.f32.mrf.mxu0  ;;  %2580 = vmatprep.mubr.f32.mxu1 %v1435_v11 }
 0x297   :  { %4907 = vst [vmem:[#allocation14_spill] sm:$0xff] %v4491_v4  ;;  %v2009_v60 = vpop.f32.mrf.mxu1  ;;  %v1446_v51 = vld [vmem:[#allocation3 + $0x7d0] sm:$0xff] }
 0x298   :  { %v2317_v37 = vpop.f32.mrf.mxu0  ;;  %v1451_v60 = vld [vmem:[#allocation3 + $0x7f8] sm:$0xff] }
 0x299   :  { %v4495_v18 = vpop.f32.mrf.mxu1  ;;  %v4497_v8 = vadd.f32 %v2317_v37, %v1933_v19  ;;  %2581 = vmatmul.mubr.f32.gmra.mxu1 %v1434_v0  ;;  %v1948_v0 = vadd.f32 %v4419_v48, %v4403_v54 }
 0x29a   :  { %v2319_v20 = vpop.f32.mrf.mxu0  ;;  %2585 = vmatprep.mubr.f32.mxu1 %v1439_v56  ;;  %v4517_v56 = vpop.permute.xlu1 %1753 }
 0x29b   :  { %4908 = vst [vmem:[#allocation15_spill] sm:$0xff] %v4497_v8  ;;  %v2014_v26 = vpop.f32.mrf.mxu1  ;;  %4909 = vst [vmem:[#allocation16_spill] sm:$0xff] %v4517_v56  ;;  %v4523_v20 = vpop.permute.xlu0 %1618 }
 0x29c   :  { %v2322_v43 = vpop.f32.mrf.mxu0  ;;  %v1953_v26 = vadd.f32 %v4423_v53, %v4399_v50  ;;  %v1963_v53 = vadd.f32 %v4435_v6, %v4389_v58 }
 0x29d   :  { %v4503_v62 = vpop.f32.mrf.mxu1  ;;  %v4505_v16 = vadd.f32 %v2322_v43, %v1938_v55  ;;  %2586 = vmatmul.mubr.f32.gmra.mxu1 %v1438_v5  ;;  %v1450_v55 = vld [vmem:[#allocation3 + $0x7f0] sm:$0xff] }
 0x29e   :  { %v2324_v36 = vpop.f32.mrf.mxu0  ;;  %2590 = vmatprep.mubr.f32.mxu1 %v1443_v13 }
 0x29f   :  { %v2019_v38 = vpop.f32.mrf.mxu1  ;;  %v4531_v36 = vpop.permute.xlu1 %1748 }
 0x2a0   :  { %v2327_v11 = vpop.f32.mrf.mxu0  ;;  %4910 = vst [vmem:[#allocation17_spill] sm:$0xff] %v4531_v36 }
 0x2a1   :  { %v4511_v25 = vpop.f32.mrf.mxu1  ;;  %v4513_v22 = vadd.f32 %v2327_v11, %v1943_v40  ;;  %2591 = vmatmul.mubr.f32.gmra.mxu1 %v1442_v59  ;;  %v1958_v40 = vadd.f32 %v4429_v3, %v4395_v24 }
 0x2a2   :  { %v2329_v49 = vpop.f32.mrf.mxu0  ;;  %2595 = vmatprep.mubr.f32.mxu1 %v1447_v52  ;;  %v1614_v52 = vpop.permute.xlu0 %1613 }
 0x2a3   :  { %v2024_v19 = vpop.f32.mrf.mxu1 }
 0x2a4   :  { %v2332_v41 = vpop.f32.mrf.mxu0  ;;  %v4541_v19 = vpop.permute.xlu1 %1743 }
 0x2a5   :  { %v4519_v46 = vpop.f32.mrf.mxu1  ;;  %v4521_v37 = vadd.f32 %v2332_v41, %v1948_v0  ;;  %2596 = vmatmul.mubr.f32.gmra.mxu1 %v1446_v51  ;;  %4911 = vst [vmem:[#allocation18_spill] sm:$0xff] %v4541_v19 }
 0x2a6   :  { %v2334_v5 = vpop.f32.mrf.mxu0  ;;  %2600 = vmatprep.mubr.f32.mxu1 %v1451_v60  ;;  %v1609_v24 = vpop.permute.xlu0 %1608 }
 0x2a7   :  { %v2029_v13 = vpop.f32.mrf.mxu1 }
 0x2a8   :  { %v2337_v54 = vpop.f32.mrf.mxu0  ;;  %v4553_v58 = vpop.permute.xlu1 %1738 }
 0x2a9   :  { %v4527_v48 = vpop.f32.mrf.mxu1  ;;  %v4529_v43 = vadd.f32 %v2337_v54, %v1953_v26  ;;  %2601 = vmatmul.mubr.f32.gmra.mxu1 %v1450_v55  ;;  %v1968_v55 = vadd.f32 %v4441_v12, %v4385_v23  ;;  %4912 = vst [vmem:[#allocation19_spill] sm:$0xff] %v4553_v58  ;;  %v1978_v12 = vadd.f32 %v4449_v10, %v4381_v61 }
 0x2aa   :  { %v2339_v59 = vpop.f32.mrf.mxu0 }
 0x2ab   :  { %v2034_v38 = vpop.f32.mrf.mxu1 }
 0x2ac   :  { %v2342_v11 = vpop.f32.mrf.mxu0 }
 0x2ad   :  { %v4535_v49 = vpop.f32.mrf.mxu1  ;;  %v4537_v51 = vadd.f32 %v2342_v11, %v1958_v40  ;;  %v1973_v40 = vadd.f32 %v4445_v44, %v4383_v34  ;;  %v1604_v11 = vpop.permute.xlu0 %1603 }
 0x2ae   :  { %v2344_v50 = vpop.f32.mrf.mxu0  ;;  %v1988_v10 = vadd.f32 %v4459_v35, %v1604_v11  ;;  %v1998_v35 = vadd.f32 %v4473_v57, %v1614_v52 }
 0x2af   :  { %v2039_v0 = vpop.f32.mrf.mxu1 }
 0x2b0   :  { %v2347_v60 = vpop.f32.mrf.mxu0 }
 0x2b1   :  { %v4543_v41 = vpop.f32.mrf.mxu1  ;;  %v4545_v5 = vadd.f32 %v2347_v60, %v1963_v53  ;;  %v1599_v34 = vpop.permute.xlu0 %1598 }
 0x2b2   :  { %v2349_v3 = vpop.f32.mrf.mxu0 }
 0x2b3   :  { %v2044_v26 = vpop.f32.mrf.mxu1  ;;  %v4563_v3 = vpop.permute.xlu1 %1733 }
 0x2b4   :  { %v2352_v13 = vpop.f32.mrf.mxu0  ;;  %4913 = vst [vmem:[#allocation20_spill] sm:$0xff] %v4563_v3 }
 0x2b5   :  { %v4549_v54 = vpop.f32.mrf.mxu1  ;;  %v4551_v59 = vadd.f32 %v2352_v13, %v1968_v55 }
 0x2b6   :  { %v2354_v6 = vpop.f32.mrf.mxu0 }
 0x2b7   :  { %v2049_v38 = vpop.f32.mrf.mxu1  ;;  %v1983_v6 = vadd.f32 %v4452_v28, %v1599_v34  ;;  %v1993_v28 = vadd.f32 %v4467_v42, %v1609_v24  ;;  %v2003_v24 = vadd.f32 %v4481_v17, %v4523_v20 }
 0x2b8   :  { %v2357_v50 = vpop.f32.mrf.mxu0 }
 0x2b9   :  { %v4557_v53 = vpop.f32.mrf.mxu1  ;;  %v4559_v0 = vadd.f32 %v2357_v50, %v1973_v40 }
 0x2ba   :  { %v2359_v23 = vpop.f32.mrf.mxu0 }
 0x2bb   :  { %v2054_v60 = vpop.f32.mrf.mxu1  ;;  %v4574_v23 = vpop.permute.xlu1 %1728 }
 0x2bc   :  { %v2362_v55 = vpop.f32.mrf.mxu0  ;;  %4915 = vst [vmem:[#allocation22_spill] sm:$0xff] %v4574_v23 }
 0x2bd   :  { %v4565_v26 = vpop.f32.mrf.mxu1  ;;  %v4567_v13 = vadd.f32 %v2362_v55, %v1978_v12 }
 0x2be   :  { %v2364_v44 = vpop.f32.mrf.mxu0 }
 0x2bf   :  { %v2059_v38 = vpop.f32.mrf.mxu1  ;;  %v4582_v44 = vpop.permute.xlu1 %1723 }
 0x2c0   :  { %v2367_v19 = vpop.f32.mrf.mxu0  ;;  %4917 = vst [vmem:[#allocation24_spill] sm:$0xff] %v4582_v44 }
 0x2c1   :  { %v4570_v40 = vpop.f32.mrf.mxu1  ;;  %v4572_v50 = vadd.f32 %v2367_v19, %v1983_v6 }
 0x2c2   :  { %v2369_v61 = vpop.f32.mrf.mxu0 }
 0x2c3   :  { %4914 = vst [vmem:[#allocation21_spill] sm:$0xff] %v4572_v50  ;;  %v2064_v60 = vpop.f32.mrf.mxu1  ;;  %v4623_v50 = vpop.permute.xlu0 %1833 }
 0x2c4   :  { %v2372_v36 = vpop.f32.mrf.mxu0  ;;  %4929 = vst [vmem:[#allocation36_spill] sm:$0xff] %v4623_v50 }
 0x2c5   :  { %v4577_v56 = vpop.f32.mrf.mxu1  ;;  %v4579_v12 = vadd.f32 %v2372_v36, %v1988_v10  ;;  %v4593_v10 = vpop.permute.xlu1 %1718 }
 0x2c6   :  { %v2374_v55 = vpop.f32.mrf.mxu0  ;;  %4920 = vst [vmem:[#allocation27_spill] sm:$0xff] %v4593_v10 }
 0x2c7   :  { %4916 = vst [vmem:[#allocation23_spill] sm:$0xff] %v4579_v12  ;;  %v2069_v34 = vpop.f32.mrf.mxu1 }
 0x2c8   :  { %v2377_v38 = vpop.f32.mrf.mxu0 }
 0x2c9   :  { %v4584_v19 = vpop.f32.mrf.mxu1  ;;  %v4586_v6 = vadd.f32 %v2377_v38, %v1993_v28  ;;  %v4601_v52 = vpop.permute.xlu1 %1713 }
 0x2ca   :  { %v2379_v61 = vpop.f32.mrf.mxu0  ;;  %4922 = vst [vmem:[#allocation29_spill] sm:$0xff] %v4601_v52 }
 0x2cb   :  { %4918 = vst [vmem:[#allocation25_spill] sm:$0xff] %v4586_v6  ;;  %v2074_v11 = vpop.f32.mrf.mxu1 }
 0x2cc   :  { %v2382_v60 = vpop.f32.mrf.mxu0 }
 0x2cd   :  { %v4589_v58 = vpop.f32.mrf.mxu1  ;;  %v4591_v36 = vadd.f32 %v2382_v60, %v1998_v35  ;;  %v4611_v17 = vpop.permute.xlu1 %1708 }
 0x2ce   :  { %v2384_v42 = vpop.f32.mrf.mxu0  ;;  %4925 = vst [vmem:[#allocation32_spill] sm:$0xff] %v4611_v17 }
 0x2cf   :  { %4919 = vst [vmem:[#allocation26_spill] sm:$0xff] %v4591_v36  ;;  %v2079_v55 = vpop.f32.mrf.mxu1 }
 0x2d0   :  { %v2387_v34 = vpop.f32.mrf.mxu0 }
 0x2d1   :  { %v4597_v3 = vpop.f32.mrf.mxu1  ;;  %v4599_v28 = vadd.f32 %v2387_v34, %v2003_v24  ;;  %v4617_v44 = vpop.permute.xlu1 %1703 }
 0x2d2   :  { %v2389_v38 = vpop.f32.mrf.mxu0  ;;  %4927 = vst [vmem:[#allocation34_spill] sm:$0xff] %v4617_v44 }
 0x2d3   :  { %4921 = vst [vmem:[#allocation28_spill] sm:$0xff] %v4599_v28  ;;  %v2084_v57 = vpop.f32.mrf.mxu1 }
 0x2d4   :  { %v4603_v61 = vpop.f32.mrf.mxu0 }
 0x2d5   :  { %v4605_v35 = vpop.f32.mrf.mxu1  ;;  %v4629_v52 = vpop.permute.xlu1 %1698 }
 0x2d6   :  { %4923 = vst [vmem:[#allocation30_spill] sm:$0xff] %v4605_v35  ;;  %v2394_v11 = vpop.f32.mrf.mxu0 }
 0x2d7   :  { %v2089_v60 = vpop.f32.mrf.mxu1 }
 0x2d8   :  { %v4607_v42 = vpop.f32.mrf.mxu0 }
 0x2d9   :  { %v4609_v23 = vpop.f32.mrf.mxu1 }
 0x2da   :  { %4924 = vst [vmem:[#allocation31_spill] sm:$0xff] %v4609_v23  ;;  %v2399_v20 = vpop.f32.mrf.mxu0 }
 0x2db   :  { %v2094_v55 = vpop.f32.mrf.mxu1  ;;  %v2674_v20 = vlaneseq }
 0x2dc   :  { %v4613_v24 = vpop.f32.mrf.mxu0 }
 0x2dd   :  { %v4615_v34 = vpop.f32.mrf.mxu1 }
 0x2de   :  { %4926 = vst [vmem:[#allocation33_spill] sm:$0xff] %v4615_v34  ;;  %v2404_v38 = vpop.f32.mrf.mxu0 }
 0x2df   :  { %v2099_v57 = vpop.f32.mrf.mxu1  ;;  %v4631_v38 = vshrl.u32 %v2674_v20, 7  ;;  %v4646_v20 = vpop.permute.xlu1 %1693 }
 0x2e0   :  { %v4619_v10 = vpop.f32.mrf.mxu0 }
 0x2e1   :  { %v4621_v11 = vpop.f32.mrf.mxu1  ;;  %v2680_v15 = vsub.s32 1, %v4631_v38 }
 0x2e2   :  { %4928 = vst [vmem:[#allocation35_spill] sm:$0xff] %v4621_v11  ;;  %v2409_v60 = vpop.f32.mrf.mxu0 }
 0x2e3   :  { %v2104_v27 = vpop.f32.mrf.mxu1  ;;  %v4643_v60 = vpop.permute.xlu0 %1828 }
 0x2e4   :  { %v4625_v32 = vpop.f32.mrf.mxu0  ;;  %v4641_v27 = vld [vmem:[%s4899_s5] sm:$0xf]  ;;  %4932 = vst [vmem:[#allocation39_spill] sm:$0xff] %v4643_v60  ;;  %v1689_v30 = vpop.permute.xlu1 %1688 }
 0x2e5   :  { %v4627_v55 = vpop.f32.mrf.mxu1 }
 0x2e6   :  { %4930 = vst [vmem:[#allocation37_spill] sm:$0xff] %v4627_v55  ;;  %v2414_v34 = vpop.f32.mrf.mxu0  ;;  %v2681_v55 = vrot.slane %v4641_v27, %v2680_v15 }
 0x2e7   :  { %v2109_v57 = vpop.f32.mrf.mxu1 }
 0x2e8   :  { %v4633_v12 = vpop.f32.mrf.mxu0  ;;  %2758 = vmatprep.mubr.f32.mxu1 %v2681_v55  ;;  %v1684_v55 = vpop.permute.xlu1 %1683 }
 0x2e9   :  { %v4636_v11 = vpop.f32.mrf.mxu1 }
 0x2ea   :  { %4931 = vst [vmem:[#allocation38_spill] sm:$0xff] %v4636_v11  ;;  %v2419_v50 = vpop.f32.mrf.mxu0  ;;  %v4650_v11 = vpop.permute.xlu0 %1823 }
 0x2eb   :  { %v2114_v34 = vpop.f32.mrf.mxu1  ;;  %4934 = vst [vmem:[#allocation41_spill] sm:$0xff] %v4650_v11  ;;  %v2058_v11 = vadd.f32 %v4565_v26, %v4425_v45 }
 0x2ec   :  { %v2422_v57 = vpop.f32.mrf.mxu0  ;;  %v1679_v8 = vpop.permute.xlu1 %1678 }
 0x2ed   :  { %v4648_v6 = vpop.f32.mrf.mxu1 }
 0x2ee   :  { %4933 = vst [vmem:[#allocation40_spill] sm:$0xff] %v4648_v6  ;;  %v2424_v29 = vpop.f32.mrf.mxu0  ;;  %v4656_v15 = vpop.permute.xlu0 %1818 }
 0x2ef   :  { %v2119_v23 = vpop.f32.mrf.mxu1  ;;  %4937 = vst [vmem:[#allocation44_spill] sm:$0xff] %v4656_v15  ;;  %v2048_v15 = vadd.f32 %v4549_v54, %v4437_v63  ;;  %v2038_v63 = vadd.f32 %v4535_v49, %v4447_v14 }
 0x2f0   :  { %v2427_v17 = vpop.f32.mrf.mxu0  ;;  %v2053_v23 = vadd.f32 %v4557_v53, %v4431_v31  ;;  %v2063_v31 = vadd.f32 %v4570_v40, %v1679_v8  ;;  %v2619_v40 = vmax.f32 %v4551_v59, 0.0  ;;  %v2073_v59 = vadd.f32 %v4584_v19, %v1689_v30 }
 0x2f1   :  { %v4652_v36 = vpop.f32.mrf.mxu1  ;;  %v2684_v19 = vsub.s32 2, %v4631_v38 }
 0x2f2   :  { %4935 = vst [vmem:[#allocation42_spill] sm:$0xff] %v4652_v36  ;;  %v2429_v28 = vpop.f32.mrf.mxu0 }
 0x2f3   :  { %v2124_v60 = vpop.f32.mrf.mxu1 }
 0x2f4   :  { %v2432_v50 = vpop.f32.mrf.mxu0  ;;  %v4664_v60 = vpop.permute.xlu0 %1813 }
 0x2f5   :  { %v4654_v4 = vpop.f32.mrf.mxu1  ;;  %4939 = vst [vmem:[#allocation46_spill] sm:$0xff] %v4664_v60  ;;  %v2433_v53 = vadd.f32 %v2432_v50, %v2048_v15 }
 0x2f6   :  { %4936 = vst [vmem:[#allocation43_spill] sm:$0xff] %v4654_v4  ;;  %v2434_v34 = vpop.f32.mrf.mxu0 }
 0x2f7   :  { %v2129_v35 = vpop.f32.mrf.mxu1  ;;  %v2635_v14 = vmax.f32 %v2433_v53, 0.0 }
 0x2f8   :  { %v2437_v44 = vpop.f32.mrf.mxu0 }
 0x2f9   :  { %v4658_v6 = vpop.f32.mrf.mxu1  ;;  %v2438_v34 = vadd.f32 %v2437_v44, %v2053_v23 }
 0x2fa   :  { %4938 = vst [vmem:[#allocation45_spill] sm:$0xff] %v4658_v6  ;;  %v2439_v29 = vpop.f32.mrf.mxu0 }
 0x2fb   :  { %v2134_v28 = vpop.f32.mrf.mxu1  ;;  %v2043_v29 = vadd.f32 %v4543_v41, %v4443_v39  ;;  %v2636_v44 = vmax.f32 %v2438_v34, 0.0  ;;  %v2620_v39 = vmax.f32 %v4559_v0, 0.0  ;;  %v2068_v41 = vadd.f32 %v4577_v56, %v1684_v55 }
 0x2fc   :  { %v2442_v36 = vpop.f32.mrf.mxu0  ;;  %v2621_v28 = vmax.f32 %v4567_v13, 0.0  ;;  %v2423_v13 = vadd.f32 %v2422_v57, %v2038_v63  ;;  %v2617_v55 = vmax.f32 %v4537_v51, 0.0  ;;  %v2013_v51 = vadd.f32 %v4495_v18, %v4499_v1 }
 0x2fd   :  { %v4668_v35 = vpop.f32.mrf.mxu1  ;;  %v2443_v4 = vadd.f32 %v2442_v36, %v2058_v11  ;;  %v2428_v54 = vadd.f32 %v2427_v17, %v2043_v29  ;;  %v2028_v11 = vadd.f32 %v4519_v46, %v4465_v47 }
 0x2fe   :  { %v2444_v6 = vpop.f32.mrf.mxu0  ;;  %v2633_v47 = vmax.f32 %v2423_v13, 0.0  ;;  %v2398_v18 = vadd.f32 %v4607_v42, %v2013_v51  ;;  %v2613_v42 = vmax.f32 %v4505_v16, 0.0  ;;  %v4950_v16 = vld [vmem:[#allocation14_spill] sm:$0xff]  ;;  %v4958_v51 = vld [vmem:[#allocation25_spill] sm:$0xff] }
 0x2ff   :  { %v2637_v45 = vmax.f32 %v2443_v4, 0.0  ;;  %v2139_v26 = vpop.f32.mrf.mxu1  ;;  %v4680_v6 = vpop.permute.xlu0 %1808  ;;  %v2033_v4 = vadd.f32 %v4527_v48, %v4456_v21  ;;  %v2634_v50 = vmax.f32 %v2428_v54, 0.0  ;;  %v2618_v21 = vmax.f32 %v4545_v5, 0.0 }
 0x300   :  { %v2447_v60 = vpop.f32.mrf.mxu0  ;;  %v2023_v48 = vadd.f32 %v4511_v25, %v4477_v7  ;;  %v2413_v57 = vadd.f32 %v4625_v32, %v2028_v11  ;;  %v2018_v5 = vadd.f32 %v4503_v62, %v4487_v33  ;;  %v2616_v32 = vmax.f32 %v4529_v43, 0.0 }
 0x301   :  { %v4676_v23 = vpop.f32.mrf.mxu1  ;;  %v4678_v36 = vadd.f32 %v2447_v60, %v2063_v31  ;;  %3010 = vmatprep.subr.mxu1 %v2637_v45  ;;  %v2418_v0 = vadd.f32 %v4633_v12, %v2033_v4  ;;  %v2078_v33 = vadd.f32 %v4589_v58, %v4646_v20  ;;  %v2615_v45 = vmax.f32 %v4521_v37, 0.0 }
 0x302   :  { %v2449_v8 = vpop.f32.mrf.mxu0  ;;  %3011 = vmatpush3.msra.mxu1 %v2621_v28  ;;  %v2408_v29 = vadd.f32 %v4619_v10, %v2023_v48  ;;  %v2403_v62 = vadd.f32 %v4613_v24, %v2018_v5  ;;  %v2631_v10 = vmax.f32 %v2413_v57, 0.0  ;;  %v4718_v43 = vrot.slane %v4641_v27, %v2684_v19  ;;  %v4956_v5 = vld [vmem:[#allocation31_spill] sm:$0xff] }
 0x303   :  { %4940 = vst [vmem:[#allocation47_spill] sm:$0xff] %v4678_v36  ;;  %v2144_v49 = vpop.f32.mrf.mxu1  ;;  %3012 = vmatprep.subr.mxu1 %v2636_v44  ;;  %v4699_v12 = vpop.permute.xlu0 %1803  ;;  %v2632_v31 = vmax.f32 %v2418_v0, 0.0  ;;  %v2008_v28 = vadd.f32 %v4489_v2, %v4509_v9  ;;  %v2614_v37 = vmax.f32 %v4513_v22, 0.0  ;;  %v2083_v54 = vadd.f32 %v4597_v3, %v4629_v52  ;;  %v4947_v22 = vld [vmem:[#allocation15_spill] sm:$0xff]  ;;  %v4948_v3 = vld [vmem:[#allocation34_spill] sm:$0xff] }
 0x304   :  { %v2452_v17 = vpop.f32.mrf.mxu0  ;;  %3013 = vmatpush3.msra.mxu1 %v2620_v39  ;;  %4944 = vst [vmem:[#allocation51_spill] sm:$0xff] %v4718_v43  ;;  %v2630_v1 = vmax.f32 %v2408_v29, 0.0  ;;  %v2629_v2 = vmax.f32 %v2403_v62, 0.0  ;;  %v2628_v8 = vmax.f32 %v2398_v18, 0.0  ;;  %v2612_v13 = vmax.f32 %v4947_v22, 0.0  ;;  %v4949_v52 = vld [vmem:[#allocation30_spill] sm:$0xff] }
 0x305   :  { %v4690_v15 = vpop.f32.mrf.mxu1  ;;  %v4692_v60 = vadd.f32 %v2452_v17, %v2068_v41  ;;  %3014 = vmatprep.subr.mxu1 %v2635_v14  ;;  %v2393_v44 = vadd.f32 %v4603_v61, %v2008_v28  ;;  %v2088_v61 = vadd.f32 %v4949_v52, %v4948_v3  ;;  %v2611_v11 = vmax.f32 %v4950_v16, 0.0  ;;  %v4964_v22 = vld [vmem:[#allocation21_spill] sm:$0xff]  ;;  %v4966_v16 = vld [vmem:[#allocation27_spill] sm:$0xff] }
 0x306   :  { %v2454_v56 = vpop.f32.mrf.mxu0  ;;  %3015 = vmatpush3.msra.mxu1 %v2619_v40  ;;  %v4965_v52 = vld [vmem:[#allocation9_spill] sm:$0xff] }
 0x307   :  { %4941 = vst [vmem:[#allocation48_spill] sm:$0xff] %v4692_v60  ;;  %v2149_v46 = vpop.f32.mrf.mxu1  ;;  %3016 = vmatprep.subr.mxu1 %v2634_v50  ;;  %v4727_v24 = vpop.permute.xlu0 %1798  ;;  %v2627_v49 = vmax.f32 %v2393_v44, 0.0  ;;  %v4951_v50 = vld [vmem:[#allocation28_spill] sm:$0xff]  ;;  %v4962_v44 = vld [vmem:[#allocation33_spill] sm:$0xff] }
 0x308   :  { %v2457_v34 = vpop.f32.mrf.mxu0  ;;  %3017 = vmatpush3.msra.mxu1 %v2618_v21  ;;  %v2626_v21 = vmax.f32 %v4951_v50, 0.0  ;;  %v4954_v46 = vld [vmem:[#allocation26_spill] sm:$0xff]  ;;  %v4983_v60 = vld [vmem:[#allocation36_spill] sm:$0xff] }
 0x309   :  { %v4705_v7 = vpop.f32.mrf.mxu1  ;;  %v4707_v30 = vadd.f32 %v2457_v34, %v2073_v59  ;;  %3018 = vmatprep.subr.mxu1 %v2633_v47  ;;  %v4953_v59 = vld [vmem:[#allocation13_spill] sm:$0xff]  ;;  %v4955_v34 = vld [vmem:[#allocation32_spill] sm:$0xff] }
 0x30a   :  { %4942 = vst [vmem:[#allocation49_spill] sm:$0xff] %v4705_v7  ;;  %v2459_v25 = vpop.f32.mrf.mxu0  ;;  %3019 = vmatpush3.msra.mxu1 %v2617_v55  ;;  %v2610_v57 = vmax.f32 %v4953_v59, 0.0  ;;  %v2625_v55 = vmax.f32 %v4954_v46, 0.0  ;;  %v2093_v29 = vadd.f32 %v4956_v5, %v4955_v34  ;;  %v4969_v34 = vld [vmem:[#allocation37_spill] sm:$0xff] }
 0x30b   :  { %4943 = vst [vmem:[#allocation50_spill] sm:$0xff] %v4707_v30  ;;  %v2154_v53 = vpop.f32.mrf.mxu1  ;;  %3020 = vmatprep.subr.mxu1 %v2632_v31  ;;  %v4741_v17 = vpop.permute.xlu0 %1793  ;;  %v4984_v30 = vld [vmem:[#allocation17_spill] sm:$0xff] }
 0x30c   :  { %v2462_v26 = vpop.f32.mrf.mxu0  ;;  %3021 = vmatpush3.msra.mxu1 %v2616_v32  ;;  %v4957_v32 = vld [vmem:[#allocation12_spill] sm:$0xff]  ;;  %v2676_v53 = vsub.s32 0, %v4631_v38 }
 0x30d   :  { %v4723_v63 = vpop.f32.mrf.mxu1  ;;  %v4725_v58 = vadd.f32 %v2462_v26, %v2078_v33  ;;  %3022 = vmatprep.subr.mxu1 %v2631_v10  ;;  %v2609_v25 = vmax.f32 %v4957_v32, 0.0  ;;  %v2624_v33 = vmax.f32 %v4958_v51, 0.0  ;;  %v4959_v26 = vld [vmem:[#allocation11_spill] sm:$0xff]  ;;  %v4970_v51 = vld [vmem:[#allocation22_spill] sm:$0xff] }
 0x30e   :  { %v2464_v20 = vpop.f32.mrf.mxu0  ;;  %3023 = vmatpush3.msra.mxu1 %v2615_v45  ;;  %v2608_v28 = vmax.f32 %v4959_v26, 0.0 }
 0x30f   :  { %4945 = vst [vmem:[#allocation52_spill] sm:$0xff] %v4725_v58  ;;  %v2159_v9 = vpop.f32.mrf.mxu1  ;;  %3024 = vmatprep.subr.mxu1 %v2630_v1  ;;  %v4760_v45 = vpop.permute.xlu0 %1788  ;;  %v2688_v1 = vsub.s32 3, %v4631_v38  ;;  %v2677_v38 = vrot.slane %v4641_v27, %v2676_v53 }
 0x310   :  { %v2467_v39 = vpop.f32.mrf.mxu0  ;;  %3025 = vmatpush3.msra.mxu1 %v2614_v37  ;;  %v4960_v37 = vld [vmem:[#allocation23_spill] sm:$0xff] }
 0x311   :  { %v4734_v4 = vpop.f32.mrf.mxu1  ;;  %v4736_v41 = vadd.f32 %v2467_v39, %v2083_v54  ;;  %3026 = vmatprep.subr.mxu1 %v2629_v2  ;;  %v2623_v20 = vmax.f32 %v4960_v37, 0.0  ;;  %v4961_v54 = vld [vmem:[#allocation29_spill] sm:$0xff] }
 0x312   :  { %v2469_v14 = vpop.f32.mrf.mxu0  ;;  %3027 = vmatpush3.msra.mxu1 %v2613_v42  ;;  %v2098_v2 = vadd.f32 %v4962_v44, %v4961_v54  ;;  %v4963_v42 = vld [vmem:[#allocation10_spill] sm:$0xff]  ;;  %v4973_v54 = vld [vmem:[#allocation40_spill] sm:$0xff] }
 0x313   :  { %4946 = vst [vmem:[#allocation53_spill] sm:$0xff] %v4736_v41  ;;  %v2164_v40 = vpop.f32.mrf.mxu1  ;;  %3028 = vmatprep.subr.mxu1 %v2628_v8  ;;  %v2607_v39 = vmax.f32 %v4963_v42, 0.0  ;;  %v4986_v41 = vld [vmem:[#allocation41_spill] sm:$0xff] }
 0x314   :  { %v2472_v0 = vpop.f32.mrf.mxu0  ;;  %3029 = vmatpush3.msra.mxu1 %v2612_v13  ;;  %v2622_v13 = vmax.f32 %v4964_v22, 0.0  ;;  %v2689_v40 = vrot.slane %v4641_v27, %v2688_v1 }
 0x315   :  { %v4745_v56 = vpop.f32.mrf.mxu1  ;;  %v4747_v48 = vadd.f32 %v2472_v0, %v2088_v61  ;;  %3030 = vmatprep.subr.mxu1 %v2627_v49  ;;  %v2606_v61 = vmax.f32 %v4965_v52, 0.0 }
 0x316   :  { %v2474_v47 = vpop.f32.mrf.mxu0  ;;  %3031 = vmatpush3.msra.mxu1 %v2611_v11  ;;  %v4967_v11 = vld [vmem:[#allocation35_spill] sm:$0xff] }
 0x317   :  { %4952 = vst [vmem:[#allocation15_spill] sm:$0xff] %v4747_v48  ;;  %v2169_v31 = vpop.f32.mrf.mxu1  ;;  %3032 = vmatprep.subr.mxu1 %v2626_v21  ;;  %v2103_v0 = vadd.f32 %v4967_v11, %v4966_v16  ;;  %v4778_v21 = vpop.permute.xlu0 %1783  ;;  %v4987_v48 = vld [vmem:[#allocation18_spill] sm:$0xff] }
 0x318   :  { %v2477_v19 = vpop.f32.mrf.mxu0  ;;  %3033 = vmatpush3.msra.mxu1 %v2610_v57 }
 0x319   :  { %v4755_v62 = vpop.f32.mrf.mxu1  ;;  %v4757_v10 = vadd.f32 %v2477_v19, %v2093_v29  ;;  %3034 = vmatprep.subr.mxu1 %v2625_v55  ;;  %v4968_v55 = vld [vmem:[#allocation24_spill] sm:$0xff] }
 0x31a   :  { %v2479_v18 = vpop.f32.mrf.mxu0  ;;  %3035 = vmatpush3.msra.mxu1 %v2609_v25  ;;  %v2108_v5 = vadd.f32 %v4969_v34, %v4968_v55 }
 0x31b   :  { %v2174_v9 = vpop.f32.mrf.mxu1  ;;  %3036 = vmatprep.subr.mxu1 %v2624_v33  ;;  %v4790_v25 = vpop.permute.xlu0 %1778  ;;  %v4971_v33 = vld [vmem:[#allocation38_spill] sm:$0xff] }
 0x31c   :  { %v2482_v8 = vpop.f32.mrf.mxu0  ;;  %3037 = vmatpush3.msra.mxu1 %v2608_v28  ;;  %v2113_v53 = vadd.f32 %v4971_v33, %v4970_v51 }
 0x31d   :  { %v4769_v14 = vpop.f32.mrf.mxu1  ;;  %v4771_v3 = vadd.f32 %v2482_v8, %v2098_v2  ;;  %3038 = vmatprep.subr.mxu1 %v2623_v20  ;;  %v4972_v20 = vld [vmem:[#allocation20_spill] sm:$0xff] }
 0x31e   :  { %v2484_v49 = vpop.f32.mrf.mxu0  ;;  %3039 = vmatpush3.msra.mxu1 %v2607_v39  ;;  %v2118_v44 = vadd.f32 %v4973_v54, %v4972_v20 }
 0x31f   :  { %v2179_v50 = vpop.f32.mrf.mxu1  ;;  %3040 = vmatprep.subr.mxu1 %v2622_v13  ;;  %v4800_v9 = vpop.permute.xlu0 %1773  ;;  %v4974_v13 = vld [vmem:[#allocation19_spill] sm:$0xff] }
 0x320   :  { %v2487_v59 = vpop.f32.mrf.mxu0  ;;  %3041 = vmatpush3.msra.mxu1 %v2606_v61 }
 0x321   :  { %v4780_v57 = vpop.f32.mrf.mxu1  ;;  %v4782_v47 = vadd.f32 %v2487_v59, %v2103_v0  ;;  %2759 = vmatmul.mubr.f32.vlgmr.msra.gmra.mxu1 %v2677_v38  ;;  %v4975_v38 = vld [vmem:[#allocation42_spill] sm:$0xff] }
 0x322   :  { %v2489_v46 = vpop.f32.mrf.mxu0  ;;  %2828 = vmatprep.mubr.f32.mxu1 %v2689_v40  ;;  %v2123_v52 = vadd.f32 %v4975_v38, %v4974_v13 }
 0x323   :  { %v2184_v27 = vpop.f32.mrf.mxu1  ;;  %v4812_v11 = vpop.permute.xlu0 %1768 }
 0x324   :  { %v2492_v29 = vpop.f32.mrf.mxu0  ;;  %4976 = vst [vmem:[#allocation34_spill] sm:$0xff] %v4812_v11 }
 0x325   :  { %v4786_v31 = vpop.f32.mrf.mxu1  ;;  %v4788_v32 = vadd.f32 %v2492_v29, %v2108_v5 }
 0x326   :  { %v2494_v19 = vpop.f32.mrf.mxu0 }
 0x327   :  { %v2189_v26 = vpop.f32.mrf.mxu1  ;;  %v1764_v5 = vpop.permute.xlu0 %1763 }
 0x328   :  { %v2497_v28 = vpop.f32.mrf.mxu0 }
 0x329   :  { %v4794_v18 = vpop.f32.mrf.mxu1  ;;  %v4796_v1 = vadd.f32 %v2497_v28, %v2113_v53 }
 0x32a   :  { %v2499_v37 = vpop.f32.mrf.mxu0 }
 0x32b   :  { %v2194_v2 = vpop.f32.mrf.mxu1  ;;  %v1759_v26 = vpop.permute.xlu0 %1758 }
 0x32c   :  { %v2502_v42 = vpop.f32.mrf.mxu0  ;;  %v2143_v37 = vadd.f32 %v4676_v23, %v1759_v26 }
 0x32d   :  { %v4802_v39 = vpop.f32.mrf.mxu1  ;;  %v4804_v8 = vadd.f32 %v2502_v42, %v2118_v44 }
 0x32e   :  { %v2504_v22 = vpop.f32.mrf.mxu0 }
 0x32f   :  { %v2199_v61 = vpop.f32.mrf.mxu1  ;;  %v2148_v22 = vadd.f32 %v4690_v15, %v1764_v5 }
 0x330   :  { %v2507_v49 = vpop.f32.mrf.mxu0 }
 0x331   :  { %v4808_v40 = vpop.f32.mrf.mxu1  ;;  %v4810_v16 = vadd.f32 %v2507_v49, %v2123_v52 }
 0x332   :  { %v2509_v0 = vpop.f32.mrf.mxu0 }
 0x333   :  { %v2204_v50 = vpop.f32.mrf.mxu1 }
 0x334   :  { %v4814_v59 = vpop.f32.mrf.mxu0 }
 0x335   :  { %v2207_v46 = vpop.f32.mrf.mxu1 }
 0x336   :  { %v2514_v55 = vpop.f32.mrf.mxu0 }
 0x337   :  { %v2209_v34 = vpop.f32.mrf.mxu1 }
 0x338   :  { %v2517_v27 = vpop.f32.mrf.mxu0 }
 0x339   :  { %v2212_v29 = vpop.f32.mrf.mxu1 }
 0x33a   :  { %v2519_v19 = vpop.f32.mrf.mxu0 }
 0x33b   :  { %v2214_v51 = vpop.f32.mrf.mxu1 }
 0x33c   :  { %v2522_v33 = vpop.f32.mrf.mxu0 }
 0x33d   :  { %v2217_v53 = vpop.f32.mrf.mxu1 }
 0x33e   :  { %v2524_v28 = vpop.f32.mrf.mxu0 }
 0x33f   :  { %v2219_v20 = vpop.f32.mrf.mxu1 }
 0x340   :  { %v2527_v54 = vpop.f32.mrf.mxu0 }
 0x341   :  { %v4817_v44 = vadd.f32 %v2527_v54, %v2143_v37  ;;  %v4819_v2 = vpop.f32.mrf.mxu1 }
 0x342   :  { %v2529_v42 = vpop.f32.mrf.mxu0 }
 0x343   :  { %4977 = vst [vmem:[#allocation30_spill] sm:$0xff] %v4817_v44  ;;  %v2554_v13 = vpop.f32.mrf.mxu1 }
 0x344   :  { %v2532_v38 = vpop.f32.mrf.mxu0 }
 0x345   :  { %v4822_v52 = vadd.f32 %v2532_v38, %v2148_v22  ;;  %v4824_v61 = vpop.f32.mrf.mxu1 }
 0x346   :  { %v2534_v49 = vpop.f32.mrf.mxu0 }
 0x347   :  { %4978 = vst [vmem:[#allocation14_spill] sm:$0xff] %v4822_v52  ;;  %v2559_v0 = vpop.f32.mrf.mxu1  ;;  %v2218_v52 = vadd.f32 %v2217_v53, %v4983_v60 }
 0x348   :  { %v4826_v50 = vpop.f32.mrf.mxu0 }
 0x349   :  { %4979 = vst [vmem:[#allocation28_spill] sm:$0xff] %v4826_v50  ;;  %v4828_v23 = vpop.f32.mrf.mxu1 }
 0x34a   :  { %v2539_v55 = vpop.f32.mrf.mxu0 }
 0x34b   :  { %v2564_v34 = vpop.f32.mrf.mxu1 }
 0x34c   :  { %v4830_v19 = vpop.f32.mrf.mxu0  ;;  %v4981_v34 = vld [vmem:[#allocation16_spill] sm:$0xff] }
 0x34d   :  { %4980 = vst [vmem:[#allocation13_spill] sm:$0xff] %v4830_v19  ;;  %v2567_v51 = vpop.f32.mrf.mxu1  ;;  %v2138_v36 = vadd.f32 %v4668_v35, %v4981_v34  ;;  %v4989_v35 = vld [vmem:[#allocation44_spill] sm:$0xff] }
 0x34e   :  { %v2544_v26 = vpop.f32.mrf.mxu0 }
 0x34f   :  { %v2569_v28 = vpop.f32.mrf.mxu1  ;;  %v4982_v26 = vld [vmem:[#allocation39_spill] sm:$0xff]  ;;  %v2523_v58 = vadd.f32 %v2522_v33, %v2138_v36 }
 0x350   :  { %v4832_v15 = vpop.f32.mrf.mxu0  ;;  %v2213_v28 = vadd.f32 %v2212_v29, %v4982_v26 }
 0x351   :  { %v2572_v5 = vpop.f32.mrf.mxu1  ;;  %v2653_v53 = vmax.f32 %v2523_v58, 0.0 }
 0x352   :  { %v2549_v37 = vpop.f32.mrf.mxu0 }
 0x353   :  { %v2574_v20 = vpop.f32.mrf.mxu1  ;;  %v4985_v37 = vld [vmem:[#allocation45_spill] sm:$0xff] }
 0x354   :  { %v2133_v20 = vadd.f32 %v4985_v37, %v4984_v30  ;;  %v4990_v30 = vld [vmem:[#allocation46_spill] sm:$0xff] }
 0x355   :  { %v2577_v54 = vpop.f32.mrf.mxu1  ;;  %v2198_v36 = vadd.f32 %v4802_v39, %v4990_v30  ;;  %v2650_v39 = vmax.f32 %v4810_v16, 0.0  ;;  %v2173_v16 = vadd.f32 %v4755_v62, %v4760_v45  ;;  %v2163_v62 = vadd.f32 %v4734_v4, %v4790_v25  ;;  %v5003_v30 = vld [vmem:[#allocation51_spill] sm:$0xff] }
 0x356   :  { %v2518_v7 = vadd.f32 %v2517_v27, %v2133_v20 }
 0x357   :  { %v2579_v42 = vpop.f32.mrf.mxu1 }
 0x359   :  { %v2582_v22 = vpop.f32.mrf.mxu1 }
 0x35b   :  { %v2584_v13 = vpop.f32.mrf.mxu1 }
 0x35c   :  { %v2208_v13 = vadd.f32 %v2207_v46, %v4986_v41  ;;  %v2652_v46 = vmax.f32 %v2518_v7, 0.0  ;;  %v2183_v7 = vadd.f32 %v4780_v57, %v4727_v24 }
 0x35d   :  { %v2587_v38 = vpop.f32.mrf.mxu1 }
 0x35f   :  { %v2589_v49 = vpop.f32.mrf.mxu1 }
 0x361   :  { %v2592_v0 = vpop.f32.mrf.mxu1 }
 0x362   :  { %v2593_v29 = vadd.f32 %v2592_v0, %v2208_v13  ;;  %v4994_v0 = vld [vmem:[#allocation15_spill] sm:$0xff] }
 0x363   :  { %v2594_v43 = vpop.f32.mrf.mxu1 }
 0x364   :  { %v4988_v43 = vld [vmem:[#allocation43_spill] sm:$0xff]  ;;  %v2667_v27 = vmax.f32 %v2593_v29, 0.0  ;;  %v5001_v29 = vld [vmem:[#allocation30_spill] sm:$0xff] }
 0x365   :  { %v2597_v55 = vpop.f32.mrf.mxu1  ;;  %v2128_v19 = vadd.f32 %v4988_v43, %v4987_v48  ;;  %v2193_v48 = vadd.f32 %v4794_v18, %v4680_v6  ;;  %v2649_v6 = vmax.f32 %v4804_v8, 0.0  ;;  %v2178_v18 = vadd.f32 %v4769_v14, %v4741_v17 }
 0x366   :  { %v2598_v50 = vadd.f32 %v2597_v55, %v2213_v28  ;;  %v2168_v8 = vadd.f32 %v4745_v56, %v4778_v21  ;;  %v2558_v17 = vadd.f32 %v4824_v61, %v2173_v16  ;;  %v2158_v56 = vadd.f32 %v4723_v63, %v4800_v9  ;;  %v4995_v55 = vld [vmem:[#allocation28_spill] sm:$0xff]  ;;  %v4996_v9 = vld [vmem:[#allocation53_spill] sm:$0xff] }
 0x367   :  { %v2599_v44 = vpop.f32.mrf.mxu1  ;;  %v2513_v60 = vadd.f32 %v4814_v59, %v2128_v19  ;;  %v2188_v59 = vadd.f32 %v4786_v31, %v4699_v12  ;;  %v2578_v58 = vadd.f32 %v2577_v54, %v2193_v48  ;;  %v2648_v31 = vmax.f32 %v4796_v1, 0.0  ;;  %v4992_v54 = vld [vmem:[#allocation49_spill] sm:$0xff] }
 0x368   :  { %v2203_v44 = vadd.f32 %v4808_v40, %v4989_v35  ;;  %v2668_v41 = vmax.f32 %v2598_v50, 0.0  ;;  %v2563_v24 = vadd.f32 %v4828_v23, %v2178_v18  ;;  %v2646_v1 = vmax.f32 %v4782_v47, 0.0  ;;  %v5000_v35 = vld [vmem:[#allocation48_spill] sm:$0xff] }
 0x369   :  { %v2602_v42 = vpop.f32.mrf.mxu1  ;;  %v2651_v40 = vmax.f32 %v2513_v60, 0.0  ;;  %v2573_v50 = vadd.f32 %v2572_v5, %v2188_v59  ;;  %v2664_v12 = vmax.f32 %v2578_v58, 0.0  ;;  %v2647_v5 = vmax.f32 %v4788_v32, 0.0  ;;  %v5002_v60 = vld [vmem:[#allocation47_spill] sm:$0xff] }
 0x36a   :  { %v2603_v49 = vadd.f32 %v2602_v42, %v2218_v52  ;;  %v2588_v33 = vadd.f32 %v2587_v38, %v2203_v44  ;;  %v2553_v45 = vadd.f32 %v4819_v2, %v2168_v8  ;;  %v2661_v23 = vmax.f32 %v2563_v24, 0.0  ;;  %v4993_v2 = vld [vmem:[#allocation13_spill] sm:$0xff]  ;;  %v4998_v42 = vld [vmem:[#allocation50_spill] sm:$0xff] }
 0x36b   :  { %v2604_v11 = vpop.f32.mrf.mxu1  ;;  %v2663_v57 = vmax.f32 %v2573_v50, 0.0  ;;  %v2645_v32 = vmax.f32 %v4771_v3, 0.0  ;;  %v2660_v21 = vmax.f32 %v2558_v17, 0.0  ;;  %v2548_v61 = vadd.f32 %v4832_v15, %v2163_v62 }
 0x36c   :  { %v2669_v34 = vmax.f32 %v2603_v49, 0.0  ;;  %v2583_v11 = vadd.f32 %v2582_v22, %v2198_v36  ;;  %v2666_v52 = vmax.f32 %v2588_v33, 0.0  ;;  %v2568_v22 = vadd.f32 %v2567_v51, %v2183_v7  ;;  %v4991_v51 = vld [vmem:[#allocation34_spill] sm:$0xff] }
 0x36d   :  { %v2644_v47 = vmax.f32 %v4757_v10, 0.0  ;;  %v2153_v4 = vadd.f32 %v4992_v54, %v4991_v51  ;;  %v2659_v25 = vmax.f32 %v2553_v45, 0.0  ;;  %v2543_v38 = vadd.f32 %v4993_v2, %v2158_v56  ;;  %v4997_v10 = vld [vmem:[#allocation52_spill] sm:$0xff]  ;;  %v4999_v49 = vld [vmem:[#allocation14_spill] sm:$0xff] }
 0x36e   :  { %3045 = vmatprep.subr.mxu1 %v2669_v34  ;;  %v2665_v19 = vmax.f32 %v2583_v11, 0.0  ;;  %v2662_v14 = vmax.f32 %v2568_v22, 0.0  ;;  %v2643_v3 = vmax.f32 %v4994_v0, 0.0  ;;  %v2658_v63 = vmax.f32 %v2548_v61, 0.0 }
 0x36f   :  { %3046 = vmatpush3.msra.mxu1 %v2653_v53  ;;  %v2538_v26 = vadd.f32 %v4995_v55, %v2153_v4  ;;  %v2642_v15 = vmax.f32 %v4996_v9, 0.0  ;;  %v2657_v28 = vmax.f32 %v2543_v38, 0.0  ;;  %v2641_v37 = vmax.f32 %v4997_v10, 0.0 }
 0x370   :  { %3047 = vmatprep.subr.mxu1 %v2668_v41  ;;  %v2640_v13 = vmax.f32 %v4998_v42, 0.0  ;;  %v2655_v43 = vmax.f32 %v4999_v49, 0.0  ;;  %v2639_v44 = vmax.f32 %v5000_v35, 0.0  ;;  %v2654_v34 = vmax.f32 %v5001_v29, 0.0 }
 0x371   :  { %3048 = vmatpush3.msra.mxu1 %v2652_v46  ;;  %v2656_v20 = vmax.f32 %v2538_v26, 0.0  ;;  %v2638_v53 = vmax.f32 %v5002_v60, 0.0  ;;  %v2672_v46 = vstv %s4900_s6 }
 0x372   :  { %3049 = vmatprep.subr.mxu1 %v2667_v27 }
 0x373   :  { %3050 = vmatpush3.msra.mxu1 %v2651_v40 }
 0x374   :  { %3051 = vmatprep.subr.mxu1 %v2666_v52 }
 0x375   :  { %3052 = vmatpush3.msra.mxu1 %v2650_v39 }
 0x376   :  { %3053 = vmatprep.subr.mxu1 %v2665_v19 }
 0x377   :  { %3054 = vmatpush3.msra.mxu1 %v2649_v6 }
 0x378   :  { %3055 = vmatprep.subr.mxu1 %v2664_v12 }
 0x379   :  { %3056 = vmatpush3.msra.mxu1 %v2648_v31 }
 0x37a   :  { %3057 = vmatprep.subr.mxu1 %v2663_v57 }
 0x37b   :  { %3058 = vmatpush3.msra.mxu1 %v2647_v5 }
 0x37c   :  { %3059 = vmatprep.subr.mxu1 %v2662_v14 }
 0x37d   :  { %3060 = vmatpush3.msra.mxu1 %v2646_v1 }
 0x37e   :  { %3061 = vmatprep.subr.mxu1 %v2661_v23 }
 0x37f   :  { %3062 = vmatpush3.msra.mxu1 %v2645_v32 }
 0x380   :  { %3063 = vmatprep.subr.mxu1 %v2660_v21 }
 0x381   :  { %3064 = vmatpush3.msra.mxu1 %v2644_v47 }
 0x382   :  { %3065 = vmatprep.subr.mxu1 %v2659_v25 }
 0x383   :  { %3066 = vmatpush3.msra.mxu1 %v2643_v3 }
 0x384   :  { %3067 = vmatprep.subr.mxu1 %v2658_v63 }
 0x385   :  { %3068 = vmatpush3.msra.mxu1 %v2642_v15 }
 0x386   :  { %3069 = vmatprep.subr.mxu1 %v2657_v28 }
 0x387   :  { %3070 = vmatpush3.msra.mxu1 %v2641_v37 }
 0x388   :  { %3071 = vmatprep.subr.mxu1 %v2656_v20 }
 0x389   :  { %3072 = vmatpush3.msra.mxu1 %v2640_v13 }
 0x38a   :  { %3073 = vmatprep.subr.mxu1 %v2655_v43 }
 0x38b   :  { %3074 = vmatpush3.msra.mxu1 %v2639_v44 }
 0x38c   :  { %3075 = vmatprep.subr.mxu1 %v2654_v34 }
 0x38d   :  { %3076 = vmatpush3.msra.mxu1 %v2638_v53 }
 0x38e   :  { %2829 = vmatmul.mubr.f32.vlgmr.msra.gmra.mxu1 %v5003_v30 }
 0x3e1   :  { %v3042_v36 = vpop.f32.mrf.mxu1 }
 0x3e3   :  { %v3043_v33 = vpop.f32.mrf.mxu1 }
 0x3e4   :  { %v3044_v41 = vadd.f32 %v3043_v33, %v3042_v36 }
 0x3e6   :  { %v2761_v27 = vadd.f32 %v3044_v41, %v2672_v46 }
 0x44e   :  { %v3077_v48 = vpop.f32.mrf.mxu1 }
 0x450   :  { %v3078_v11 = vpop.f32.mrf.mxu1 }
 0x451   :  { %v3079_v40 = vadd.f32 %v3078_v11, %v3077_v48 }
 0x453   :  { %v2831_v59 = vadd.f32 %v3079_v40, %v2761_v27 }
 0x455   :  { %2834 = vst [vmem:[#allocation6] sm:$0x1] %v2831_v59 }
 0x456   :  { %3311 = shalt.err (!%p3308_p9)
}
 0x457   :  { %2844 = dma.vmem_to_hbm [thread:$0]  %s2842_s18, 16, %s4901_s7, [#allocation5]  }
 0x458   :  { %3322 = dma.done.wait [#allocation5], 16  }
 0x459   :  { %3323 = vsyncadd [#allocation5], 4294967280 }
 0x45a   :  { %2848 = vsyncpa [#allocation4], 1 }
 0x45b   :  { %2849 = vsyncpa [#allocation5], 1 }

</bundles_post_ra>
